<compile_context>
chip_gen: v5e
topology: v5e:2x2
jax: 0.10.0
libtpu: 0.0.40
codegen_flags: <defaults>
</compile_context>

<pallas_src>
import numpy as np
import jax
import jax.numpy as jnp
from jax.experimental import pallas as pl
from jax.experimental.pallas import tpu as pltpu

# ---------------- scaled-down configuration ----------------
B = 2                 # batch size
T = 8                 # question length (tokens)
R = 8                 # n_regions (visual features per image)
VOCAB = 50
E_WORD = 32           # word-embedding dim (text-encoder stand-in)
Q_EMB_DIM = 128       # config.q_emb_dim
DH = Q_EMB_DIM // 2   # RNN feature dim fed to q_att_linear0
ATT_HID = 128         # stands in for 512
N_GLIMPSES = 2
DV = 256              # visual feature dim (stands in for 2048)
MM_DIM = 256          # fusion mm_dim (stands in for 1000)
CHUNKS = 4            # fusion chunks (stands in for 20)
RANK = 3              # fusion rank (stands in for 15)
CHUNK = MM_DIM // CHUNKS
SRK = CHUNK * RANK
FUSE_OUT = 256        # fusion output_dim (stands in for 2048)
CLS_HID = 256         # classifier hidden (stands in for 2048)
N_ANS = 32            # config.num_ans_candidates
LANE = 128


# ============ single fused Pallas kernel: attention + fusion + agg + MLP ============
def _rubi_fused_kernel(qlen_ref, qf_ref, wa0, ba0, wa1, ba1,
                       v_ref, wf0, bf0, wf1, bf1,
                       wm0, bm0, wm1, bm1, rsum_ref,
                       wout, bout,
                       wc0, bc0, wc1, bc1, wc2, bc2,
                       qemb_ref, mm_ref, amax_ref, logits_ref):
    Bq, Tq, Dh = qf_ref.shape
    G = wa1.shape[1]
    _, Rr, Dv = v_ref.shape
    BR = Bq * Rr
    MM = wf0.shape[1]
    CSRk = wm0.shape[1]
    Do = wout.shape[1]

    # ---- self question attention (fused: q_emb stays resident in VMEM) ----
    qf = qf_ref[...]                                   # (B, T, Dh) f32
    qf2d = qf.reshape(Bq * Tq, Dh)
    h = jnp.dot(qf2d.astype(jnp.bfloat16), wa0[...],
                preferred_element_type=jnp.float32) + ba0[...]
    h = jnp.maximum(h, 0.0)                            # F.relu
    att = jnp.dot(h.astype(jnp.bfloat16), wa1[...],
                  preferred_element_type=jnp.float32) + ba1[...]
    att = att.reshape(Bq, Tq, G)                       # (B, T, 2)

    # mask_softmax: one broadcasted compare (lengths as a (B,1) int32 column),
    # *global* max subtraction (as in the reference), +1e-5 denominator.
    t_iota = jax.lax.broadcasted_iota(jnp.int32, (1, Tq, 1), 1)
    mask = (t_iota < qlen_ref[...][:, :, None]).astype(jnp.float32)   # (B, T, 1)
    x2 = jnp.exp(att - jnp.max(att))
    x3 = x2 * mask
    x4 = x3 / (jnp.sum(x3, axis=1, keepdims=True) + 1e-5)

    # per-glimpse attention pooling: one broadcast multiply + one reduce pass,
    # then a single lane-dense store of the (B, G*Dh) result.
    pooled = jnp.sum(x4[:, :, :, None] * qf[:, :, None, :], axis=1)   # (B, G, Dh)
    q_emb = pooled.reshape(Bq, G * Dh)                                # (B, Q_EMB_DIM)
    qemb_ref[...] = q_emb

    # ---- Block fusion input projections (batched M = B and B*R, bf16 MXU) ----
    # (x0 is computed once per batch row and broadcast over regions, instead of
    #  the torch-style redundant B*R-row projection; numerically identical.)
    v2d = v_ref[...].reshape(BR, Dv)
    x0 = jnp.dot(q_emb.astype(jnp.bfloat16), wf0[...],
                 preferred_element_type=jnp.float32) + bf0[...]       # (B, MM)
    x1 = jnp.dot(v2d.astype(jnp.bfloat16), wf1[...],
                 preferred_element_type=jnp.float32) + bf1[...]       # (BR, MM)

    # ---- chunked low-rank bilinear merge: ALL chunks at once ----
    # Merge weights are block-diagonal over chunks, so each side is a single
    # lane-aligned bf16 matmul (no misaligned chunk slicing, one cast each).
    m0 = jnp.dot(x0.astype(jnp.bfloat16), wm0[...],
                 preferred_element_type=jnp.float32) + bm0[...]       # (B,  C*S*Rk)
    m1 = jnp.dot(x1.astype(jnp.bfloat16), wm1[...],
                 preferred_element_type=jnp.float32) + bm1[...]       # (BR, C*S*Rk)
    m = (m1.reshape(Bq, Rr, CSRk) * m0[:, None, :]).reshape(BR, CSRk)

    # rank reduction for all chunks as ONE bf16 MXU contraction against the
    # block-diagonal stacked-identity matrix (0/1 entries -> exact f32 sums of
    # the bf16-rounded m):  z[:, c*S + s] = sum_r m[:, c*S*Rk + r*S + s]
    z = jnp.dot(m.astype(jnp.bfloat16), rsum_ref[...],
                preferred_element_type=jnp.float32)                   # (BR, MM)

    # pos_norm == 'before_cat': signed sqrt, then per-chunk L2 normalize (f32)
    z = jnp.sqrt(jnp.maximum(z, 0.0)) - jnp.sqrt(jnp.maximum(-z, 0.0))
    z3 = z.reshape(BR, CHUNKS, CHUNK)
    nrm = jnp.sqrt(jnp.sum(z3 * z3, axis=-1, keepdims=True))
    z = (z3 / jnp.maximum(nrm, 1e-12)).reshape(BR, MM)

    # concat-then-linear_out == one (BR, MM) x (MM, Do) matmul
    fused = jnp.dot(z.astype(jnp.bfloat16), wout[...],
                    preferred_element_type=jnp.float32) + bout[...]   # (BR, Do)

    # ---- agg['type'] == 'max': torch.max(mm, 1) -> values and argmax ----
    # fused/mx are both f32 and mx is taken from fused, so the equality test is
    # bit-exact; ties resolve to the lowest region index.
    fused3 = fused.reshape(Bq, Rr, Do)
    mx = jnp.max(fused3, axis=1)                                      # (B, Do)
    r_iota = jax.lax.broadcasted_iota(jnp.int32, (Bq, Rr, Do), 1)
    amax = jnp.min(jnp.where(fused3 == mx[:, None, :], r_iota, Rr), axis=1)
    mm_ref[...] = mx
    amax_ref[...] = amax

    # ---- classifier MLP over the full batch: Linear/ReLU/Linear/ReLU/Linear ----
    hc = jnp.maximum(jnp.dot(mx.astype(jnp.bfloat16), wc0[...],
                             preferred_element_type=jnp.float32) + bc0[...], 0.0)
    hc = jnp.maximum(jnp.dot(hc.astype(jnp.bfloat16), wc1[...],
                             preferred_element_type=jnp.float32) + bc1[...], 0.0)
    logits_ref[...] = jnp.dot(hc.astype(jnp.bfloat16), wc2[...],
                              preferred_element_type=jnp.float32) + bc2[...]


def rubi_fused_call(qlen, q_feat, v, p):
    Bq = v.shape[0]
    n_pad = p['w_c2p_bf'].shape[1]

    inputs = [qlen.reshape(Bq, 1).astype(jnp.int32), q_feat,
              p['w_a0_bf'], p['b_a0'], p['w_a1_bf'], p['b_a1'],
              v, p['w_f0_bf'], p['b_f0'], p['w_f1_bf'], p['b_f1'],
              p['w_m0_blk_bf'], p['b_m0_cat'], p['w_m1_blk_bf'], p['b_m1_cat'],
              p['rsum_blk_bf'],
              p['w_out_bf'], p['b_out'],
              p['w_c0_bf'], p['b_c0'], p['w_c1_bf'], p['b_c1'],
              p['w_c2p_bf'], p['b_c2p']]

    def full_spec(arr):
        return pl.BlockSpec(arr.shape, lambda i, _n=arr.ndim: (0,) * _n)

    out_shape = (jax.ShapeDtypeStruct((Bq, Q_EMB_DIM), jnp.float32),
                 jax.ShapeDtypeStruct((Bq, FUSE_OUT), jnp.float32),
                 jax.ShapeDtypeStruct((Bq, FUSE_OUT), jnp.int32),   # torch gives int64
                 jax.ShapeDtypeStruct((Bq, n_pad), jnp.float32))
    out_specs = (pl.BlockSpec((Bq, Q_EMB_DIM), lambda i: (0, 0)),
                 pl.BlockSpec((Bq, FUSE_OUT), lambda i: (0, 0)),
                 pl.BlockSpec((Bq, FUSE_OUT), lambda i: (0, 0)),
                 pl.BlockSpec((Bq, n_pad), lambda i: (0, 0)))

    # At production dims: set vmem_limit_bytes, stream classifier weights over a
    # K/N-tiled grid axis, and add a "parallel" B*R axis for the v7x second TC.
    q_emb, mm, amax, logits_pad = pl.pallas_call(
        _rubi_fused_kernel,
        out_shape=out_shape,
        grid_spec=pltpu.PrefetchScalarGridSpec(
            num_scalar_prefetch=0, grid=(1,),
            in_specs=[full_spec(a) for a in inputs],
            out_specs=out_specs),
        compiler_params=pltpu.CompilerParams(dimension_semantics=("arbitrary",)),
    )(*inputs)
    return q_emb, mm, amax, logits_pad[:, :N_ANS]


# ---------------- deterministic parameter construction ----------------
def _linear_init(key, fan_in, fan_out):
    kw, kb = jax.random.split(key)
    bound = 1.0 / float(np.sqrt(fan_in))
    w = jax.random.uniform(kw, (fan_in, fan_out), jnp.float32, -bound, bound)
    b = jax.random.uniform(kb, (1, fan_out), jnp.float32, -bound, bound)
    return w, b


def init_params(key):
    keys = jax.random.split(key, 12)
    p = {}
    p['embedding'] = 0.1 * jax.random.normal(keys[0], (VOCAB, E_WORD), jnp.float32)
    p['rnn_w'], p['rnn_b'] = _linear_init(keys[1], E_WORD, DH)
    p['w_a0'], p['b_a0'] = _linear_init(keys[2], DH, ATT_HID)          # q_att_linear0
    p['w_a1'], p['b_a1'] = _linear_init(keys[3], ATT_HID, N_GLIMPSES)  # q_att_linear1
    p['w_f0'], p['b_f0'] = _linear_init(keys[4], Q_EMB_DIM, MM_DIM)    # Block.linear0
    p['w_f1'], p['b_f1'] = _linear_init(keys[5], DV, MM_DIM)           # Block.linear1
    wm0, bm0, wm1, bm1 = [], [], [], []
    for c in range(CHUNKS):                                            # Block.merge_linears
        k0, k1 = jax.random.split(jax.random.fold_in(keys[6], c))
        w0c, b0c = _linear_init(k0, CHUNK, SRK)
        w1c, b1c = _linear_init(k1, CHUNK, SRK)
        wm0.append(w0c); bm0.append(b0c); wm1.append(w1c); bm1.append(b1c)
    p['w_m0'] = jnp.stack(wm0); p['b_m0'] = jnp.stack(bm0)
    p['w_m1'] = jnp.stack(wm1); p['b_m1'] = jnp.stack(bm1)
    p['w_out'], p['b_out'] = _linear_init(keys[7], MM_DIM, FUSE_OUT)   # Block.linear_out
    p['w_c0'], p['b_c0'] = _linear_init(keys[8], FUSE_OUT, CLS_HID)    # classif MLP
    p['w_c1'], p['b_c1'] = _linear_init(keys[9], CLS_HID, CLS_HID)
    p['w_c2'], p['b_c2'] = _linear_init(keys[10], CLS_HID, N_ANS)

    # ---- derived kernel-ready constants, built ONCE at init (not per call) ----
    bf = lambda w: w.astype(jnp.bfloat16)        # bf16 weights, f32 biases/accum
    p['w_a0_bf'] = bf(p['w_a0']); p['w_a1_bf'] = bf(p['w_a1'])
    p['w_f0_bf'] = bf(p['w_f0']); p['w_f1_bf'] = bf(p['w_f1'])
    p['w_out_bf'] = bf(p['w_out'])
    p['w_c0_bf'] = bf(p['w_c0']); p['w_c1_bf'] = bf(p['w_c1'])

    # answer head padded to a full 128-lane slab (lane-dense store)
    n_pad = ((N_ANS + LANE - 1) // LANE) * LANE
    w_c2p = jnp.zeros((CLS_HID, n_pad), jnp.float32).at[:, :N_ANS].set(p['w_c2'])
    b_c2p = jnp.zeros((1, n_pad), jnp.float32).at[:, :N_ANS].set(p['b_c2'])
    p['w_c2p_bf'] = bf(w_c2p); p['b_c2p'] = b_c2p

    # block-diagonal merge weights: one lane-aligned matmul covers all chunks
    # (trades zero-FLOPs for lane alignment / a single MXU push; at production
    #  dims one would pad chunk windows to 128 lanes instead to bound memory)
    def blk_diag(stack):                          # (C, a, b) -> (C*a, C*b)
        C, a, b = stack.shape
        out = jnp.zeros((C * a, C * b), stack.dtype)
        for c in range(C):
            out = out.at[c * a:(c + 1) * a, c * b:(c + 1) * b].set(stack[c])
        return out
    p['w_m0_blk_bf'] = bf(blk_diag(p['w_m0']))    # (MM_DIM, CHUNKS*SRK)
    p['w_m1_blk_bf'] = bf(blk_diag(p['w_m1']))
    p['b_m0_cat'] = p['b_m0'].reshape(1, CHUNKS * SRK)
    p['b_m1_cat'] = p['b_m1'].reshape(1, CHUNKS * SRK)

    # block-diagonal stacked-identity rank-sum matrix (0/1; exact in bf16)
    rsum_c = np.tile(np.eye(CHUNK, dtype=np.float32), (RANK, 1))      # (SRK, CHUNK)
    rsum = np.zeros((CHUNKS * SRK, MM_DIM), np.float32)
    for c in range(CHUNKS):
        rsum[c * SRK:(c + 1) * SRK, c * CHUNK:(c + 1) * CHUNK] = rsum_c
    p['rsum_blk_bf'] = jnp.asarray(rsum, jnp.bfloat16)
    return p


# ---------------- forward (mirrors RUBiBaseline.forward) ----------------
def rubi_forward(params, v, bboxes, q_tokens, labels, qlen):
    del bboxes, labels  # unused by the torch forward as well
    # TODO(synk): the skipthoughts BayesianUniSkip text encoder (pretrained embedding + GRU
    # loaded from disk) has no clean Pallas equivalent; replaced by a deterministic
    # embedding lookup + tanh projection producing the (B, T, DH) RNN features.
    emb = params['embedding'][q_tokens]                                 # (B, T, E_WORD)
    q_feat = jnp.tanh(emb @ params['rnn_w'] + params['rnn_b'])          # (B, T, DH)

    q_emb, mm, mm_argmax, logits = rubi_fused_call(qlen, q_feat, v, params)
    return {'q_emb': q_emb, 'mm': mm, 'mm_argmax': mm_argmax, 'logits': logits}


if __name__ == "__main__":
    key = jax.random.PRNGKey(0)
    kp, kv, kq = jax.random.split(key, 3)
    params = init_params(kp)

    v = jax.random.normal(kv, (B, R, DV), jnp.float32)       # visual features
    bboxes = jnp.zeros((B, R, 4), jnp.float32)               # unused
    q_tokens = jax.random.randint(kq, (B, T), 0, VOCAB)      # question token ids
    labels = jnp.zeros((B, N_ANS), jnp.float32)              # unused
    qlen = jnp.array([5, 8], dtype=jnp.int32)                # question lengths

    out = rubi_forward(params, v, bboxes, q_tokens, labels, qlen)
    out = jax.tree_util.tree_map(jax.block_until_ready, out)

    assert out['q_emb'].shape == (B, Q_EMB_DIM)
    assert out['mm'].shape == (B, FUSE_OUT)
    assert out['mm_argmax'].shape == (B, FUSE_OUT)
    assert out['logits'].shape == (B, N_ANS)
    assert bool(jnp.all(jnp.isfinite(out['logits'])))
    print("KERNEL_OK")
</pallas_src>

<mosaic_0001>
module attributes {stable_mosaic.version = 11 : i64} {
  func.func @_rubi_fused_kernel(%arg0: i32, %arg1: memref<2x1xi32, #tpu.memory_space<vmem>>, %arg2: memref<2x8x64xf32, #tpu.memory_space<vmem>>, %arg3: memref<64x128xbf16, #tpu.memory_space<vmem>>, %arg4: memref<1x128xf32, #tpu.memory_space<vmem>>, %arg5: memref<128x2xbf16, #tpu.memory_space<vmem>>, %arg6: memref<1x2xf32, #tpu.memory_space<vmem>>, %arg7: memref<2x8x256xf32, #tpu.memory_space<vmem>>, %arg8: memref<128x256xbf16, #tpu.memory_space<vmem>>, %arg9: memref<1x256xf32, #tpu.memory_space<vmem>>, %arg10: memref<256x256xbf16, #tpu.memory_space<vmem>>, %arg11: memref<1x256xf32, #tpu.memory_space<vmem>>, %arg12: memref<256x768xbf16, #tpu.memory_space<vmem>>, %arg13: memref<1x768xf32, #tpu.memory_space<vmem>>, %arg14: memref<256x768xbf16, #tpu.memory_space<vmem>>, %arg15: memref<1x768xf32, #tpu.memory_space<vmem>>, %arg16: memref<768x256xbf16, #tpu.memory_space<vmem>>, %arg17: memref<256x256xbf16, #tpu.memory_space<vmem>>, %arg18: memref<1x256xf32, #tpu.memory_space<vmem>>, %arg19: memref<256x256xbf16, #tpu.memory_space<vmem>>, %arg20: memref<1x256xf32, #tpu.memory_space<vmem>>, %arg21: memref<256x256xbf16, #tpu.memory_space<vmem>>, %arg22: memref<1x256xf32, #tpu.memory_space<vmem>>, %arg23: memref<256x128xbf16, #tpu.memory_space<vmem>>, %arg24: memref<1x128xf32, #tpu.memory_space<vmem>>, %arg25: memref<2x128xf32, #tpu.memory_space<vmem>>, %arg26: memref<2x256xf32, #tpu.memory_space<vmem>>, %arg27: memref<2x256xi32, #tpu.memory_space<vmem>>, %arg28: memref<2x128xf32, #tpu.memory_space<vmem>>) attributes {dimension_semantics = [#tpu.dimension_semantics<arbitrary>], iteration_bounds = array<i64: 1>, scalar_prefetch = 0 : i64, scratch_operands = 0 : i64, tpu.core_type = #tpu.core_type<tc>, window_params = [{pipeline_mode = #tpu.pipeline_mode<synchronous>, transform_indices = @transform_0, window_bounds = array<i64: 2, 1>}, {pipeline_mode = #tpu.pipeline_mode<synchronous>, transform_indices = @transform_1, window_bounds = array<i64: 2, 8, 64>}, {pipeline_mode = #tpu.pipeline_mode<synchronous>, transform_indices = @transform_2, window_bounds = array<i64: 64, 128>}, {pipeline_mode = #tpu.pipeline_mode<synchronous>, transform_indices = @transform_3, window_bounds = array<i64: 1, 128>}, {pipeline_mode = #tpu.pipeline_mode<synchronous>, transform_indices = @transform_4, window_bounds = array<i64: 128, 2>}, {pipeline_mode = #tpu.pipeline_mode<synchronous>, transform_indices = @transform_5, window_bounds = array<i64: 1, 2>}, {pipeline_mode = #tpu.pipeline_mode<synchronous>, transform_indices = @transform_6, window_bounds = array<i64: 2, 8, 256>}, {pipeline_mode = #tpu.pipeline_mode<synchronous>, transform_indices = @transform_7, window_bounds = array<i64: 128, 256>}, {pipeline_mode = #tpu.pipeline_mode<synchronous>, transform_indices = @transform_8, window_bounds = array<i64: 1, 256>}, {pipeline_mode = #tpu.pipeline_mode<synchronous>, transform_indices = @transform_9, window_bounds = array<i64: 256, 256>}, {pipeline_mode = #tpu.pipeline_mode<synchronous>, transform_indices = @transform_10, window_bounds = array<i64: 1, 256>}, {pipeline_mode = #tpu.pipeline_mode<synchronous>, transform_indices = @transform_11, window_bounds = array<i64: 256, 768>}, {pipeline_mode = #tpu.pipeline_mode<synchronous>, transform_indices = @transform_12, window_bounds = array<i64: 1, 768>}, {pipeline_mode = #tpu.pipeline_mode<synchronous>, transform_indices = @transform_13, window_bounds = array<i64: 256, 768>}, {pipeline_mode = #tpu.pipeline_mode<synchronous>, transform_indices = @transform_14, window_bounds = array<i64: 1, 768>}, {pipeline_mode = #tpu.pipeline_mode<synchronous>, transform_indices = @transform_15, window_bounds = array<i64: 768, 256>}, {pipeline_mode = #tpu.pipeline_mode<synchronous>, transform_indices = @transform_16, window_bounds = array<i64: 256, 256>}, {pipeline_mode = #tpu.pipeline_mode<synchronous>, transform_indices = @transform_17, window_bounds = array<i64: 1, 256>}, {pipeline_mode = #tpu.pipeline_mode<synchronous>, transform_indices = @transform_18, window_bounds = array<i64: 256, 256>}, {pipeline_mode = #tpu.pipeline_mode<synchronous>, transform_indices = @transform_19, window_bounds = array<i64: 1, 256>}, {pipeline_mode = #tpu.pipeline_mode<synchronous>, transform_indices = @transform_20, window_bounds = array<i64: 256, 256>}, {pipeline_mode = #tpu.pipeline_mode<synchronous>, transform_indices = @transform_21, window_bounds = array<i64: 1, 256>}, {pipeline_mode = #tpu.pipeline_mode<synchronous>, transform_indices = @transform_22, window_bounds = array<i64: 256, 128>}, {pipeline_mode = #tpu.pipeline_mode<synchronous>, transform_indices = @transform_23, window_bounds = array<i64: 1, 128>}, {pipeline_mode = #tpu.pipeline_mode<synchronous>, transform_indices = @transform_24, window_bounds = array<i64: 2, 128>}, {pipeline_mode = #tpu.pipeline_mode<synchronous>, transform_indices = @transform_25, window_bounds = array<i64: 2, 256>}, {pipeline_mode = #tpu.pipeline_mode<synchronous>, transform_indices = @transform_26, window_bounds = array<i64: 2, 256>}, {pipeline_mode = #tpu.pipeline_mode<synchronous>, transform_indices = @transform_27, window_bounds = array<i64: 2, 128>}]} {
    %c0 = arith.constant 0 : index
    %c0_0 = arith.constant 0 : index
    %c0_1 = arith.constant 0 : index
    %0 = vector.load %arg2[%c0, %c0_0, %c0_1] : memref<2x8x64xf32, #tpu.memory_space<vmem>>, vector<2x8x64xf32>
    %1 = vector.shape_cast %0 : vector<2x8x64xf32> to vector<16x64xf32>
    %2 = arith.truncf %1 : vector<16x64xf32> to vector<16x64xbf16>
    %c0_2 = arith.constant 0 : index
    %c0_3 = arith.constant 0 : index
    %3 = vector.load %arg3[%c0_2, %c0_3] : memref<64x128xbf16, #tpu.memory_space<vmem>>, vector<64x128xbf16>
    %cst = arith.constant dense<0.000000e+00> : vector<16x128xf32>
    %4 = tpu.matmul %2, %3, %cst {dimension_numbers = #tpu.dot_dimension_numbers<[1], [0], [0], [1], [0, 0, 1, 1], [], []>} : vector<16x64xbf16>, vector<64x128xbf16>, vector<16x128xf32> -> vector<16x128xf32>
    %c0_4 = arith.constant 0 : index
    %c0_5 = arith.constant 0 : index
    %5 = vector.load %arg4[%c0_4, %c0_5] : memref<1x128xf32, #tpu.memory_space<vmem>>, vector<1x128xf32>
    %6 = vector.broadcast %5 : vector<1x128xf32> to vector<16x128xf32>
    %7 = arith.addf %4, %6 : vector<16x128xf32>
    %cst_6 = arith.constant 0.000000e+00 : f32
    %8 = vector.broadcast %cst_6 : f32 to vector<16x128xf32>
    %9 = arith.maximumf %7, %8 : vector<16x128xf32>
    %10 = arith.truncf %9 : vector<16x128xf32> to vector<16x128xbf16>
    %c0_7 = arith.constant 0 : index
    %c0_8 = arith.constant 0 : index
    %11 = vector.load %arg5[%c0_7, %c0_8] : memref<128x2xbf16, #tpu.memory_space<vmem>>, vector<128x2xbf16>
    %cst_9 = arith.constant dense<0.000000e+00> : vector<16x2xf32>
    %12 = tpu.matmul %10, %11, %cst_9 {dimension_numbers = #tpu.dot_dimension_numbers<[1], [0], [0], [1], [0, 0, 1, 1], [], []>} : vector<16x128xbf16>, vector<128x2xbf16>, vector<16x2xf32> -> vector<16x2xf32>
    %c0_10 = arith.constant 0 : index
    %c0_11 = arith.constant 0 : index
    %13 = vector.load %arg6[%c0_10, %c0_11] : memref<1x2xf32, #tpu.memory_space<vmem>>, vector<1x2xf32>
    %14 = vector.broadcast %13 : vector<1x2xf32> to vector<16x2xf32>
    %15 = arith.addf %12, %14 : vector<16x2xf32>
    %16 = vector.shape_cast %15 : vector<16x2xf32> to vector<2x8x2xf32>
    %17 = tpu.iota {dimensions = array<i32: 1>} : vector<1x8x1xi32>
    %c0_12 = arith.constant 0 : index
    %c0_13 = arith.constant 0 : index
    %18 = vector.load %arg1[%c0_12, %c0_13] : memref<2x1xi32, #tpu.memory_space<vmem>>, vector<2x1xi32>
    %19 = vector.shape_cast %18 : vector<2x1xi32> to vector<2x1x1xi32>
    %20 = vector.broadcast %17 : vector<1x8x1xi32> to vector<2x8x1xi32>
    %21 = vector.broadcast %19 : vector<2x1x1xi32> to vector<2x8x1xi32>
    %22 = arith.cmpi slt, %20, %21 : vector<2x8x1xi32>
    %23 = arith.extui %22 : vector<2x8x1xi1> to vector<2x8x1xi32>
    %24 = arith.sitofp %23 : vector<2x8x1xi32> to vector<2x8x1xf32>
    %25 = vector.shape_cast %16 : vector<2x8x2xf32> to vector<1x2x8x2xf32>
    %cst_14 = arith.constant dense<0xFF800000> : vector<1xf32>
    %26 = vector.multi_reduction <maximumf>, %25, %cst_14 [1, 2, 3] : vector<1x2x8x2xf32> to vector<1xf32>
    %27 = vector.shape_cast %26 : vector<1xf32> to vector<1x1x1x1xf32>
    %28 = vector.extract %27[0, 0, 0, 0] : f32 from vector<1x1x1x1xf32>
    %29 = vector.broadcast %28 : f32 to vector<2x8x2xf32>
    %30 = arith.subf %16, %29 : vector<2x8x2xf32>
    %31 = math.exp %30 : vector<2x8x2xf32>
    %32 = vector.broadcast %24 : vector<2x8x1xf32> to vector<2x8x2xf32>
    %33 = arith.mulf %31, %32 : vector<2x8x2xf32>
    %cst_15 = arith.constant dense<0.000000e+00> : vector<2x2xf32>
    %34 = vector.multi_reduction <add>, %33, %cst_15 [1] : vector<2x8x2xf32> to vector<2x2xf32>
    %35 = vector.shape_cast %34 : vector<2x2xf32> to vector<2x1x2xf32>
    %cst_16 = arith.constant 9.99999974E-6 : f32
    %36 = vector.broadcast %cst_16 : f32 to vector<2x1x2xf32>
    %37 = arith.addf %35, %36 : vector<2x1x2xf32>
    %38 = vector.broadcast %37 : vector<2x1x2xf32> to vector<2x8x2xf32>
    %39 = arith.divf %33, %38 : vector<2x8x2xf32>
    %40 = vector.shape_cast %39 : vector<2x8x2xf32> to vector<2x8x2x1xf32>
    %41 = vector.shape_cast %0 : vector<2x8x64xf32> to vector<2x8x1x64xf32>
    %42 = vector.broadcast %40 : vector<2x8x2x1xf32> to vector<2x8x2x64xf32>
    %43 = vector.broadcast %41 : vector<2x8x1x64xf32> to vector<2x8x2x64xf32>
    %44 = arith.mulf %42, %43 : vector<2x8x2x64xf32>
    %cst_17 = arith.constant dense<0.000000e+00> : vector<2x2x64xf32>
    %45 = vector.multi_reduction <add>, %44, %cst_17 [1] : vector<2x8x2x64xf32> to vector<2x2x64xf32>
    %46 = vector.shape_cast %45 : vector<2x2x64xf32> to vector<2x128xf32>
    %c0_18 = arith.constant 0 : index
    %c0_19 = arith.constant 0 : index
    %47 = vector.load %arg25[%c0_18, %c0_19] : memref<2x128xf32, #tpu.memory_space<vmem>>, vector<2x128xf32>
    tpu.vector_store %arg25[%c0_18, %c0_19], %46 {strides = array<i32>} : memref<2x128xf32, #tpu.memory_space<vmem>>, vector<2x128xf32>,
    %c0_20 = arith.constant 0 : index
    %c0_21 = arith.constant 0 : index
    %c0_22 = arith.constant 0 : index
    %48 = vector.load %arg7[%c0_20, %c0_21, %c0_22] : memref<2x8x256xf32, #tpu.memory_space<vmem>>, vector<2x8x256xf32>
    %49 = vector.shape_cast %48 : vector<2x8x256xf32> to vector<16x256xf32>
    %50 = arith.truncf %46 : vector<2x128xf32> to vector<2x128xbf16>
    %c0_23 = arith.constant 0 : index
    %c0_24 = arith.constant 0 : index
    %51 = vector.load %arg8[%c0_23, %c0_24] : memref<128x256xbf16, #tpu.memory_space<vmem>>, vector<128x256xbf16>
    %cst_25 = arith.constant dense<0.000000e+00> : vector<2x256xf32>
    %52 = tpu.matmul %50, %51, %cst_25 {dimension_numbers = #tpu.dot_dimension_numbers<[1], [0], [0], [1], [0, 0, 1, 1], [], []>} : vector<2x128xbf16>, vector<128x256xbf16>, vector<2x256xf32> -> vector<2x256xf32>
    %c0_26 = arith.constant 0 : index
    %c0_27 = arith.constant 0 : index
    %53 = vector.load %arg9[%c0_26, %c0_27] : memref<1x256xf32, #tpu.memory_space<vmem>>, vector<1x256xf32>
    %54 = vector.broadcast %53 : vector<1x256xf32> to vector<2x256xf32>
    %55 = arith.addf %52, %54 : vector<2x256xf32>
    %56 = arith.truncf %49 : vector<16x256xf32> to vector<16x256xbf16>
    %c0_28 = arith.constant 0 : index
    %c0_29 = arith.constant 0 : index
    %57 = vector.load %arg10[%c0_28, %c0_29] : memref<256x256xbf16, #tpu.memory_space<vmem>>, vector<256x256xbf16>
    %cst_30 = arith.constant dense<0.000000e+00> : vector<16x256xf32>
    %58 = tpu.matmul %56, %57, %cst_30 {dimension_numbers = #tpu.dot_dimension_numbers<[1], [0], [0], [1], [0, 0, 1, 1], [], []>} : vector<16x256xbf16>, vector<256x256xbf16>, vector<16x256xf32> -> vector<16x256xf32>
    %c0_31 = arith.constant 0 : index
    %c0_32 = arith.constant 0 : index
    %59 = vector.load %arg11[%c0_31, %c0_32] : memref<1x256xf32, #tpu.memory_space<vmem>>, vector<1x256xf32>
    %60 = vector.broadcast %59 : vector<1x256xf32> to vector<16x256xf32>
    %61 = arith.addf %58, %60 : vector<16x256xf32>
    %62 = arith.truncf %55 : vector<2x256xf32> to vector<2x256xbf16>
    %c0_33 = arith.constant 0 : index
    %c0_34 = arith.constant 0 : index
    %63 = vector.load %arg12[%c0_33, %c0_34] : memref<256x768xbf16, #tpu.memory_space<vmem>>, vector<256x768xbf16>
    %cst_35 = arith.constant dense<0.000000e+00> : vector<2x768xf32>
    %64 = tpu.matmul %62, %63, %cst_35 {dimension_numbers = #tpu.dot_dimension_numbers<[1], [0], [0], [1], [0, 0, 1, 1], [], []>} : vector<2x256xbf16>, vector<256x768xbf16>, vector<2x768xf32> -> vector<2x768xf32>
    %c0_36 = arith.constant 0 : index
    %c0_37 = arith.constant 0 : index
    %65 = vector.load %arg13[%c0_36, %c0_37] : memref<1x768xf32, #tpu.memory_space<vmem>>, vector<1x768xf32>
    %66 = vector.broadcast %65 : vector<1x768xf32> to vector<2x768xf32>
    %67 = arith.addf %64, %66 : vector<2x768xf32>
    %68 = arith.truncf %61 : vector<16x256xf32> to vector<16x256xbf16>
    %c0_38 = arith.constant 0 : index
    %c0_39 = arith.constant 0 : index
    %69 = vector.load %arg14[%c0_38, %c0_39] : memref<256x768xbf16, #tpu.memory_space<vmem>>, vector<256x768xbf16>
    %cst_40 = arith.constant dense<0.000000e+00> : vector<16x768xf32>
    %70 = tpu.matmul %68, %69, %cst_40 {dimension_numbers = #tpu.dot_dimension_numbers<[1], [0], [0], [1], [0, 0, 1, 1], [], []>} : vector<16x256xbf16>, vector<256x768xbf16>, vector<16x768xf32> -> vector<16x768xf32>
    %c0_41 = arith.constant 0 : index
    %c0_42 = arith.constant 0 : index
    %71 = vector.load %arg15[%c0_41, %c0_42] : memref<1x768xf32, #tpu.memory_space<vmem>>, vector<1x768xf32>
    %72 = vector.broadcast %71 : vector<1x768xf32> to vector<16x768xf32>
    %73 = arith.addf %70, %72 : vector<16x768xf32>
    %74 = vector.shape_cast %73 : vector<16x768xf32> to vector<2x8x768xf32>
    %75 = vector.shape_cast %67 : vector<2x768xf32> to vector<2x1x768xf32>
    %76 = vector.broadcast %75 : vector<2x1x768xf32> to vector<2x8x768xf32>
    %77 = arith.mulf %74, %76 : vector<2x8x768xf32>
    %78 = vector.shape_cast %77 : vector<2x8x768xf32> to vector<16x768xf32>
    %79 = arith.truncf %78 : vector<16x768xf32> to vector<16x768xbf16>
    %c0_43 = arith.constant 0 : index
    %c0_44 = arith.constant 0 : index
    %80 = vector.load %arg16[%c0_43, %c0_44] : memref<768x256xbf16, #tpu.memory_space<vmem>>, vector<768x256xbf16>
    %cst_45 = arith.constant dense<0.000000e+00> : vector<16x256xf32>
    %81 = tpu.matmul %79, %80, %cst_45 {dimension_numbers = #tpu.dot_dimension_numbers<[1], [0], [0], [1], [0, 0, 1, 1], [], []>} : vector<16x768xbf16>, vector<768x256xbf16>, vector<16x256xf32> -> vector<16x256xf32>
    %cst_46 = arith.constant 0.000000e+00 : f32
    %82 = vector.broadcast %cst_46 : f32 to vector<16x256xf32>
    %83 = arith.maximumf %81, %82 : vector<16x256xf32>
    %84 = math.sqrt %83 : vector<16x256xf32>
    %cst_47 = arith.constant 0.000000e+00 : f32
    %85 = vector.broadcast %cst_47 : f32 to vector<16x256xf32>
    %86 = arith.subf %85, %81 : vector<16x256xf32>
    %cst_48 = arith.constant 0.000000e+00 : f32
    %87 = vector.broadcast %cst_48 : f32 to vector<16x256xf32>
    %88 = arith.maximumf %86, %87 : vector<16x256xf32>
    %89 = math.sqrt %88 : vector<16x256xf32>
    %90 = arith.subf %84, %89 : vector<16x256xf32>
    %91 = vector.shape_cast %90 : vector<16x256xf32> to vector<16x4x64xf32>
    %92 = arith.mulf %91, %91 : vector<16x4x64xf32>
    %cst_49 = arith.constant dense<0.000000e+00> : vector<16x4xf32>
    %93 = vector.multi_reduction <add>, %92, %cst_49 [2] : vector<16x4x64xf32> to vector<16x4xf32>
    %94 = vector.shape_cast %93 : vector<16x4xf32> to vector<16x4x1xf32>
    %95 = math.sqrt %94 : vector<16x4x1xf32>
    %cst_50 = arith.constant 9.99999996E-13 : f32
    %96 = vector.broadcast %cst_50 : f32 to vector<16x4x1xf32>
    %97 = arith.maximumf %95, %96 : vector<16x4x1xf32>
    %98 = vector.broadcast %97 : vector<16x4x1xf32> to vector<16x4x64xf32>
    %99 = arith.divf %91, %98 : vector<16x4x64xf32>
    %100 = vector.shape_cast %99 : vector<16x4x64xf32> to vector<16x256xf32>
    %101 = arith.truncf %100 : vector<16x256xf32> to vector<16x256xbf16>
    %c0_51 = arith.constant 0 : index
    %c0_52 = arith.constant 0 : index
    %102 = vector.load %arg17[%c0_51, %c0_52] : memref<256x256xbf16, #tpu.memory_space<vmem>>, vector<256x256xbf16>
    %cst_53 = arith.constant dense<0.000000e+00> : vector<16x256xf32>
    %103 = tpu.matmul %101, %102, %cst_53 {dimension_numbers = #tpu.dot_dimension_numbers<[1], [0], [0], [1], [0, 0, 1, 1], [], []>} : vector<16x256xbf16>, vector<256x256xbf16>, vector<16x256xf32> -> vector<16x256xf32>
    %c0_54 = arith.constant 0 : index
    %c0_55 = arith.constant 0 : index
    %104 = vector.load %arg18[%c0_54, %c0_55] : memref<1x256xf32, #tpu.memory_space<vmem>>, vector<1x256xf32>
    %105 = vector.broadcast %104 : vector<1x256xf32> to vector<16x256xf32>
    %106 = arith.addf %103, %105 : vector<16x256xf32>
    %107 = vector.shape_cast %106 : vector<16x256xf32> to vector<2x8x256xf32>
    %cst_56 = arith.constant dense<0xFF800000> : vector<2x256xf32>
    %108 = vector.multi_reduction <maximumf>, %107, %cst_56 [1] : vector<2x8x256xf32> to vector<2x256xf32>
    %109 = tpu.iota {dimensions = array<i32: 1>} : vector<2x8x256xi32>
    %110 = vector.shape_cast %108 : vector<2x256xf32> to vector<2x1x256xf32>
    %111 = vector.broadcast %110 : vector<2x1x256xf32> to vector<2x8x256xf32>
    %112 = arith.cmpf oeq, %107, %111 : vector<2x8x256xf32>
    %c8_i32 = arith.constant 8 : i32
    %113 = vector.broadcast %c8_i32 : i32 to vector<2x8x256xi32>
    %114 = arith.select %112, %109, %113 : vector<2x8x256xi1>, vector<2x8x256xi32>
    %cst_57 = arith.constant dense<2147483647> : vector<2x256xi32>
    %115 = vector.multi_reduction <minsi>, %114, %cst_57 [1] : vector<2x8x256xi32> to vector<2x256xi32>
    %c0_58 = arith.constant 0 : index
    %c0_59 = arith.constant 0 : index
    %116 = vector.load %arg26[%c0_58, %c0_59] : memref<2x256xf32, #tpu.memory_space<vmem>>, vector<2x256xf32>
    tpu.vector_store %arg26[%c0_58, %c0_59], %108 {strides = array<i32>} : memref<2x256xf32, #tpu.memory_space<vmem>>, vector<2x256xf32>,
    %c0_60 = arith.constant 0 : index
    %c0_61 = arith.constant 0 : index
    %117 = vector.load %arg27[%c0_60, %c0_61] : memref<2x256xi32, #tpu.memory_space<vmem>>, vector<2x256xi32>
    tpu.vector_store %arg27[%c0_60, %c0_61], %115 {strides = array<i32>} : memref<2x256xi32, #tpu.memory_space<vmem>>, vector<2x256xi32>,
    %118 = arith.truncf %108 : vector<2x256xf32> to vector<2x256xbf16>
    %c0_62 = arith.constant 0 : index
    %c0_63 = arith.constant 0 : index
    %119 = vector.load %arg19[%c0_62, %c0_63] : memref<256x256xbf16, #tpu.memory_space<vmem>>, vector<256x256xbf16>
    %cst_64 = arith.constant dense<0.000000e+00> : vector<2x256xf32>
    %120 = tpu.matmul %118, %119, %cst_64 {dimension_numbers = #tpu.dot_dimension_numbers<[1], [0], [0], [1], [0, 0, 1, 1], [], []>} : vector<2x256xbf16>, vector<256x256xbf16>, vector<2x256xf32> -> vector<2x256xf32>
    %c0_65 = arith.constant 0 : index
    %c0_66 = arith.constant 0 : index
    %121 = vector.load %arg20[%c0_65, %c0_66] : memref<1x256xf32, #tpu.memory_space<vmem>>, vector<1x256xf32>
    %122 = vector.broadcast %121 : vector<1x256xf32> to vector<2x256xf32>
    %123 = arith.addf %120, %122 : vector<2x256xf32>
    %cst_67 = arith.constant 0.000000e+00 : f32
    %124 = vector.broadcast %cst_67 : f32 to vector<2x256xf32>
    %125 = arith.maximumf %123, %124 : vector<2x256xf32>
    %126 = arith.truncf %125 : vector<2x256xf32> to vector<2x256xbf16>
    %c0_68 = arith.constant 0 : index
    %c0_69 = arith.constant 0 : index
    %127 = vector.load %arg21[%c0_68, %c0_69] : memref<256x256xbf16, #tpu.memory_space<vmem>>, vector<256x256xbf16>
    %cst_70 = arith.constant dense<0.000000e+00> : vector<2x256xf32>
    %128 = tpu.matmul %126, %127, %cst_70 {dimension_numbers = #tpu.dot_dimension_numbers<[1], [0], [0], [1], [0, 0, 1, 1], [], []>} : vector<2x256xbf16>, vector<256x256xbf16>, vector<2x256xf32> -> vector<2x256xf32>
    %c0_71 = arith.constant 0 : index
    %c0_72 = arith.constant 0 : index
    %129 = vector.load %arg22[%c0_71, %c0_72] : memref<1x256xf32, #tpu.memory_space<vmem>>, vector<1x256xf32>
    %130 = vector.broadcast %129 : vector<1x256xf32> to vector<2x256xf32>
    %131 = arith.addf %128, %130 : vector<2x256xf32>
    %cst_73 = arith.constant 0.000000e+00 : f32
    %132 = vector.broadcast %cst_73 : f32 to vector<2x256xf32>
    %133 = arith.maximumf %131, %132 : vector<2x256xf32>
    %134 = arith.truncf %133 : vector<2x256xf32> to vector<2x256xbf16>
    %c0_74 = arith.constant 0 : index
    %c0_75 = arith.constant 0 : index
    %135 = vector.load %arg23[%c0_74, %c0_75] : memref<256x128xbf16, #tpu.memory_space<vmem>>, vector<256x128xbf16>
    %cst_76 = arith.constant dense<0.000000e+00> : vector<2x128xf32>
    %136 = tpu.matmul %134, %135, %cst_76 {dimension_numbers = #tpu.dot_dimension_numbers<[1], [0], [0], [1], [0, 0, 1, 1], [], []>} : vector<2x256xbf16>, vector<256x128xbf16>, vector<2x128xf32> -> vector<2x128xf32>
    %c0_77 = arith.constant 0 : index
    %c0_78 = arith.constant 0 : index
    %137 = vector.load %arg24[%c0_77, %c0_78] : memref<1x128xf32, #tpu.memory_space<vmem>>, vector<1x128xf32>
    %138 = vector.broadcast %137 : vector<1x128xf32> to vector<2x128xf32>
    %139 = arith.addf %136, %138 : vector<2x128xf32>
    %c0_79 = arith.constant 0 : index
    %c0_80 = arith.constant 0 : index
    %140 = vector.load %arg28[%c0_79, %c0_80] : memref<2x128xf32, #tpu.memory_space<vmem>>, vector<2x128xf32>
    tpu.vector_store %arg28[%c0_79, %c0_80], %139 {strides = array<i32>} : memref<2x128xf32, #tpu.memory_space<vmem>>, vector<2x128xf32>,
    return
  }
  func.func @transform_0(%arg0: i32) -> (i32, i32) {
    %c0_i32 = arith.constant 0 : i32
    %c0_i32_0 = arith.constant 0 : i32
    %c0_i32_1 = arith.constant 0 : i32
    return %c0_i32, %c0_i32_0 : i32, i32
  }
  func.func @transform_1(%arg0: i32) -> (i32, i32, i32) {
    %c0_i32 = arith.constant 0 : i32
    %c0_i32_0 = arith.constant 0 : i32
    %c0_i32_1 = arith.constant 0 : i32
    %c0_i32_2 = arith.constant 0 : i32
    return %c0_i32, %c0_i32_0, %c0_i32_1 : i32, i32, i32
  }
  func.func @transform_2(%arg0: i32) -> (i32, i32) {
    %c0_i32 = arith.constant 0 : i32
    %c0_i32_0 = arith.constant 0 : i32
    %c0_i32_1 = arith.constant 0 : i32
    return %c0_i32, %c0_i32_0 : i32, i32
  }
  func.func @transform_3(%arg0: i32) -> (i32, i32) {
    %c0_i32 = arith.constant 0 : i32
    %c0_i32_0 = arith.constant 0 : i32
    %c0_i32_1 = arith.constant 0 : i32
    return %c0_i32, %c0_i32_0 : i32, i32
  }
  func.func @transform_4(%arg0: i32) -> (i32, i32) {
    %c0_i32 = arith.constant 0 : i32
    %c0_i32_0 = arith.constant 0 : i32
    %c0_i32_1 = arith.constant 0 : i32
    return %c0_i32, %c0_i32_0 : i32, i32
  }
  func.func @transform_5(%arg0: i32) -> (i32, i32) {
    %c0_i32 = arith.constant 0 : i32
    %c0_i32_0 = arith.constant 0 : i32
    %c0_i32_1 = arith.constant 0 : i32
    return %c0_i32, %c0_i32_0 : i32, i32
  }
  func.func @transform_6(%arg0: i32) -> (i32, i32, i32) {
    %c0_i32 = arith.constant 0 : i32
    %c0_i32_0 = arith.constant 0 : i32
    %c0_i32_1 = arith.constant 0 : i32
    %c0_i32_2 = arith.constant 0 : i32
    return %c0_i32, %c0_i32_0, %c0_i32_1 : i32, i32, i32
  }
  func.func @transform_7(%arg0: i32) -> (i32, i32) {
    %c0_i32 = arith.constant 0 : i32
    %c0_i32_0 = arith.constant 0 : i32
    %c0_i32_1 = arith.constant 0 : i32
    return %c0_i32, %c0_i32_0 : i32, i32
  }
  func.func @transform_8(%arg0: i32) -> (i32, i32) {
    %c0_i32 = arith.constant 0 : i32
    %c0_i32_0 = arith.constant 0 : i32
    %c0_i32_1 = arith.constant 0 : i32
    return %c0_i32, %c0_i32_0 : i32, i32
  }
  func.func @transform_9(%arg0: i32) -> (i32, i32) {
    %c0_i32 = arith.constant 0 : i32
    %c0_i32_0 = arith.constant 0 : i32
    %c0_i32_1 = arith.constant 0 : i32
    return %c0_i32, %c0_i32_0 : i32, i32
  }
  func.func @transform_10(%arg0: i32) -> (i32, i32) {
    %c0_i32 = arith.constant 0 : i32
    %c0_i32_0 = arith.constant 0 : i32
    %c0_i32_1 = arith.constant 0 : i32
    return %c0_i32, %c0_i32_0 : i32, i32
  }
  func.func @transform_11(%arg0: i32) -> (i32, i32) {
    %c0_i32 = arith.constant 0 : i32
    %c0_i32_0 = arith.constant 0 : i32
    %c0_i32_1 = arith.constant 0 : i32
    return %c0_i32, %c0_i32_0 : i32, i32
  }
  func.func @transform_12(%arg0: i32) -> (i32, i32) {
    %c0_i32 = arith.constant 0 : i32
    %c0_i32_0 = arith.constant 0 : i32
    %c0_i32_1 = arith.constant 0 : i32
    return %c0_i32, %c0_i32_0 : i32, i32
  }
  func.func @transform_13(%arg0: i32) -> (i32, i32) {
    %c0_i32 = arith.constant 0 : i32
    %c0_i32_0 = arith.constant 0 : i32
    %c0_i32_1 = arith.constant 0 : i32
    return %c0_i32, %c0_i32_0 : i32, i32
  }
  func.func @transform_14(%arg0: i32) -> (i32, i32) {
    %c0_i32 = arith.constant 0 : i32
    %c0_i32_0 = arith.constant 0 : i32
    %c0_i32_1 = arith.constant 0 : i32
    return %c0_i32, %c0_i32_0 : i32, i32
  }
  func.func @transform_15(%arg0: i32) -> (i32, i32) {
    %c0_i32 = arith.constant 0 : i32
    %c0_i32_0 = arith.constant 0 : i32
    %c0_i32_1 = arith.constant 0 : i32
    return %c0_i32, %c0_i32_0 : i32, i32
  }
  func.func @transform_16(%arg0: i32) -> (i32, i32) {
    %c0_i32 = arith.constant 0 : i32
    %c0_i32_0 = arith.constant 0 : i32
    %c0_i32_1 = arith.constant 0 : i32
    return %c0_i32, %c0_i32_0 : i32, i32
  }
  func.func @transform_17(%arg0: i32) -> (i32, i32) {
    %c0_i32 = arith.constant 0 : i32
    %c0_i32_0 = arith.constant 0 : i32
    %c0_i32_1 = arith.constant 0 : i32
    return %c0_i32, %c0_i32_0 : i32, i32
  }
  func.func @transform_18(%arg0: i32) -> (i32, i32) {
    %c0_i32 = arith.constant 0 : i32
    %c0_i32_0 = arith.constant 0 : i32
    %c0_i32_1 = arith.constant 0 : i32
    return %c0_i32, %c0_i32_0 : i32, i32
  }
  func.func @transform_19(%arg0: i32) -> (i32, i32) {
    %c0_i32 = arith.constant 0 : i32
    %c0_i32_0 = arith.constant 0 : i32
    %c0_i32_1 = arith.constant 0 : i32
    return %c0_i32, %c0_i32_0 : i32, i32
  }
  func.func @transform_20(%arg0: i32) -> (i32, i32) {
    %c0_i32 = arith.constant 0 : i32
    %c0_i32_0 = arith.constant 0 : i32
    %c0_i32_1 = arith.constant 0 : i32
    return %c0_i32, %c0_i32_0 : i32, i32
  }
  func.func @transform_21(%arg0: i32) -> (i32, i32) {
    %c0_i32 = arith.constant 0 : i32
    %c0_i32_0 = arith.constant 0 : i32
    %c0_i32_1 = arith.constant 0 : i32
    return %c0_i32, %c0_i32_0 : i32, i32
  }
  func.func @transform_22(%arg0: i32) -> (i32, i32) {
    %c0_i32 = arith.constant 0 : i32
    %c0_i32_0 = arith.constant 0 : i32
    %c0_i32_1 = arith.constant 0 : i32
    return %c0_i32, %c0_i32_0 : i32, i32
  }
  func.func @transform_23(%arg0: i32) -> (i32, i32) {
    %c0_i32 = arith.constant 0 : i32
    %c0_i32_0 = arith.constant 0 : i32
    %c0_i32_1 = arith.constant 0 : i32
    return %c0_i32, %c0_i32_0 : i32, i32
  }
  func.func @transform_24(%arg0: i32) -> (i32, i32) {
    %c0_i32 = arith.constant 0 : i32
    %c0_i32_0 = arith.constant 0 : i32
    %c0_i32_1 = arith.constant 0 : i32
    return %c0_i32, %c0_i32_0 : i32, i32
  }
  func.func @transform_25(%arg0: i32) -> (i32, i32) {
    %c0_i32 = arith.constant 0 : i32
    %c0_i32_0 = arith.constant 0 : i32
    %c0_i32_1 = arith.constant 0 : i32
    return %c0_i32, %c0_i32_0 : i32, i32
  }
  func.func @transform_26(%arg0: i32) -> (i32, i32) {
    %c0_i32 = arith.constant 0 : i32
    %c0_i32_0 = arith.constant 0 : i32
    %c0_i32_1 = arith.constant 0 : i32
    return %c0_i32, %c0_i32_0 : i32, i32
  }
  func.func @transform_27(%arg0: i32) -> (i32, i32) {
    %c0_i32 = arith.constant 0 : i32
    %c0_i32_0 = arith.constant 0 : i32
    %c0_i32_1 = arith.constant 0 : i32
    return %c0_i32, %c0_i32_0 : i32, i32
  }
}

</mosaic_0001>

<bundles_post_ra>
// kernel: tpu_custom_call.1
= control target key start
LH: loop header
LB: loop body
LE: loop exit
PB: predicated region body
PF: predicated region fallthrough
CT: control target
= control target key end

     0   :  { %s9840_s0 = inlined_call_operand.vmem [shape: s32[2,1], index: 0, kind: input, shape index: {}]   ;;  %s9841_s1 = inlined_call_operand.hbm [shape: f32[2,8,64], index: 1, kind: input, shape index: {}]   ;;  %s9842_s2 = inlined_call_operand.vmem [shape: bf16[64,128], index: 2, kind: input, shape index: {}]   ;;  %s9843_s3 = inlined_call_operand.vmem [shape: f32[1,128], index: 3, kind: input, shape index: {}]   ;;  %s9844_s4 = inlined_call_operand.vmem [shape: bf16[128,2], index: 4, kind: input, shape index: {}]   ;;  %s9845_s5 = inlined_call_operand.hbm [shape: f32[1,2], index: 5, kind: input, shape index: {}]   ;;  %s9846_s6 = inlined_call_operand.vmem [shape: f32[2,8,256], index: 6, kind: input, shape index: {}]   ;;  %s9847_s7 = inlined_call_operand.hbm [shape: bf16[128,256], index: 7, kind: input, shape index: {}]   ;;  %s9848_s8 = inlined_call_operand.hbm [shape: f32[1,256], index: 8, kind: input, shape index: {}]   ;;  %s9849_s9 = inlined_call_operand.hbm [shape: bf16[256,256], index: 9, kind: input, shape index: {}]   ;;  %s9850_s10 = inlined_call_operand.hbm [shape: f32[1,256], index: 10, kind: input, shape index: {}]   ;;  %s9851_s11 = inlined_call_operand.hbm [shape: bf16[256,768], index: 11, kind: input, shape index: {}]   ;;  %s9852_s12 = inlined_call_operand.vmem [shape: f32[1,768], index: 12, kind: input, shape index: {}]   ;;  %s9853_s13 = inlined_call_operand.hbm [shape: bf16[256,768], index: 13, kind: input, shape index: {}]   ;;  %s9854_s14 = inlined_call_operand.vmem [shape: f32[1,768], index: 14, kind: input, shape index: {}]   ;;  %s9855_s15 = inlined_call_operand.hbm [shape: bf16[768,256], index: 15, kind: input, shape index: {}]   ;;  %s9856_s16 = inlined_call_operand.hbm [shape: bf16[256,256], index: 16, kind: input, shape index: {}]   ;;  %s9857_s17 = inlined_call_operand.vmem [shape: f32[1,256], index: 17, kind: input, shape index: {}]   ;;  %s9858_s18 = inlined_call_operand.hbm [shape: bf16[256,256], index: 18, kind: input, shape index: {}]   ;;  %s9859_s19 = inlined_call_operand.vmem [shape: f32[1,256], index: 19, kind: input, shape index: {}]   ;;  %s9860_s20 = inlined_call_operand.hbm [shape: bf16[256,256], index: 20, kind: input, shape index: {}]   ;;  %s9861_s21 = inlined_call_operand.vmem [shape: f32[1,256], index: 21, kind: input, shape index: {}]   ;;  %s9862_s22 = inlined_call_operand.hbm [shape: bf16[256,128], index: 22, kind: input, shape index: {}]   ;;  %s9863_s23 = inlined_call_operand.vmem [shape: f32[1,128], index: 23, kind: input, shape index: {}]   ;;  %s9864_s24 = inlined_call_operand.hbm [shape: f32[2,128], index: 24, kind: output, shape index: {0}]   ;;  %s9865_s25 = inlined_call_operand.hbm [shape: f32[2,256], index: 25, kind: output, shape index: {1}]   ;;  %s9866_s26 = inlined_call_operand.hbm [shape: s32[2,256], index: 26, kind: output, shape index: {2}]   ;;  %s9867_s27 = inlined_call_operand.hbm [shape: f32[2,128], index: 27, kind: output, shape index: {3}]  }
   0x1   :  { %9886 = sst [smem:[#allocation50_spill]] %s9840_s0 }
   0x2   :  { %9887 = sst [smem:[#allocation51_spill]] %s9841_s1 }
   0x3   :  { %9888 = sst [smem:[#allocation52_spill]] %s9842_s2 }
   0x4   :  { %9889 = sst [smem:[#allocation53_spill]] %s9843_s3 }
   0x5   :  { %9890 = sst [smem:[#allocation54_spill]] %s9844_s4 }
   0x6   :  { %9891 = sst [smem:[#allocation55_spill]] %s9845_s5 }
   0x7   :  { %9892 = sst [smem:[#allocation56_spill]] %s9846_s6 }
   0x8   :  { %9893 = sst [smem:[#allocation57_spill]] %s9847_s7 }
   0x9   :  { %9894 = sst [smem:[#allocation58_spill]] %s9848_s8 }
   0xa   :  { %9895 = sst [smem:[#allocation59_spill]] %s9849_s9 }
   0xb   :  { %9896 = sst [smem:[#allocation60_spill]] %s9850_s10 }
   0xc   :  { %9897 = sst [smem:[#allocation61_spill]] %s9851_s11 }
   0xd   :  { %9898 = sst [smem:[#allocation62_spill]] %s9863_s23 }
   0xe   :  { %9899 = sst [smem:[#allocation63_spill]] %s9867_s27 }
   0xf   :  { %33 = vsyncpa [#allocation3], 0 }
  0x10   :  { %34 = vsyncpa [#allocation6], 0 }
  0x11   :  { %35 = vsyncpa [#allocation9], 0 }
  0x12   :  { %36 = vsyncpa [#allocation12], 0 }
  0x13   :  { %37 = vsyncpa [#allocation15], 0 }
  0x14   :  { %38 = vsyncpa [#allocation18], 0 }
  0x15   :  { %39 = vsyncpa [#allocation21], 0 }
  0x16   :  { %40 = vsyncpa [#allocation4], 0 }
  0x17   :  { %41 = vsyncpa [#allocation25], 0  ;;  %s9900_s8 = sld [smem:[#allocation55_spill]] }
  0x1d   :  { %s69_s30 = sshll.u32 %s9900_s8, 4  ;;  %s70_s30 = int_to_ptr.hbm [resolvable:$true] %s69_s30 }
  0x1e   :  { %42 = vsyncpa [#allocation28], 0  ;;  %s8316_s9 = smov [#allocation5]   ;;  %s9901_s10 = sld [smem:[#allocation58_spill]] }
  0x1f   :  { %s71_s5 = sshll.u32 %s8316_s9, 4  ;;  %s8317_s1 = smov [#allocation8]   ;;  %s72_s5 = int_to_ptr.vmem [resolvable:$true] %s71_s5 }
  0x20   :  { %74 = dma.hbm_to_vmem [thread:$0]  %s70_s30, 16, %s72_s5, [#allocation6]  }
  0x21   :  { %s97_s6 = sshll.u32 %s8317_s1, 4  ;;  %s9902_s3 = sld [smem:[#allocation60_spill]]  ;;  %s98_s6 = int_to_ptr.vmem [resolvable:$true] %s97_s6 }
  0x22   :  { %s8318_s7 = smov [#allocation11]   ;;  %s144_s23 = sshll.u32 %s9853_s13, 4  ;;  %s145_s23 = int_to_ptr.hbm [resolvable:$true] %s144_s23 }
  0x23   :  { %s121_s4 = sshll.u32 %s8318_s7, 4  ;;  %s8319_s30 = smov [#allocation14]   ;;  %s122_s4 = int_to_ptr.vmem [resolvable:$true] %s121_s4 }
  0x24   :  { %s95_s29 = sshll.u32 %s9901_s10, 4  ;;  %s146_s5 = sshll.u32 %s8319_s30, 4  ;;  %s96_s29 = int_to_ptr.hbm [resolvable:$true] %s95_s29  ;;  %s147_s5 = int_to_ptr.vmem [resolvable:$true] %s146_s5 }
  0x25   :  { %100 = dma.hbm_to_vmem [thread:$0]  %s96_s29, 32, %s98_s6, [#allocation9]  }
  0x26   :  { %s8320_s28 = smov 384   ;;  %s8321_s0 = smov 24  }
  0x27   :  { %s119_s27 = sshll.u32 %s9902_s3, 4  ;;  %s172_s1 = sshll.u32 %s9856_s16, 4  ;;  %s120_s27 = int_to_ptr.hbm [resolvable:$true] %s119_s27  ;;  %s173_s1 = int_to_ptr.hbm [resolvable:$true] %s172_s1 }
  0x28   :  { %124 = dma.hbm_to_vmem [thread:$0]  %s120_s27, 32, %s122_s4, [#allocation12]  }
  0x29   :  { %152 = dma.hbm_to_vmem [thread:$0]  %s145_s23, 12288, %s147_s5, [#allocation15], %s8320_s28, %s8320_s28, %s8321_s0  }
  0x2a   :  { %s8322_s6 = smov [#allocation17]   ;;  %s202_s2 = sshll.u32 %s9860_s20, 4  ;;  %s203_s2 = int_to_ptr.hbm [resolvable:$true] %s202_s2 }
  0x2b   :  { %s174_s11 = sshll.u32 %s8322_s6, 4  ;;  %s8323_s3 = smov 128   ;;  %s175_s11 = int_to_ptr.vmem [resolvable:$true] %s174_s11 }
  0x2c   :  { %s8324_s7 = smov 8   ;;  %s8325_s23 = smov [#allocation20]  }
  0x2d   :  { %180 = dma.hbm_to_vmem [thread:$0]  %s173_s1, 4096, %s175_s11, [#allocation18], %s8323_s3, %s8323_s3, %s8324_s7  }
  0x2e   :  { %s204_s4 = sshll.u32 %s8325_s23, 4  ;;  %s9903_s16 = sld [smem:[#allocation51_spill]]  ;;  %s205_s4 = int_to_ptr.vmem [resolvable:$true] %s204_s4 }
  0x2f   :  { %210 = dma.hbm_to_vmem [thread:$0]  %s203_s2, 4096, %s205_s4, [#allocation21], %s8323_s3, %s8323_s3, %s8324_s7  }
  0x30   :  { %s9904_s10 = sld [smem:[#allocation57_spill]]  ;;  %s8326_s6 = smov [#allocation2]  }
  0x31   :  { %s51_s13 = sshll.u32 %s8326_s6, 4  ;;  %s8327_s1 = smov [#allocation7]   ;;  %s52_s13 = int_to_ptr.vmem [resolvable:$true] %s51_s13 }
  0x32   :  { %s83_s11 = sshll.u32 %s8327_s1, 4  ;;  %s9905_s8 = sld [smem:[#allocation59_spill]]  ;;  %s84_s11 = int_to_ptr.vmem [resolvable:$true] %s83_s11 }
  0x33   :  { %s8328_s5 = smov [#allocation10]   ;;  %s159_s27 = sshll.u32 %s9855_s15, 4  ;;  %s160_s27 = int_to_ptr.hbm [resolvable:$true] %s159_s27 }
  0x34   :  { %s49_s30 = sshll.u32 %s9903_s16, 4  ;;  %s9906_s16 = sld [smem:[#allocation61_spill]]  ;;  %s50_s30 = int_to_ptr.hbm [resolvable:$true] %s49_s30 }
  0x35   :  { %57 = dma.hbm_to_vmem [thread:$0]  %s50_s30, 256, %s52_s13, [#allocation3], %s8323_s3, %s8323_s3, %s8324_s7  }
  0x36   :  { %s81_s29 = sshll.u32 %s9904_s10, 4  ;;  %s107_s10 = sshll.u32 %s8328_s5, 4  ;;  %s82_s29 = int_to_ptr.hbm [resolvable:$true] %s81_s29  ;;  %s108_s10 = int_to_ptr.vmem [resolvable:$true] %s107_s10 }
  0x37   :  { %89 = dma.hbm_to_vmem [thread:$0]  %s82_s29, 2048, %s84_s11, [#allocation6], %s8323_s3, %s8323_s3, %s8324_s7  }
  0x38   :  { %s105_s9 = sshll.u32 %s9905_s8, 4  ;;  %s8329_s30 = smov [#allocation13]   ;;  %s106_s9 = int_to_ptr.hbm [resolvable:$true] %s105_s9 }
  0x39   :  { %113 = dma.hbm_to_vmem [thread:$0]  %s106_s9, 4096, %s108_s10, [#allocation9], %s8323_s3, %s8323_s3, %s8324_s7  }
  0x3a   :  { %s129_s20 = sshll.u32 %s9906_s16, 4  ;;  %s131_s6 = sshll.u32 %s8329_s30, 4  ;;  %s130_s20 = int_to_ptr.hbm [resolvable:$true] %s129_s20  ;;  %s132_s6 = int_to_ptr.vmem [resolvable:$true] %s131_s6 }
  0x3b   :  { %137 = dma.hbm_to_vmem [thread:$0]  %s130_s20, 12288, %s132_s6, [#allocation12], %s8320_s28, %s8320_s28, %s8321_s0  }
  0x3c   :  { %s187_s23 = sshll.u32 %s9858_s18, 4  ;;  %s8330_s8 = smov [#allocation16]   ;;  %s188_s23 = int_to_ptr.hbm [resolvable:$true] %s187_s23 }
  0x3d   :  { %s161_s2 = sshll.u32 %s8330_s8, 4  ;;  %s8331_s9 = smov [#allocation19]   ;;  %s162_s2 = int_to_ptr.vmem [resolvable:$true] %s161_s2 }
  0x3e   :  { %167 = dma.hbm_to_vmem [thread:$0]  %s160_s27, 12288, %s162_s2, [#allocation15], %s8323_s3, %s8323_s3, %s8324_s7  }
  0x3f   :  { %s189_s15 = sshll.u32 %s8331_s9, 4  ;;  %s217_s5 = sshll.u32 %s9862_s22, 4  ;;  %s190_s15 = int_to_ptr.vmem [resolvable:$true] %s189_s15  ;;  %s218_s5 = int_to_ptr.hbm [resolvable:$true] %s217_s5 }
  0x40   :  { %195 = dma.hbm_to_vmem [thread:$0]  %s188_s23, 4096, %s190_s15, [#allocation18], %s8323_s3, %s8323_s3, %s8324_s7  }
  0x41   :  { %s8332_s18 = smov [#allocation22]   ;;  %s8333_s0 = smov 64  }
  0x42   :  { %s219_s28 = sshll.u32 %s8332_s18, 4  ;;  %s8334_s20 = smov 4   ;;  %s220_s28 = int_to_ptr.vmem [resolvable:$true] %s219_s28 }
  0x43   :  { %225 = dma.hbm_to_vmem [thread:$0]  %s218_s5, 2048, %s220_s28, [#allocation21], %s8333_s0, %s8333_s0, %s8334_s20  }
  0x44   :  { %8296 = dma.done.wait [#allocation3], 256  }
  0x45   :  { %8297 = vsyncadd [#allocation3], 4294967040 }
  0x46   :  { %8298 = dma.done.wait [#allocation6], 2064  }
  0x47   :  { %8299 = vsyncadd [#allocation6], 4294965232 }
  0x48   :  { %8300 = dma.done.wait [#allocation9], 4128  }
  0x49   :  { %8301 = vsyncadd [#allocation9], 4294963168 }
  0x4a   :  { %8302 = dma.done.wait [#allocation12], 12320  }
  0x4b   :  { %8303 = vsyncadd [#allocation12], 4294954976 }
  0x4c   :  { %8304 = dma.done.wait [#allocation15], 24576  }
  0x4d   :  { %8305 = vsyncadd [#allocation15], 4294942720 }
  0x4e   :  { %8306 = dma.done.wait [#allocation18], 8192  }
  0x4f   :  { %8307 = vsyncadd [#allocation18], 4294959104 }
  0x50   :  { %8308 = dma.done.wait [#allocation21], 6144  }
  0x51   :  { %8309 = vsyncadd [#allocation21], 4294961152  ;;  %s9907_s7 = sld [smem:[#allocation52_spill]]  ;;  %v8572_v7 = vld [vmem:[#allocation2] sm:$0xff]  ;;  %v8574_v8 = vld [vmem:[#allocation2 + $0x8] sm:$0xff]  ;;  %vm320_vm0 = vcmask 523264   ;;  %v423_v23 = vlaneseq }
  0x52   :  { %s9908_s1 = sld [smem:[#allocation54_spill]]  ;;  %v283_v10 = vpack.c.bf16 %v8574_v8, %v8572_v7  ;;  %v8335_v24 = vmov 0   ;;  %v7798_v27 = vld [vmem:[#allocation5] ss:$0 sm:$0xff]  ;;  %vm435_vm1 = vcmask 15360   ;;  %v8336_v38 = vmov 0.0  }
  0x53   :  { %s9909_s13 = sld [smem:[#allocation53_spill]]  ;;  %7778 = vset.pattern.permute.xlu0 %v8335_v24  ;;  %v8597_v25 = vshrl.u32 %v423_v23, 7  ;;  %vm689_vm12 = vcmask 517120   ;;  %vm721_vm13 = vcmask 1047556   ;;  %vm2657_vm14 = vcmask 1044484   ;;  %s5394_s30 = sshll.u32 %s9865_s25, 4  ;;  %s5395_s30 = int_to_ptr.hbm [resolvable:$true] %s5394_s30 }
  0x54   :  { %s9911_s29 = sld [smem:[#allocation50_spill]]  ;;  %vm2659_vm15 = vcmask 1045508   ;;  %s8339_s6 = smov [#allocation24]  }
  0x55   :  { %9910 = vst [vmem:[#allocation39_spill] sm:$0xff] %v8597_v25  ;;  %7785 = vset.pattern.permute.xlu2 %v8597_v25  ;;  %7784 = vset.pattern.permute.xlu1 %v8597_v25  ;;  %s9913_s2 = sld [smem:[#allocation56_spill]]  ;;  %s8341_s8 = smov [#allocation26]  }
  0x56   :  { %s5405_s25 = sshll.u32 %s9866_s26, 4  ;;  %s9974_s5 = sld [smem:[#allocation62_spill]]  ;;  %s5406_s25 = int_to_ptr.hbm [resolvable:$true] %s5405_s25 }
  0x57   :  { %v7292_v0 = vld [vmem:[%s9907_s7 + $0x18] sm:$0xff]  ;;  %v7291_v1 = vld [vmem:[%s9907_s7 + $0x10] sm:$0xff]  ;;  %v7290_v4 = vld [vmem:[%s9907_s7 + $0x8] sm:$0xff] }
  0x58   :  { %328 = vmatpush.bf16.msra.mxu0 %v7292_v0  ;;  %v7300_v2 = vld [vmem:[%s9908_s1 + $0x38] sm:$0xff]  ;;  %v7299_v3 = vld [vmem:[%s9908_s1 + $0x30] sm:$0xff]  ;;  %v7298_v5 = vld [vmem:[%s9908_s1 + $0x28] sm:$0xff] }
  0x59   :  { %409 = vmatpush.bf16.msra.mxu1 %v7300_v2  ;;  %v7289_v6 = vld [vmem:[%s9907_s7] sm:$0xff]  ;;  %v7296_v11 = vld [vmem:[%s9908_s1 + $0x18] sm:$0xff]  ;;  %v7295_v12 = vld [vmem:[%s9908_s1 + $0x10] sm:$0xff] }
  0x5a   :  { %v7297_v9 = vld [vmem:[%s9908_s1 + $0x20] sm:$0xff]  ;;  %v7294_v13 = vld [vmem:[%s9908_s1 + $0x8] sm:$0xff] }
  0x5b   :  { %v7293_v14 = vld [vmem:[%s9908_s1] sm:$0xff] }
  0x5c   :  { %329 = vmatpush.bf16.msra.mxu0 %v7291_v1  ;;  %v7797_v16 = vld [vmem:[%s9909_s13] ss:$0 sm:$0xff]  ;;  %s5392_s13 = sshll.u32 %s8339_s6, 4  ;;  %s5393_s13 = int_to_ptr.vmem [resolvable:$true] %s5392_s13 }
  0x5d   :  { %410 = vmatpush.bf16.msra.mxu1 %v7299_v3  ;;  %v425_v34 = vld [vmem:[%s9911_s29] sm:$0x3]  ;;  %s5383_s29 = sshll.u32 %s9864_s24, 4  ;;  %s8342_s24 = smov [#allocation27]   ;;  %s5384_s29 = int_to_ptr.hbm [resolvable:$true] %s5383_s29 }
  0x5e   :  { %v426_v35 = vrot.slane %v425_v34, 1  ;;  %v427_v36 = vperm.slane %v425_v34, 0  ;;  %s5414_s18 = sshll.u32 %s8342_s24, 4  ;;  %s5415_s18 = int_to_ptr.vmem [resolvable:$true] %s5414_s18 }
  0x60   :  { %330 = vmatpush.bf16.msra.mxu0 %v7290_v4  ;;  %v428_v37 = vperm.slane %v426_v35, 0  ;;  %vm429_vm2 = vcmp.lt.s32.totalorder %v8597_v25, %v427_v36 }
  0x61   :  { %411 = vmatpush.bf16.msra.mxu1 %v7298_v5  ;;  %v5495_v39 = vsel %vm429_vm2, 1.0, %v8336_v38  ;;  %vm2655_vm2 = vcmask 1042433  }
  0x62   :  { %vm430_vm3 = vcmp.lt.s32.totalorder %v8597_v25, %v428_v37 }
  0x63   :  { %v5496_v40 = vsel %vm430_vm3, 1.0, %v8336_v38  ;;  %vm9885_vm3 = vcmask 1043459  }
  0x64   :  { %331 = vmatpush.bf16.msra.mxu0 %v7289_v6  ;;  %v7779_v41 = vpack.i.bf16 %v5495_v39, %v5496_v40 }
  0x65   :  { %412 = vmatpush.bf16.msra.mxu1 %v7297_v9 }
  0x67   :  { %5462 = vmatmul.msk.bf16.vlgmr.msra.gmra.mxu0 %vm320_vm0, %v283_v10 }
  0x69   :  { %413 = vmatpush.bf16.msra.mxu1 %v7296_v11 }
  0x6d   :  { %414 = vmatpush.bf16.msra.mxu1 %v7295_v12 }
  0x71   :  { %415 = vmatpush.bf16.msra.mxu1 %v7294_v13 }
  0x75   :  { %416 = vmatpush.bf16.msra.mxu1 %v7293_v14 }
  0xe4   :  { %v333_v15 = vpop.f32.mrf.mxu0 }
  0xe5   :  { %v334_v17 = vadd.f32 %v7797_v16, %v333_v15 }
  0xe7   :  { %v338_v20 = vmax.f32 %v334_v17, 0.0 }
  0xec   :  { %v335_v18 = vpop.f32.mrf.mxu0 }
  0xed   :  { %v336_v19 = vadd.f32 %v7797_v16, %v335_v18 }
  0xef   :  { %v339_v21 = vmax.f32 %v336_v19, 0.0 }
  0xf1   :  { %v340_v22 = vpack.c.bf16 %v339_v21, %v338_v20 }
  0xf3   :  { %417 = vmatmul.bf16.vlgmr.msra.gmra.mxu1 %v340_v22 }
 0x170   :  { %v418_v26 = vpop.f32.mrf.mxu1 }
 0x171   :  { %v419_v28 = vadd.f32 %v7798_v27, %v418_v26 }
 0x173   :  { %v436_v31 = vsel %vm435_vm1, %v419_v28, -inf }
 0x178   :  { %v420_v29 = vpop.f32.mrf.mxu1 }
 0x179   :  { %v421_v30 = vadd.f32 %v7798_v27, %v420_v29 }
 0x17b   :  { %v437_v32 = vsel %vm435_vm1, %v421_v30, -inf }
 0x17c   :  { %v438_v33 = vmax.f32 %v436_v31, %v437_v32 }
 0x17e   :  { %439 = vmax.xlane.f32.xlu0 %v438_v33 }
 0x192   :  { %7780 = vperm.xlu0 %7778, %v7779_v41  }
 0x19a   :  { %7786 = vset.pattern.permute.xlu0 %v8597_v25 }
 0x1f1   :  { %v440_v42 = vpop.xlane.xlu0 %439 }
 0x1f2   :  { %v441_v43 = vrot.slane %v440_v42, 4 }
 0x1f4   :  { %v442_v44 = vmax.f32 %v440_v42, %v441_v43 }
 0x1f6   :  { %v443_v45 = vrot.slane %v442_v44, 2 }
 0x1f8   :  { %v444_v46 = vmax.f32 %v442_v44, %v443_v45 }
 0x1fa   :  { %v445_v47 = vrot.slane %v444_v46, 1 }
 0x1fc   :  { %v446_v48 = vmax.f32 %v444_v46, %v445_v47 }
 0x1fe   :  { %7749 = vpush %v446_v48 }
 0x204   :  { %v7781_v54 = vpop.permute.xlu0 %7780 }
 0x205   :  { %v7783_v55 = vunpack.i.h.bf16 %v7781_v54  ;;  %v7782_v56 = vunpack.i.l.bf16 %v7781_v54 }
 0x22f   :  { %s7750_s11 = spop %7749 }
 0x230   :  { %v448_v49 = vstv %s7750_s11  ;;  %s8340_s11 = smov [#allocation23]  }
 0x231   :  { %v449_v50 = vsub.f32 %v419_v28, %v448_v49  ;;  %v450_v51 = vsub.f32 %v421_v30, %v448_v49  ;;  %s5381_s23 = sshll.u32 %s8340_s11, 4  ;;  %s5382_s23 = int_to_ptr.vmem [resolvable:$true] %s5381_s23 }
 0x233   :  { %v451_v52 = vmul.f32 1.442695, %v449_v50  ;;  %v453_v53 = vmul.f32 1.442695, %v450_v51 }
 0x235   :  { %7800 = vpow2.f32 %v451_v52 }
 0x236   :  { %7802 = vpow2.f32 %v453_v53 }
 0x23b   :  { %v7801_v57 = vpop.eup %7800 }
 0x23c   :  { %v7803_v58 = vpop.eup %7802  ;;  %v465_v59 = vmul.f32 %v7801_v57, %v7783_v55 }
 0x23d   :  { %v466_v60 = vmul.f32 %v7803_v58, %v7782_v56 }
 0x23e   :  { %v467_v61 = vsel %vm435_vm1, %v465_v59, 0.0 }
 0x23f   :  { %v468_v62 = vrot.slane %v467_v61, 4  ;;  %v474_v63 = vsel %vm435_vm1, %v466_v60, 0.0  ;;  %vm2653_vm1 = vcmask 1041409  }
 0x240   :  { %v475_v0 = vrot.slane %v474_v63, 4 }
 0x241   :  { %v469_v1 = vadd.f32 %v468_v62, %v467_v61  ;;  %v634_v61 = vrot.slane %v8574_v8, 1 }
 0x242   :  { %v476_v2 = vadd.f32 %v475_v0, %v474_v63  ;;  %v635_v0 = vrot.slane %v8574_v8, 2 }
 0x243   :  { %v470_v3 = vrot.slane %v469_v1, 2  ;;  %v650_v63 = vperm.slane %v634_v61, 0 }
 0x244   :  { %v477_v4 = vrot.slane %v476_v2, 2 }
 0x245   :  { %v471_v5 = vadd.f32 %v470_v3, %v469_v1  ;;  %v636_v3 = vrot.slane %v8574_v8, 3 }
 0x246   :  { %v478_v6 = vadd.f32 %v477_v4, %v476_v2  ;;  %v627_v2 = vrot.slane %v8572_v7, 1  ;;  %v637_v4 = vrot.slane %v8574_v8, 4 }
 0x247   :  { %v472_v9 = vrot.slane %v471_v5, 1 }
 0x248   :  { %v479_v10 = vrot.slane %v478_v6, 1 }
 0x249   :  { %v473_v11 = vadd.f32 %v472_v9, %v471_v5  ;;  %v649_v5 = vperm.slane %v8574_v8, 0  ;;  %v651_v9 = vperm.slane %v635_v0, 0 }
 0x24a   :  { %v480_v12 = vadd.f32 %v479_v10, %v478_v6  ;;  %v638_v10 = vrot.slane %v8574_v8, 5 }
 0x24b   :  { %v481_v13 = vadd.f32 1e-05, %v473_v11 }
 0x24c   :  { %v482_v14 = vadd.f32 1e-05, %v480_v12  ;;  %v641_v12 = vperm.slane %v8572_v7, 0 }
 0x24d   :  { %7804 = vrcp.f32 %v481_v13  ;;  %v494_v20 = vand.u32 2147483648, %v481_v13  ;;  %v492_v23 = vand.u32 2147483647, %v481_v13  ;;  %vm488_vm6 = vweird.f32 %v481_v13 }
 0x24e   :  { %7806 = vrcp.f32 %v482_v14  ;;  %v509_v24 = vand.u32 2147483648, %v482_v14  ;;  %v507_v27 = vand.u32 2147483647, %v482_v14  ;;  %vm503_vm8 = vweird.f32 %v482_v14 }
 0x24f   :  { %v495_v29 = vor.u32 1.1754944e-38, %v494_v20  ;;  %vm493_vm9 = vcmp.eq.f32.partialorder %v492_v23, 8.507059e+37  ;;  %v5555_v23 = vld [vmem:[#allocation7 + $0x70] sm:$0xf] }
 0x250   :  { %v510_v32 = vor.u32 1.1754944e-38, %v509_v24  ;;  %vm508_vm11 = vcmp.eq.f32.partialorder %v507_v27, 8.507059e+37  ;;  %v7316_v24 = vld [vmem:[#allocation7 + $0x74] sm:$0xf0] }
 0x253   :  { %v7805_v15 = vpop.eup %7804 }
 0x254   :  { %v7807_v16 = vpop.eup %7806  ;;  %v484_v17 = vmul.f32 %v7805_v15, %v481_v13  ;;  %vm489_vm4 = vweird.f32 %v7805_v15  ;;  %v642_v13 = vperm.slane %v627_v2, 0 }
 0x255   :  { %v499_v18 = vmul.f32 %v7807_v16, %v482_v14  ;;  %vm504_vm5 = vweird.f32 %v7807_v16  ;;  %vm490_vm7 = vmor %vm488_vm6, %vm489_vm4  ;;  %v652_v14 = vperm.slane %v636_v3, 0  ;;  %v632_v3 = vrot.slane %v8572_v7, 6 }
 0x256   :  { %v485_v19 = vsub.f32 1.0, %v484_v17  ;;  %vm505_vm10 = vmor %vm503_vm8, %vm504_vm5  ;;  %v639_v17 = vrot.slane %v8574_v8, 6  ;;  %vm2661_vm4 = vcmask 1043457   ;;  %vm2649_vm5 = vcmask 1044483  }
 0x257   :  { %v500_v21 = vsub.f32 1.0, %v499_v18  ;;  %v653_v18 = vperm.slane %v637_v4, 0  ;;  %vm2643_vm6 = vcmask 1040384   ;;  %vm2651_vm8 = vcmask 1042432  }
 0x258   :  { %v486_v22 = vmul.f32 %v7805_v15, %v485_v19 }
 0x259   :  { %v501_v26 = vmul.f32 %v7807_v16, %v500_v21 }
 0x25a   :  { %v487_v28 = vadd.f32 %v7805_v15, %v486_v22  ;;  %v654_v22 = vperm.slane %v638_v10, 0  ;;  %v7310_v10 = vld [vmem:[#allocation7 + $0x44] sm:$0xf0] }
 0x25b   :  { %v502_v30 = vadd.f32 %v7807_v16, %v501_v26  ;;  %v7315_v26 = vld [vmem:[#allocation7 + $0x74] sm:$0xf] }
 0x25c   :  { %v491_v31 = vsel %vm490_vm7, %v7805_v15, %v487_v28  ;;  %v628_v15 = vrot.slane %v8572_v7, 2  ;;  %v5556_v28 = vor.u32 %v7316_v24, %v5555_v23  ;;  %vm2645_vm7 = vcmask 1041408  }
 0x25d   :  { %v496_v33 = vsel %vm493_vm9, %v495_v29, %v491_v31  ;;  %v506_v34 = vsel %vm505_vm10, %v7807_v16, %v502_v30  ;;  %v629_v16 = vrot.slane %v8572_v7, 3  ;;  %v5557_v29 = vld [vmem:[#allocation7 + $0x78] sm:$0xf0]  ;;  %v5547_v30 = vld [vmem:[#allocation7 + $0x60] sm:$0xf] }
 0x25e   :  { %v497_v35 = vmul.f32 %v496_v33, %v465_v59  ;;  %v511_v36 = vsel %vm508_vm11, %v510_v32, %v506_v34  ;;  %v7314_v31 = vld [vmem:[#allocation7 + $0x64] sm:$0xf0]  ;;  %v643_v32 = vperm.slane %v628_v15, 0  ;;  %v630_v33 = vrot.slane %v8572_v7, 4  ;;  %842 = vmatpush.bf16.msra.mxu2 %v5556_v28 }
 0x25f   :  { %v512_v37 = vmul.f32 %v511_v36, %v466_v60  ;;  %v7313_v36 = vld [vmem:[#allocation7 + $0x64] sm:$0xf] }
 0x260   :  { %v513_v38 = vperm.slane %v497_v35, 0  ;;  %v520_v41 = vperm.slane %v497_v35, 1  ;;  %v527_v43 = vperm.slane %v497_v35, 2  ;;  %v534_v45 = vperm.slane %v497_v35, 3 }
 0x261   :  { %v611_v39 = vperm.slane %v512_v37, 6  ;;  %v569_v40 = vperm.slane %v512_v37, 0  ;;  %v576_v42 = vperm.slane %v512_v37, 1  ;;  %v583_v44 = vperm.slane %v512_v37, 2 }
 0x262   :  { %518 = vperm.xlu2 %7785, %v513_v38   ;;  %v590_v46 = vperm.slane %v512_v37, 3  ;;  %v541_v47 = vperm.slane %v497_v35, 4  ;;  %v597_v48 = vperm.slane %v512_v37, 4  ;;  %v548_v49 = vperm.slane %v497_v35, 5 }
 0x263   :  { %616 = vperm.xlu0 %7786, %v611_v39   ;;  %574 = vperm.xlu1 %7784, %v569_v40   ;;  %v604_v50 = vperm.slane %v512_v37, 5  ;;  %v618_v51 = vperm.slane %v512_v37, 7  ;;  %v555_v52 = vperm.slane %v497_v35, 6  ;;  %v562_v53 = vperm.slane %v497_v35, 7  ;;  %v5549_v37 = vld [vmem:[#allocation7 + $0x68] sm:$0xf0] }
 0x264   :  { %v5560_v35 = vor.u32 %v7315_v26, %v5557_v29  ;;  %v5523_v26 = vld [vmem:[#allocation7 + $0x30] sm:$0xf] }
 0x266   :  { %855 = vmatpush.bf16.msra.mxu3 %v5560_v35 }
 0x26a   :  { %525 = vperm.xlu2 %7785, %v520_v41   ;;  %v5548_v41 = vor.u32 %v7314_v31, %v5547_v30  ;;  %v633_v30 = vrot.slane %v8572_v7, 7  ;;  %v7307_v31 = vld [vmem:[#allocation7 + $0x34] sm:$0xf] }
 0x26b   :  { %581 = vperm.xlu1 %7784, %v576_v42   ;;  %v644_v42 = vperm.slane %v629_v16, 0 }
 0x26c   :  { %843 = vmatpush.bf16.msra.mxu2 %v5548_v41 }
 0x272   :  { %532 = vperm.xlu2 %7785, %v527_v43  }
 0x273   :  { %588 = vperm.xlu1 %7784, %v583_v44   ;;  %v631_v44 = vrot.slane %v8572_v7, 5  ;;  %v648_v7 = vperm.slane %v633_v30, 0  ;;  %v7348_v30 = vld [vmem:[#allocation10 + $0xf4] sm:$0xf0] }
 0x275   :  { %v646_v4 = vperm.slane %v631_v44, 0  ;;  %v7305_v44 = vld [vmem:[#allocation7 + $0x24] sm:$0xf] }
 0x27a   :  { %539 = vperm.xlu2 %7785, %v534_v45  }
 0x27b   :  { %595 = vperm.xlu1 %7784, %v590_v46   ;;  %v5552_v46 = vor.u32 %v7313_v36, %v5549_v37 }
 0x27d   :  { %856 = vmatpush.bf16.msra.mxu3 %v5552_v46 }
 0x282   :  { %546 = vperm.xlu2 %7785, %v541_v47   ;;  %v5539_v47 = vld [vmem:[#allocation7 + $0x50] sm:$0xf] }
 0x283   :  { %602 = vperm.xlu1 %7784, %v597_v48   ;;  %v7312_v48 = vld [vmem:[#allocation7 + $0x54] sm:$0xf0] }
 0x28a   :  { %553 = vperm.xlu2 %7785, %v548_v49  }
 0x28b   :  { %609 = vperm.xlu1 %7784, %v604_v50   ;;  %v655_v50 = vperm.slane %v639_v17, 0 }
 0x292   :  { %623 = vperm.xlu2 %7785, %v618_v51  }
 0x293   :  { %560 = vperm.xlu1 %7784, %v555_v52  }
 0x29b   :  { %567 = vperm.xlu1 %7784, %v562_v53   ;;  %v7311_v53 = vld [vmem:[#allocation7 + $0x54] sm:$0xf] }
 0x2bc   :  { %v8611_v54 = vpop.permute.xlu2 %518 }
 0x2c4   :  { %v526_v55 = vpop.permute.xlu2 %525 }
 0x2c5   :  { %v674_v49 = vmul.f32 %v642_v13, %v526_v55  ;;  %v5540_v55 = vor.u32 %v7312_v48, %v5539_v47 }
 0x2c7   :  { %844 = vmatpush.bf16.msra.mxu2 %v5540_v55 }
 0x2cc   :  { %v8613_v57 = vpop.permute.xlu2 %532 }
 0x2d4   :  { %v8615_v60 = vpop.permute.xlu2 %539 }
 0x2d5   :  { %v575_v56 = vpop.permute.xlu1 %574  ;;  %v617_v0 = vpop.permute.xlu0 %616 }
 0x2d6   :  { %v681_v19 = vmul.f32 %v649_v5, %v575_v56  ;;  %v5541_v56 = vld [vmem:[#allocation7 + $0x58] sm:$0xf0] }
 0x2d8   :  { %v704_v38 = vsel %vm689_vm12, %v681_v19, 0.0  ;;  %v647_v19 = vperm.slane %v632_v3, 0 }
 0x2dc   :  { %v8619_v1 = vpop.permute.xlu2 %546 }
 0x2dd   :  { %v582_v58 = vpop.permute.xlu1 %581 }
 0x2de   :  { %v682_v6 = vmul.f32 %v650_v63, %v582_v58  ;;  %v673_v58 = vmul.f32 %v641_v12, %v8611_v54  ;;  %v675_v63 = vmul.f32 %v643_v32, %v8613_v57  ;;  %v691_v54 = vsel %vm689_vm12, %v674_v49, 0.0  ;;  %v7309_v57 = vld [vmem:[#allocation7 + $0x44] sm:$0xf]  ;;  %v5533_v12 = vld [vmem:[#allocation7 + $0x48] sm:$0xf0] }
 0x2df   :  { %v5536_v24 = vor.u32 %v7309_v57, %v5533_v12  ;;  %v5525_v32 = vld [vmem:[#allocation7 + $0x38] sm:$0xf0]  ;;  %v8337_v49 = vmov 1934713408   ;;  %v5499_v57 = vld [vmem:[#allocation7] sm:$0xf] }
 0x2e0   :  { %v705_v20 = vsel %vm689_vm12, %v682_v6, 0.0  ;;  %v5544_v6 = vor.u32 %v7311_v53, %v5541_v56  ;;  %v690_v13 = vsel %vm689_vm12, %v673_v58, 0.0  ;;  %v693_v17 = vsel %vm689_vm12, %v675_v63, 0.0  ;;  %v7303_v63 = vld [vmem:[#allocation7 + $0x14] sm:$0xf] }
 0x2e1   :  { %v706_v43 = vadd.f32 %v705_v20, %v704_v38  ;;  %v5528_v41 = vor.u32 %v7307_v31, %v5525_v32  ;;  %v7302_v12 = vld [vmem:[#allocation7 + $0x4] sm:$0xf0]  ;;  %v5677_v32 = vld [vmem:[#allocation10 + $0xe8] sm:$0xf0] }
 0x2e2   :  { %857 = vmatpush.bf16.msra.mxu3 %v5544_v6  ;;  %v7345_v31 = vld [vmem:[#allocation10 + $0xe4] sm:$0xf] }
 0x2e4   :  { %v554_v34 = vpop.permute.xlu2 %553 }
 0x2e5   :  { %v589_v59 = vpop.permute.xlu1 %588  ;;  %v678_v29 = vmul.f32 %v646_v4, %v554_v34 }
 0x2e6   :  { %v683_v21 = vmul.f32 %v651_v9, %v589_v59  ;;  %v645_v59 = vperm.slane %v630_v33, 0  ;;  %v5531_v9 = vld [vmem:[#allocation7 + $0x40] sm:$0xf]  ;;  %858 = vmatpush.bf16.msra.mxu3 %v5536_v24 }
 0x2e7   :  { %v5532_v20 = vor.u32 %v7310_v10, %v5531_v9  ;;  %v699_v34 = vsel %vm689_vm12, %v678_v29, 0.0 }
 0x2e8   :  { %v707_v39 = vsel %vm689_vm12, %v683_v21, 0.0  ;;  %v692_v21 = vadd.f32 %v691_v54, %v690_v13  ;;  %v7301_v13 = vld [vmem:[#allocation7 + $0x4] sm:$0xf] }
 0x2e9   :  { %v708_v61 = vadd.f32 %v707_v39, %v706_v43  ;;  %845 = vmatpush.bf16.msra.mxu2 %v5532_v20  ;;  %v7306_v43 = vld [vmem:[#allocation7 + $0x24] sm:$0xf0] }
 0x2ea   :  { %v694_v33 = vadd.f32 %v693_v17, %v692_v21  ;;  %859 = vmatpush.bf16.msra.mxu3 %v5528_v41  ;;  %v7331_v17 = vld [vmem:[#allocation10 + $0x74] sm:$0xf]  ;;  %v5685_v21 = vld [vmem:[#allocation10 + $0xf8] sm:$0xf0]  ;;  %v7346_v41 = vld [vmem:[#allocation10 + $0xe4] sm:$0xf0] }
 0x2ed   :  { %v596_v62 = vpop.permute.xlu1 %595 }
 0x2ee   :  { %v684_v27 = vmul.f32 %v652_v14, %v596_v62  ;;  %v640_v62 = vrot.slane %v8574_v8, 7  ;;  %v687_v14 = vmul.f32 %v655_v50, %v617_v0  ;;  %v724_v50 = vunpack.c.l.s4 %v8337_v49  ;;  %v5509_v0 = vld [vmem:[#allocation7 + $0x18] sm:$0xf0] }
 0x2ef   :  { %v5512_v9 = vor.u32 %v7303_v63, %v5509_v0  ;;  %v7342_v63 = vld [vmem:[#allocation10 + $0xc4] sm:$0xf0] }
 0x2f0   :  { %v709_v51 = vsel %vm689_vm12, %v684_v27, 0.0  ;;  %v656_v15 = vperm.slane %v640_v62, 0  ;;  %v7308_v27 = vld [vmem:[#allocation7 + $0x34] sm:$0xf0]  ;;  %v8655_v55 = vunpack.c.0.s8 %v724_v50  ;;  %v5667_v50 = vld [vmem:[#allocation10 + $0xd0] sm:$0xf] }
 0x2f1   :  { %v710_v5 = vadd.f32 %v709_v51, %v708_v61  ;;  %v5524_v38 = vor.u32 %v7308_v27, %v5523_v26  ;;  %v7304_v61 = vld [vmem:[#allocation7 + $0x14] sm:$0xf0]  ;;  %v7329_v26 = vld [vmem:[#allocation10 + $0x64] sm:$0xf]  ;;  %v5613_v27 = vld [vmem:[#allocation10 + $0x68] sm:$0xf0] }
 0x2f2   :  { %9912 = vst [vmem:[#allocation40_spill] sm:$0xff] %v8655_v55  ;;  %v5616_v29 = vor.u32 %v7329_v26, %v5613_v27  ;;  %v7319_v27 = vld [vmem:[#allocation10 + $0x14] sm:$0xf] }
 0x2f3   :  { %846 = vmatpush.bf16.msra.mxu2 %v5524_v38 }
 0x2f5   :  { %v603_v11 = vpop.permute.xlu1 %602 }
 0x2f6   :  { %v685_v40 = vmul.f32 %v653_v18, %v603_v11  ;;  %v676_v11 = vmul.f32 %v644_v42, %v8615_v60  ;;  %v677_v18 = vmul.f32 %v645_v59, %v8619_v1  ;;  %v715_v1 = vsel %vm689_vm12, %v687_v14, 0.0  ;;  %v5515_v42 = vld [vmem:[#allocation7 + $0x20] sm:$0xf]  ;;  %v5507_v59 = vld [vmem:[#allocation7 + $0x10] sm:$0xf] }
 0x2f7   :  { %v5516_v51 = vor.u32 %v7306_v43, %v5515_v42  ;;  %v5508_v4 = vor.u32 %v7304_v61, %v5507_v59  ;;  %v5500_v14 = vor.u32 %v7302_v12, %v5499_v57  ;;  %v7343_v43 = vld [vmem:[#allocation10 + $0xd4] sm:$0xf]  ;;  %v5651_v57 = vld [vmem:[#allocation10 + $0xb0] sm:$0xf]  ;;  %v7340_v12 = vld [vmem:[#allocation10 + $0xb4] sm:$0xf0] }
 0x2f8   :  { %v711_v2 = vsel %vm689_vm12, %v685_v40, 0.0  ;;  %v695_v28 = vsel %vm689_vm12, %v676_v11, 0.0  ;;  %v697_v35 = vsel %vm689_vm12, %v677_v18, 0.0  ;;  %v5621_v18 = vld [vmem:[#allocation10 + $0x78] sm:$0xf0] }
 0x2f9   :  { %v712_v16 = vadd.f32 %v711_v2, %v710_v5  ;;  %v696_v39 = vadd.f32 %v695_v28, %v694_v33  ;;  %847 = vmatpush.bf16.msra.mxu2 %v5516_v51  ;;  %v5624_v20 = vor.u32 %v7331_v17, %v5621_v18  ;;  %v5683_v28 = vld [vmem:[#allocation10 + $0xf0] sm:$0xf]  ;;  %v7344_v51 = vld [vmem:[#allocation10 + $0xd4] sm:$0xf0]  ;;  %v7337_v17 = vld [vmem:[#allocation10 + $0xa4] sm:$0xf] }
 0x2fa   :  { %v5684_v33 = vor.u32 %v7348_v30, %v5683_v28  ;;  %v5668_v59 = vor.u32 %v7344_v51, %v5667_v50  ;;  %v5645_v18 = vld [vmem:[#allocation10 + $0xa8] sm:$0xf0]  ;;  %v5573_v28 = vld [vmem:[#allocation10 + $0x18] sm:$0xf0] }
 0x2fb   :  { %v698_v46 = vadd.f32 %v697_v35, %v696_v39  ;;  %v5611_v35 = vld [vmem:[#allocation10 + $0x60] sm:$0xf]  ;;  %v5605_v39 = vld [vmem:[#allocation10 + $0x58] sm:$0xf0]  ;;  %v7442_v51 = vld [vmem:[#allocation13 + $0x2e4] sm:$0xf0] }
 0x2fc   :  { %1082 = vmatpush.bf16.msrb.mxu1 %v5684_v33  ;;  %v5637_v30 = vld [vmem:[#allocation10 + $0x98] sm:$0xf0] }
 0x2fd   :  { %v610_v45 = vpop.permute.xlu1 %609  ;;  %848 = vmatpush.bf16.msra.mxu2 %v5508_v4  ;;  %v5589_v4 = vld [vmem:[#allocation10 + $0x38] sm:$0xf0] }
 0x2fe   :  { %v686_v52 = vmul.f32 %v654_v22, %v610_v45  ;;  %v624_v22 = vpop.permute.xlu2 %623  ;;  %v5517_v45 = vld [vmem:[#allocation7 + $0x28] sm:$0xf0] }
 0x2ff   :  { %v688_v36 = vmul.f32 %v656_v15, %v624_v22  ;;  %v5520_v58 = vor.u32 %v7305_v44, %v5517_v45  ;;  %v5501_v15 = vld [vmem:[#allocation7 + $0x8] sm:$0xf0]  ;;  %v5619_v22 = vld [vmem:[#allocation10 + $0x70] sm:$0xf]  ;;  %v7328_v45 = vld [vmem:[#allocation10 + $0x54] sm:$0xf0] }
 0x300   :  { %v713_v8 = vsel %vm689_vm12, %v686_v52, 0.0  ;;  %v700_v52 = vadd.f32 %v699_v34, %v698_v46  ;;  %v5669_v34 = vld [vmem:[#allocation10 + $0xd8] sm:$0xf0]  ;;  %v7325_v46 = vld [vmem:[#allocation10 + $0x44] sm:$0xf] }
 0x301   :  { %v714_v23 = vadd.f32 %v713_v8, %v712_v16  ;;  %v717_v47 = vsel %vm689_vm12, %v688_v36, 0.0  ;;  %860 = vmatpush.bf16.msra.mxu3 %v5520_v58  ;;  %v5504_v16 = vor.u32 %v7301_v13, %v5501_v15  ;;  %849 = vmatpush.bf16.msra.mxu2 %v5500_v14  ;;  %v7330_v36 = vld [vmem:[#allocation10 + $0x64] sm:$0xf0]  ;;  %v7321_v15 = vld [vmem:[#allocation10 + $0x24] sm:$0xf] }
 0x302   :  { %v5612_v38 = vor.u32 %v7330_v36, %v5611_v35  ;;  %v7326_v58 = vld [vmem:[#allocation10 + $0x44] sm:$0xf0]  ;;  %v5635_v35 = vld [vmem:[#allocation10 + $0x90] sm:$0xf]  ;;  %v7336_v36 = vld [vmem:[#allocation10 + $0x94] sm:$0xf0] }
 0x303   :  { %v716_v40 = vadd.f32 %v715_v1, %v714_v23  ;;  %v7332_v23 = vld [vmem:[#allocation10 + $0x74] sm:$0xf0]  ;;  %v5680_v1 = vor.u32 %v7345_v31, %v5677_v32  ;;  %v5571_v31 = vld [vmem:[#allocation10 + $0x10] sm:$0xf] }
 0x304   :  { %v5620_v24 = vor.u32 %v7332_v23, %v5619_v22  ;;  %v5643_v23 = vld [vmem:[#allocation10 + $0xa0] sm:$0xf]  ;;  %v7320_v32 = vld [vmem:[#allocation10 + $0x14] sm:$0xf0] }
 0x305   :  { %v561_v60 = vpop.permute.xlu1 %560  ;;  %v719_v53 = vadd.f32 %v717_v47, %v716_v40  ;;  %861 = vmatpush.bf16.msra.mxu3 %v5512_v9  ;;  %1096 = vmatpush.bf16.msrb.mxu2 %v5624_v20  ;;  %v5675_v40 = vld [vmem:[#allocation10 + $0xe0] sm:$0xf]  ;;  %v5597_v47 = vld [vmem:[#allocation10 + $0x48] sm:$0xf0]  ;;  %v5587_v9 = vld [vmem:[#allocation10 + $0x30] sm:$0xf] }
 0x306   :  { %v679_v37 = vmul.f32 %v647_v19, %v561_v60  ;;  %v7347_v19 = vld [vmem:[#allocation10 + $0xf4] sm:$0xf]  ;;  %1068 = vmatpush.bf16.msrb.mxu0 %v5620_v24  ;;  %v5676_v42 = vor.u32 %v7346_v41, %v5675_v40  ;;  %v5600_v61 = vor.u32 %v7325_v46, %v5597_v47  ;;  %v7322_v20 = vld [vmem:[#allocation10 + $0x24] sm:$0xf0]  ;;  %v5648_v24 = vor.u32 %v7337_v17, %v5645_v18  ;;  %v5565_v40 = vld [vmem:[#allocation10 + $0x8] sm:$0xf0] }
 0x307   :  { %v720_v5 = vrot.slane %v719_v53, 4  ;;  %v5688_v60 = vor.u32 %v7347_v19, %v5685_v21  ;;  %v5661_v53 = vld [vmem:[#allocation10 + $0xc8] sm:$0xf0]  ;;  %v5579_v19 = vld [vmem:[#allocation10 + $0x20] sm:$0xf]  ;;  %v5652_v21 = vor.u32 %v7340_v12, %v5651_v57 }
 0x308   :  { %v701_v48 = vsel %vm689_vm12, %v679_v37, 0.0  ;;  %v7327_v37 = vld [vmem:[#allocation10 + $0x54] sm:$0xf]  ;;  %1083 = vmatpush.bf16.msrb.mxu1 %v5676_v42  ;;  %v5580_v26 = vor.u32 %v7322_v20, %v5579_v19  ;;  %v7333_v41 = vld [vmem:[#allocation10 + $0x84] sm:$0xf] }
 0x309   :  { %v702_v2 = vadd.f32 %v701_v48, %v700_v52  ;;  %862 = vmatpush.bf16.msra.mxu3 %v5504_v16  ;;  %1097 = vmatpush.bf16.msrb.mxu2 %v5616_v29  ;;  %v5608_v44 = vor.u32 %v7327_v37, %v5605_v39  ;;  %v5672_v48 = vor.u32 %v7343_v43, %v5669_v34  ;;  %v7341_v52 = vld [vmem:[#allocation10 + $0xc4] sm:$0xf]  ;;  %v5581_v16 = vld [vmem:[#allocation10 + $0x28] sm:$0xf0]  ;;  %v7335_v29 = vld [vmem:[#allocation10 + $0x94] sm:$0xf] }
 0x30a   :  { %1069 = vmatpush.bf16.msrb.mxu0 %v5612_v38  ;;  %v5664_v0 = vor.u32 %v7341_v52, %v5661_v53  ;;  %v5584_v22 = vor.u32 %v7321_v15, %v5581_v16  ;;  %v5640_v37 = vor.u32 %v7335_v29, %v5637_v30  ;;  %v5572_v38 = vor.u32 %v7320_v32, %v5571_v31  ;;  %v7317_v39 = vld [vmem:[#allocation10 + $0x4] sm:$0xf]  ;;  %v5629_v42 = vld [vmem:[#allocation10 + $0x88] sm:$0xf0]  ;;  %v5563_v43 = vld [vmem:[#allocation10] sm:$0xf] }
 0x30b   :  { %v5636_v34 = vor.u32 %v7336_v36, %v5635_v35  ;;  %v5568_v46 = vor.u32 %v7317_v39, %v5565_v40  ;;  %v5859_v47 = vld [vmem:[#allocation13 + $0x150] sm:$0xf]  ;;  %v7391_v52 = vld [vmem:[#allocation13 + $0x154] sm:$0xf]  ;;  %v5861_v53 = vld [vmem:[#allocation13 + $0x168] sm:$0xf0] }
 0x30c   :  { %1084 = vmatpush.bf16.msrb.mxu1 %v5668_v59  ;;  %v735_v59 = vld [vmem:[%s9913_s2] sm:$0xff]  ;;  %v7436_v12 = vld [vmem:[#allocation13 + $0x2b4] sm:$0xf0]  ;;  %v7433_v15 = vld [vmem:[#allocation13 + $0x2a4] sm:$0xf] }
 0x30d   :  { %v568_v56 = vpop.permute.xlu1 %567  ;;  %1110 = vmatpush.bf16.msrb.mxu3 %v5688_v60  ;;  %1098 = vmatpush.bf16.msrb.mxu2 %v5608_v44  ;;  %v7338_v60 = vld [vmem:[#allocation10 + $0xa4] sm:$0xf0]  ;;  %v5627_v44 = vld [vmem:[#allocation10 + $0x80] sm:$0xf]  ;;  %v7427_v29 = vld [vmem:[#allocation13 + $0x274] sm:$0xf] }
 0x30e   :  { %v680_v62 = vmul.f32 %v648_v7, %v568_v56  ;;  %v5603_v7 = vld [vmem:[#allocation10 + $0x50] sm:$0xf]  ;;  %v5595_v56 = vld [vmem:[#allocation10 + $0x40] sm:$0xf]  ;;  %v5644_v33 = vor.u32 %v7338_v60, %v5643_v23  ;;  %v7382_v23 = vld [vmem:[#allocation13 + $0x104] sm:$0xf0] }
 0x30f   :  { %v5604_v49 = vor.u32 %v7328_v45, %v5603_v7  ;;  %v7318_v7 = vld [vmem:[#allocation10 + $0x4] sm:$0xf0]  ;;  %v6029_v16 = vld [vmem:[#allocation13 + $0x2b8] sm:$0xf0]  ;;  %v6003_v60 = vld [vmem:[#allocation13 + $0x270] sm:$0xf] }
 0x310   :  { %v703_v3 = vsel %vm689_vm12, %v680_v62, 0.0  ;;  %v5659_v62 = vld [vmem:[#allocation10 + $0xc0] sm:$0xf]  ;;  %v7334_v45 = vld [vmem:[#allocation10 + $0x84] sm:$0xf0] }
 0x311   :  { %v718_v6 = vadd.f32 %v703_v3, %v702_v2  ;;  %1111 = vmatpush.bf16.msrb.mxu3 %v5680_v1  ;;  %1070 = vmatpush.bf16.msrb.mxu0 %v5604_v49  ;;  %v5596_v2 = vor.u32 %v7326_v58, %v5595_v56  ;;  %v7323_v3 = vld [vmem:[#allocation10 + $0x34] sm:$0xf]  ;;  %v5576_v1 = vor.u32 %v7319_v27, %v5573_v28  ;;  %v5813_v28 = vld [vmem:[#allocation13 + $0x108] sm:$0xf0]  ;;  %v7376_v35 = vld [vmem:[#allocation13 + $0xd4] sm:$0xf0] }
 0x312   :  { %1099 = vmatpush.bf16.msrb.mxu2 %v5600_v61  ;;  %v6051_v49 = vld [vmem:[#allocation13 + $0x2d0] sm:$0xf]  ;;  %v5632_v58 = vor.u32 %v7333_v41, %v5629_v42  ;;  %v5564_v61 = vor.u32 %v7318_v7, %v5563_v43  ;;  %v7379_v27 = vld [vmem:[#allocation13 + $0xf4] sm:$0xf]  ;;  %v6005_v30 = vld [vmem:[#allocation13 + $0x288] sm:$0xf0] }
 0x313   :  { %v722_v10 = vsel %vm721_vm13, %v720_v5, %v718_v6  ;;  %v7339_v5 = vld [vmem:[#allocation10 + $0xb4] sm:$0xf]  ;;  %v5653_v6 = vld [vmem:[#allocation10 + $0xb8] sm:$0xf0]  ;;  %v5979_v36 = vld [vmem:[#allocation13 + $0x240] sm:$0xf] }
 0x314   :  { %v8659_v54 = vperm.slane %v722_v10, %v8655_v55  ;;  %v7324_v10 = vld [vmem:[#allocation10 + $0x34] sm:$0xf0]  ;;  %v5656_v13 = vor.u32 %v7339_v5, %v5653_v6  ;;  %v6052_v6 = vor.u32 %v7442_v51, %v6051_v49  ;;  %v7373_v39 = vld [vmem:[#allocation13 + $0xc4] sm:$0xf]  ;;  %v5789_v40 = vld [vmem:[#allocation13 + $0xd8] sm:$0xf0] }
 0x315   :  { %1112 = vmatpush.bf16.msrb.mxu3 %v5672_v48  ;;  %1071 = vmatpush.bf16.msrb.mxu0 %v5596_v2  ;;  %v5588_v14 = vor.u32 %v7324_v10, %v5587_v9  ;;  %v7394_v48 = vld [vmem:[#allocation13 + $0x164] sm:$0xf0]  ;;  %v737_v2 = vld [vmem:[%s9913_s2 + $0x10] sm:$0xff]  ;;  %v5864_v9 = vor.u32 %v7391_v52, %v5861_v53  ;;  %v7421_v42 = vld [vmem:[#allocation13 + $0x244] sm:$0xf]  ;;  %v5792_v7 = vor.u32 %v7373_v39, %v5789_v40 }
 0x316   :  { %v727_v11 = vrot.slane %v8659_v54, 4  ;;  %v5860_v5 = vor.u32 %v7394_v48, %v5859_v47  ;;  %v5835_v10 = vld [vmem:[#allocation13 + $0x120] sm:$0xf]  ;;  %v868_v17 = vpack.c.bf16 %v737_v2, %v735_v59  ;;  %v5981_v43 = vld [vmem:[#allocation13 + $0x258] sm:$0xf0] }
 0x317   :  { %v7418_v47 = vld [vmem:[#allocation13 + $0x224] sm:$0xf0]  ;;  %v7367_v48 = vld [vmem:[#allocation13 + $0x94] sm:$0xf]  ;;  %v5765_v49 = vld [vmem:[#allocation13 + $0xa8] sm:$0xf0] }
 0x318   :  { %v728_v8 = vsel %vm721_vm13, 0.0, %v727_v11  ;;  %v5660_v11 = vor.u32 %v7342_v63, %v5659_v62  ;;  %v7439_v62 = vld [vmem:[#allocation13 + $0x2d4] sm:$0xf]  ;;  %v6053_v63 = vld [vmem:[#allocation13 + $0x2e8] sm:$0xf0] }
 0x319   :  { %730 = vrot.lane.b32.xlu2 %v728_v8, %s8333_s0  ;;  %v5592_v8 = vor.u32 %v7323_v3, %v5589_v4  ;;  %1113 = vmatpush.bf16.msrb.mxu3 %v5664_v0  ;;  %v736_v3 = vld [vmem:[%s9913_s2 + $0x8] sm:$0xff]  ;;  %v5628_v4 = vor.u32 %v7334_v45, %v5627_v44  ;;  %v6056_v57 = vor.u32 %v7439_v62, %v6053_v63  ;;  %v7370_v45 = vld [vmem:[#allocation13 + $0xa4] sm:$0xf0]  ;;  %v5957_v53 = vld [vmem:[#allocation13 + $0x228] sm:$0xf0] }
 0x31a   :  { %1085 = vmatpush.bf16.msrb.mxu1 %v5660_v11  ;;  %1072 = vmatpush.bf16.msrb.mxu0 %v5588_v14  ;;  %v7388_v11 = vld [vmem:[#allocation13 + $0x134] sm:$0xf0]  ;;  %v5837_v14 = vld [vmem:[#allocation13 + $0x138] sm:$0xf0]  ;;  %v5763_v44 = vld [vmem:[#allocation13 + $0x90] sm:$0xf] }
 0x31b   :  { %1100 = vmatpush.bf16.msrb.mxu2 %v5592_v8  ;;  %v6027_v8 = vld [vmem:[#allocation13 + $0x2a0] sm:$0xf]  ;;  %v5836_v18 = vor.u32 %v7388_v11, %v5835_v10  ;;  %v5764_v51 = vor.u32 %v7370_v45, %v5763_v44  ;;  %v7415_v52 = vld [vmem:[#allocation13 + $0x214] sm:$0xf]  ;;  %v7412_v63 = vld [vmem:[#allocation13 + $0x1f4] sm:$0xf0] }
 0x31c   :  { %v6028_v20 = vor.u32 %v7436_v12, %v6027_v8  ;;  %v5739_v59 = vld [vmem:[#allocation13 + $0x60] sm:$0xf]  ;;  %v5741_v2 = vld [vmem:[#allocation13 + $0x78] sm:$0xf0]  ;;  %v5715_v10 = vld [vmem:[#allocation13 + $0x30] sm:$0xf] }
 0x31d   :  { %1114 = vmatpush.bf16.msrb.mxu3 %v5656_v13  ;;  %v7385_v13 = vld [vmem:[#allocation13 + $0x124] sm:$0xf]  ;;  %v5931_v62 = vld [vmem:[#allocation13 + $0x1e0] sm:$0xf]  ;;  %v7358_v11 = vld [vmem:[#allocation13 + $0x44] sm:$0xf0] }
 0x31e   :  { %1086 = vmatpush.bf16.msrb.mxu1 %v5652_v21  ;;  %1073 = vmatpush.bf16.msrb.mxu0 %v5580_v26  ;;  %v5840_v21 = vor.u32 %v7385_v13, %v5837_v14  ;;  %v7430_v26 = vld [vmem:[#allocation13 + $0x284] sm:$0xf0]  ;;  %v5907_v8 = vld [vmem:[#allocation13 + $0x1b0] sm:$0xf]  ;;  %v7355_v12 = vld [vmem:[#allocation13 + $0x34] sm:$0xf] }
 0x31f   :  { %1101 = vmatpush.bf16.msrb.mxu2 %v5584_v22  ;;  %v5811_v22 = vld [vmem:[#allocation13 + $0xf0] sm:$0xf]  ;;  %v6004_v32 = vor.u32 %v7430_v26, %v6003_v60  ;;  %v5717_v13 = vld [vmem:[#allocation13 + $0x48] sm:$0xf0]  ;;  %v7349_v60 = vld [vmem:[#allocation13 + $0x4] sm:$0xf] }
 0x320   :  { %v5812_v31 = vor.u32 %v7382_v23, %v5811_v22  ;;  %v5883_v22 = vld [vmem:[#allocation13 + $0x180] sm:$0xf]  ;;  %v7400_v23 = vld [vmem:[#allocation13 + $0x194] sm:$0xf0]  ;;  %v7397_v26 = vld [vmem:[#allocation13 + $0x184] sm:$0xf] }
 0x321   :  { %1115 = vmatpush.bf16.msrb.mxu3 %v5648_v24  ;;  %v6032_v24 = vor.u32 %v7433_v15, %v6029_v16  ;;  %v7403_v15 = vld [vmem:[#allocation13 + $0x1b4] sm:$0xf]  ;;  %v5716_v16 = vor.u32 %v7358_v11, %v5715_v10  ;;  %v6035_v44 = vld [vmem:[#allocation13 + $0x2a8] sm:$0xf]  ;;  %v7437_v45 = vld [vmem:[#allocation13 + $0x2bc] sm:$0xf0] }
 0x322   :  { %1087 = vmatpush.bf16.msrb.mxu1 %v5644_v33  ;;  %1074 = vmatpush.bf16.msrb.mxu0 %v5572_v38  ;;  %v5816_v33 = vor.u32 %v7379_v27, %v5813_v28  ;;  %v7424_v38 = vld [vmem:[#allocation13 + $0x254] sm:$0xf0]  ;;  %v6061_v39 = vld [vmem:[#allocation13 + $0x2f0] sm:$0xf0]  ;;  %v5987_v10 = vld [vmem:[#allocation13 + $0x248] sm:$0xf] }
 0x323   :  { %1102 = vmatpush.bf16.msrb.mxu2 %v5576_v1  ;;  %v5787_v1 = vld [vmem:[#allocation13 + $0xc0] sm:$0xf]  ;;  %v5867_v27 = vld [vmem:[#allocation13 + $0x158] sm:$0xf] }
 0x324   :  { %v5788_v41 = vor.u32 %v7376_v35, %v5787_v1  ;;  %v7392_v1 = vld [vmem:[#allocation13 + $0x15c] sm:$0xf]  ;;  %v5869_v35 = vld [vmem:[#allocation13 + $0x170] sm:$0xf0]  ;;  %v7425_v11 = vld [vmem:[#allocation13 + $0x25c] sm:$0xf0] }
 0x325   :  { %1116 = vmatpush.bf16.msrb.mxu3 %v5640_v37  ;;  %v6008_v37 = vor.u32 %v7427_v29, %v6005_v30  ;;  %v7395_v29 = vld [vmem:[#allocation13 + $0x16c] sm:$0xf0]  ;;  %v6059_v30 = vld [vmem:[#allocation13 + $0x2d8] sm:$0xf] }
 0x326   :  { %1088 = vmatpush.bf16.msrb.mxu1 %v5636_v34  ;;  %1075 = vmatpush.bf16.msrb.mxu0 %v5564_v61  ;;  %v5980_v34 = vor.u32 %v7424_v38, %v5979_v36  ;;  %v7364_v61 = vld [vmem:[#allocation13 + $0x74] sm:$0xf0]  ;;  %v5884_v36 = vor.u32 %v7400_v23, %v5883_v22  ;;  %v7440_v38 = vld [vmem:[#allocation13 + $0x2dc] sm:$0xf]  ;;  %v5868_v40 = vor.u32 %v7395_v29, %v5867_v27  ;;  %v5747_v29 = vld [vmem:[#allocation13 + $0x68] sm:$0xf] }
 0x327   :  { %1103 = vmatpush.bf16.msrb.mxu2 %v5568_v46  ;;  %v5955_v46 = vld [vmem:[#allocation13 + $0x210] sm:$0xf]  ;;  %v7368_v23 = vld [vmem:[#allocation13 + $0x9c] sm:$0xf] }
 0x329   :  { %1117 = vmatpush.bf16.msrb.mxu3 %v5632_v58  ;;  %1076 = vmatmul.bf16.vlgmr.msrb.gmra.mxu0 %v868_v17  ;;  %v5768_v58 = vor.u32 %v7367_v48, %v5765_v49  ;;  %v5845_v48 = vld [vmem:[#allocation13 + $0x140] sm:$0xf0]  ;;  %v7434_v49 = vld [vmem:[#allocation13 + $0x2ac] sm:$0xf] }
 0x32a   :  { %1089 = vmatpush.bf16.msrb.mxu1 %v5628_v4  ;;  %1716 = vmatpush.bf16.msra.mxu0 %v5860_v5  ;;  %v7409_v4 = vld [vmem:[#allocation13 + $0x1e4] sm:$0xf]  ;;  %v5933_v5 = vld [vmem:[#allocation13 + $0x1f8] sm:$0xf0] }
 0x32b   :  { %v5936_v14 = vor.u32 %v7409_v4, %v5933_v5  ;;  %v5795_v5 = vld [vmem:[#allocation13 + $0xc8] sm:$0xf] }
 0x32e   :  { %1729 = vmatpush.bf16.msra.mxu1 %v6052_v6  ;;  %1717 = vmatpush.bf16.msra.mxu0 %v5836_v18  ;;  %v5932_v6 = vor.u32 %v7412_v63, %v5931_v62  ;;  %v5691_v18 = vld [vmem:[#allocation13] sm:$0xf]  ;;  %v7380_v63 = vld [vmem:[#allocation13 + $0xfc] sm:$0xf] }
 0x332   :  { %1730 = vmatpush.bf16.msra.mxu1 %v6028_v20  ;;  %1718 = vmatpush.bf16.msra.mxu0 %v5812_v31  ;;  %v7443_v31 = vld [vmem:[#allocation13 + $0x2ec] sm:$0xf0] }
 0x336   :  { %1731 = vmatpush.bf16.msra.mxu1 %v6004_v32  ;;  %1719 = vmatpush.bf16.msra.mxu0 %v5788_v41  ;;  %v6060_v41 = vor.u32 %v7443_v31, %v6059_v30  ;;  %v7365_v31 = vld [vmem:[#allocation13 + $0x7c] sm:$0xf0] }
 0x33a   :  { %1732 = vmatpush.bf16.msra.mxu1 %v5980_v34  ;;  %1720 = vmatpush.bf16.msra.mxu0 %v5764_v51  ;;  %v5872_v34 = vor.u32 %v7392_v1, %v5869_v35  ;;  %v7362_v35 = vld [vmem:[#allocation13 + $0x6c] sm:$0xf] }
 0x373   :  { %v731_v50 = vpop.permute.xlu2 %730 }
 0x374   :  { %v733_v56 = vsel %vm320_vm0, %v8659_v54, %v731_v50  ;;  %v738_v54 = vld [vmem:[%s9913_s2 + $0x18] sm:$0xff]  ;;  %v5984_v50 = vor.u32 %v7421_v42, %v5981_v43  ;;  %s5403_s2 = sshll.u32 %s8341_s8, 4  ;;  %s5404_s2 = int_to_ptr.vmem [resolvable:$true] %s5403_s2 }
 0x375   :  { %734 = vst [vmem:[#allocation23] sm:$0x3] %v733_v56  ;;  %v739_v0 = vpack.c.bf16 %v733_v56, %v733_v56  ;;  %v869_v19 = vpack.c.bf16 %v738_v54, %v736_v3  ;;  %v5956_v56 = vor.u32 %v7418_v47, %v5955_v46  ;;  %v5960_v3 = vor.u32 %v7415_v52, %v5957_v53  ;;  %v5843_v42 = vld [vmem:[#allocation13 + $0x128] sm:$0xf]  ;;  %v7386_v47 = vld [vmem:[#allocation13 + $0x12c] sm:$0xf] }
 0x376   :  { %v5740_v54 = vor.u32 %v7364_v61, %v5739_v59  ;;  %v6064_v46 = vor.u32 %v7440_v38, %v6061_v39  ;;  %v6036_v52 = vor.u32 %v7437_v45, %v6035_v44  ;;  %v5819_v53 = vld [vmem:[#allocation13 + $0xf8] sm:$0xf]  ;;  %v7431_v61 = vld [vmem:[#allocation13 + $0x28c] sm:$0xf0]  ;;  %v5941_v38 = vld [vmem:[#allocation13 + $0x200] sm:$0xf0]  ;;  %v5748_v39 = vor.u32 %v7365_v31, %v5747_v29 }
 0x377   :  { %850 = vmatmul.bf16.vlgmr.msra.gmra.mxu2 %v739_v0  ;;  %863 = vmatmul.bf16.vlgmr.msra.gmra.mxu3 %v739_v0  ;;  %v7361_v0 = vld [vmem:[#allocation13 + $0x64] sm:$0xf]  ;;  %v6011_v59 = vld [vmem:[#allocation13 + $0x278] sm:$0xf]  ;;  %v7407_v45 = vld [vmem:[#allocation13 + $0x1cc] sm:$0xf0] }
 0x378   :  { %1742 = vmatpush.bf16.msra.mxu2 %v5864_v9  ;;  %1755 = vmatpush.bf16.msra.mxu3 %v6056_v57  ;;  %v5744_v9 = vor.u32 %v7361_v0, %v5741_v2  ;;  %v7406_v57 = vld [vmem:[#allocation13 + $0x1c4] sm:$0xf0]  ;;  %v5821_v0 = vld [vmem:[#allocation13 + $0x110] sm:$0xf0]  ;;  %v7428_v2 = vld [vmem:[#allocation13 + $0x27c] sm:$0xf]  ;;  %v6012_v4 = vor.u32 %v7431_v61, %v6011_v59 }
 0x379   :  { %1090 = vmatmul.bf16.vlgmr.msrb.gmra.mxu1 %v869_v19  ;;  %1721 = vmatpush.bf16.msra.mxu0 %v5740_v54  ;;  %v5908_v20 = vor.u32 %v7406_v57, %v5907_v8  ;;  %v7374_v57 = vld [vmem:[#allocation13 + $0xcc] sm:$0xf]  ;;  %v7401_v61 = vld [vmem:[#allocation13 + $0x19c] sm:$0xf0]  ;;  %v7438_v29 = vld [vmem:[#allocation13 + $0x2c4] sm:$0xf0] }
 0x37a   :  { %1733 = vmatpush.bf16.msra.mxu1 %v5956_v56  ;;  %v5848_v56 = vor.u32 %v7386_v47, %v5845_v48  ;;  %v5725_v47 = vld [vmem:[#allocation13 + $0x50] sm:$0xf0]  ;;  %v5853_v31 = vld [vmem:[#allocation13 + $0x148] sm:$0xf0]  ;;  %5386 = dma.vmem_to_hbm [thread:$0]  %s5382_s23, 32, %s5384_s29, [#allocation4]  }
 0x37c   :  { %1743 = vmatpush.bf16.msra.mxu2 %v5840_v21  ;;  %1756 = vmatpush.bf16.msra.mxu3 %v6032_v24  ;;  %v5720_v21 = vor.u32 %v7355_v12, %v5717_v13  ;;  %v5693_v24 = vld [vmem:[#allocation13 + $0x18] sm:$0xf0]  ;;  %v5797_v12 = vld [vmem:[#allocation13 + $0xe0] sm:$0xf0]  ;;  %v7422_v13 = vld [vmem:[#allocation13 + $0x24c] sm:$0xf] }
 0x37d   :  { %1722 = vmatpush.bf16.msra.mxu0 %v5716_v16  ;;  %v5988_v16 = vor.u32 %v7425_v11, %v5987_v10  ;;  %v5875_v10 = vld [vmem:[#allocation13 + $0x160] sm:$0xf]  ;;  %v7396_v11 = vld [vmem:[#allocation13 + $0x174] sm:$0xf0] }
 0x37e   :  { %1734 = vmatpush.bf16.msra.mxu1 %v5932_v6  ;;  %v5824_v6 = vor.u32 %v7380_v63, %v5821_v0  ;;  %v5701_v63 = vld [vmem:[#allocation13 + $0x20] sm:$0xf0] }
 0x380   :  { %1744 = vmatpush.bf16.msra.mxu2 %v5816_v33  ;;  %1757 = vmatpush.bf16.msra.mxu3 %v6008_v37  ;;  %v5885_v33 = vld [vmem:[#allocation13 + $0x198] sm:$0xf0]  ;;  %v5696_v37 = vor.u32 %v7349_v60, %v5693_v24  ;;  %v5773_v60 = vld [vmem:[#allocation13 + $0xb0] sm:$0xf0] }
 0x381   :  { %v5888_v43 = vor.u32 %v7397_v26, %v5885_v33  ;;  %v7416_v24 = vld [vmem:[#allocation13 + $0x21c] sm:$0xf]  ;;  %v5965_v26 = vld [vmem:[#allocation13 + $0x230] sm:$0xf0]  ;;  %v5776_v30 = vor.u32 %v7368_v23, %v5773_v60  ;;  %v7413_v33 = vld [vmem:[#allocation13 + $0x1fc] sm:$0xf0] }
 0x382   :  { %1735 = vmatpush.bf16.msra.mxu1 %v5908_v20  ;;  %v5963_v20 = vld [vmem:[#allocation13 + $0x218] sm:$0xf]  ;;  %v5968_v1 = vor.u32 %v7416_v24, %v5965_v26  ;;  %v5851_v60 = vld [vmem:[#allocation13 + $0x130] sm:$0xf]  ;;  %v7390_v24 = vld [vmem:[#allocation13 + $0x144] sm:$0xf0] }
 0x384   :  { %1745 = vmatpush.bf16.msra.mxu2 %v5792_v7  ;;  %1758 = vmatpush.bf16.msra.mxu3 %v5984_v50  ;;  %v7389_v7 = vld [vmem:[#allocation13 + $0x13c] sm:$0xf0]  ;;  %v6037_v50 = vld [vmem:[#allocation13 + $0x2c0] sm:$0xf0] }
 0x385   :  { %v5844_v51 = vor.u32 %v7389_v7, %v5843_v42  ;;  %v6040_v62 = vor.u32 %v7434_v49, %v6037_v50  ;;  %v5915_v7 = vld [vmem:[#allocation13 + $0x1b8] sm:$0xf]  ;;  %v7404_v50 = vld [vmem:[#allocation13 + $0x1bc] sm:$0xf] }
 0x386   :  { %1736 = vmatpush.bf16.msra.mxu1 %v5884_v36  ;;  %v5749_v36 = vld [vmem:[#allocation13 + $0x80] sm:$0xf0]  ;;  %v5916_v48 = vor.u32 %v7407_v45, %v5915_v7  ;;  %v5829_v7 = vld [vmem:[#allocation13 + $0x118] sm:$0xf0] }
 0x387   :  { %1104 = vmatmul.bf16.vlgmr.msrb.gmra.mxu2 %v868_v17  ;;  %1118 = vmatmul.bf16.vlgmr.msrb.gmra.mxu3 %v869_v19  ;;  %v5909_v17 = vld [vmem:[#allocation13 + $0x1c8] sm:$0xf0]  ;;  %v7352_v19 = vld [vmem:[#allocation13 + $0x14] sm:$0xf0]  ;;  %v6021_v45 = vld [vmem:[#allocation13 + $0x298] sm:$0xf0] }
 0x388   :  { %1746 = vmatpush.bf16.msra.mxu2 %v5768_v58  ;;  %1759 = vmatpush.bf16.msra.mxu3 %v5960_v3  ;;  %v5912_v28 = vor.u32 %v7403_v15, %v5909_v17  ;;  %v5692_v32 = vor.u32 %v7352_v19, %v5691_v18  ;;  %v7383_v58 = vld [vmem:[#allocation13 + $0x10c] sm:$0xf0]  ;;  %v6013_v3 = vld [vmem:[#allocation13 + $0x290] sm:$0xf0]  ;;  %v5771_v17 = vld [vmem:[#allocation13 + $0x98] sm:$0xf]  ;;  %v5800_v18 = vor.u32 %v7374_v57, %v5797_v12 }
 0x389   :  { %v5820_v54 = vor.u32 %v7383_v58, %v5819_v53  ;;  %v6016_v8 = vor.u32 %v7428_v2, %v6013_v3  ;;  %v7371_v19 = vld [vmem:[#allocation13 + $0xac] sm:$0xf0]  ;;  %v5699_v53 = vld [vmem:[#allocation13 + $0x8] sm:$0xf]  ;;  %v7398_v3 = vld [vmem:[#allocation13 + $0x18c] sm:$0xf] }
 0x38a   :  { %1723 = vmatpush.bf16.msra.mxu0 %v5692_v32  ;;  %1781 = vmatpush.bf16.msrb.mxu1 %v6060_v41  ;;  %v5772_v27 = vor.u32 %v7371_v19, %v5771_v17  ;;  %v5939_v32 = vld [vmem:[#allocation13 + $0x1e8] sm:$0xf]  ;;  %v5752_v41 = vor.u32 %v7362_v35, %v5749_v36  ;;  %v6067_v12 = vld [vmem:[#allocation13 + $0x2e0] sm:$0xf]  ;;  %v5877_v17 = vld [vmem:[#allocation13 + $0x178] sm:$0xf0] }
 0x38b   :  { %v5891_v58 = vld [vmem:[#allocation13 + $0x188] sm:$0xf]  ;;  %v6069_v19 = vld [vmem:[#allocation13 + $0x2f8] sm:$0xf0]  ;;  %v5827_v36 = vld [vmem:[#allocation13 + $0x100] sm:$0xf] }
 0x38c   :  { %1747 = vmatpush.bf16.msra.mxu2 %v5744_v9  ;;  %1760 = vmatpush.bf16.msra.mxu3 %v5936_v14  ;;  %v7377_v9 = vld [vmem:[#allocation13 + $0xdc] sm:$0xf0]  ;;  %v5989_v14 = vld [vmem:[#allocation13 + $0x260] sm:$0xf0]  ;;  %v5892_v0 = vor.u32 %v7401_v61, %v5891_v58  ;;  %v5805_v58 = vld [vmem:[#allocation13 + $0xe8] sm:$0xf0] }
 0x38d   :  { %v5796_v15 = vor.u32 %v7377_v9, %v5795_v5  ;;  %v5992_v22 = vor.u32 %v7422_v13, %v5989_v14  ;;  %v756_v5 = vld [vmem:[#allocation8] sm:$0x3]  ;;  %v7444_v13 = vld [vmem:[#allocation13 + $0x2f4] sm:$0xf0]  ;;  %v7393_v14 = vld [vmem:[#allocation13 + $0x164] sm:$0xf] }
 0x38e   :  { %1768 = vmatpush.bf16.msrb.mxu0 %v5868_v40  ;;  %1782 = vmatpush.bf16.msrb.mxu1 %v6036_v52  ;;  %v5940_v40 = vor.u32 %v7413_v33, %v5939_v32  ;;  %v759_v9 = vperm.slane %v756_v5, 1  ;;  %v6068_v23 = vor.u32 %v7444_v13, %v6067_v12  ;;  %v5880_v26 = vor.u32 %v7393_v14, %v5877_v17  ;;  %v7435_v32 = vld [vmem:[#allocation13 + $0x2b4] sm:$0xf]  ;;  %v6045_v33 = vld [vmem:[#allocation13 + $0x2c8] sm:$0xf0] }
 0x38f   :  { %v5997_v61 = vld [vmem:[#allocation13 + $0x268] sm:$0xf0]  ;;  %v5755_v12 = vld [vmem:[#allocation13 + $0x70] sm:$0xf]  ;;  %v7366_v13 = vld [vmem:[#allocation13 + $0x84] sm:$0xf0] }
 0x390   :  { %1748 = vmatpush.bf16.msra.mxu2 %v5720_v21  ;;  %1761 = vmatpush.bf16.msra.mxu3 %v5912_v28  ;;  %v7419_v21 = vld [vmem:[#allocation13 + $0x22c] sm:$0xf0]  ;;  %v7414_v17 = vld [vmem:[#allocation13 + $0x204] sm:$0xf0] }
 0x391   :  { %v5964_v28 = vor.u32 %v7419_v21, %v5963_v20 }
 0x392   :  { %1769 = vmatpush.bf16.msrb.mxu0 %v5844_v51  ;;  %1783 = vmatpush.bf16.msrb.mxu1 %v6012_v4  ;;  %v5917_v51 = vld [vmem:[#allocation13 + $0x1d0] sm:$0xf0] }
 0x393   :  { %v5920_v52 = vor.u32 %v7404_v50, %v5917_v51 }
 0x394   :  { %1749 = vmatpush.bf16.msra.mxu2 %v5696_v37  ;;  %1762 = vmatpush.bf16.msra.mxu3 %v5888_v43  ;;  %v7410_v37 = vld [vmem:[#allocation13 + $0x1ec] sm:$0xf]  ;;  %v5723_v43 = vld [vmem:[#allocation13 + $0x38] sm:$0xf] }
 0x395   :  { %v5944_v42 = vor.u32 %v7410_v37, %v5941_v38  ;;  %v7384_v37 = vld [vmem:[#allocation13 + $0x114] sm:$0xf0] }
 0x396   :  { %1770 = vmatpush.bf16.msrb.mxu0 %v5820_v54  ;;  %1784 = vmatpush.bf16.msrb.mxu1 %v5988_v16  ;;  %v5893_v54 = vld [vmem:[#allocation13 + $0x1a0] sm:$0xf0] }
 0x397   :  { %v5896_v4 = vor.u32 %v7398_v3, %v5893_v54 }
 0x398   :  { %1794 = vmatpush.bf16.msrb.mxu2 %v5872_v34  ;;  %1807 = vmatpush.bf16.msrb.mxu3 %v6064_v46  ;;  %v7359_v34 = vld [vmem:[#allocation13 + $0x4c] sm:$0xf0]  ;;  %v7356_v46 = vld [vmem:[#allocation13 + $0x3c] sm:$0xf] }
 0x399   :  { %v5724_v44 = vor.u32 %v7359_v34, %v5723_v43  ;;  %v5728_v49 = vor.u32 %v7356_v46, %v5725_v47  ;;  %v7432_v43 = vld [vmem:[#allocation13 + $0x294] sm:$0xf0]  ;;  %v7381_v34 = vld [vmem:[#allocation13 + $0x104] sm:$0xf]  ;;  %v5828_v46 = vor.u32 %v7384_v37, %v5827_v36  ;;  %v5707_v36 = vld [vmem:[#allocation13 + $0x10] sm:$0xf] }
 0x39a   :  { %1771 = vmatpush.bf16.msrb.mxu0 %v5796_v15  ;;  %1785 = vmatpush.bf16.msrb.mxu1 %v5964_v28  ;;  %v6043_v28 = vld [vmem:[#allocation13 + $0x2b0] sm:$0xf]  ;;  %v5832_v50 = vor.u32 %v7381_v34, %v5829_v7  ;;  %v7351_v34 = vld [vmem:[#allocation13 + $0x14] sm:$0xf]  ;;  %v5709_v7 = vld [vmem:[#allocation13 + $0x28] sm:$0xf0] }
 0x39b   :  { %v6044_v35 = vor.u32 %v7438_v29, %v6043_v28 }
 0x39c   :  { %1795 = vmatpush.bf16.msrb.mxu2 %v5848_v56  ;;  %1808 = vmatpush.bf16.msrb.mxu3 %v6040_v62  ;;  %v7353_v56 = vld [vmem:[#allocation13 + $0x1c] sm:$0xf0]  ;;  %v7350_v62 = vld [vmem:[#allocation13 + $0xc] sm:$0xf] }
 0x39d   :  { %v5700_v59 = vor.u32 %v7353_v56, %v5699_v53  ;;  %v5704_v2 = vor.u32 %v7350_v62, %v5701_v63  ;;  %v7426_v53 = vld [vmem:[#allocation13 + $0x264] sm:$0xf0]  ;;  %v7375_v56 = vld [vmem:[#allocation13 + $0xd4] sm:$0xf] }
 0x39e   :  { %1772 = vmatpush.bf16.msrb.mxu0 %v5772_v27  ;;  %1786 = vmatpush.bf16.msrb.mxu1 %v5940_v40  ;;  %v5808_v3 = vor.u32 %v7375_v56, %v5805_v58  ;;  %v7535_v56 = vld [vmem:[#allocation14 + $0x2d4] sm:$0xf]  ;;  %v6437_v58 = vld [vmem:[#allocation14 + $0x2e8] sm:$0xf0] }
 0x3a0   :  { %1796 = vmatpush.bf16.msrb.mxu2 %v5824_v6  ;;  %1809 = vmatpush.bf16.msrb.mxu3 %v6016_v8  ;;  %v758_v6 = vperm.slane %v756_v5, 0  ;;  %v7420_v5 = vld [vmem:[#allocation13 + $0x234] sm:$0xf0] }
 0x3a2   :  { %1773 = vmatpush.bf16.msrb.mxu0 %v5748_v39  ;;  %1787 = vmatpush.bf16.msrb.mxu1 %v5916_v48  ;;  %v5803_v48 = vld [vmem:[#allocation13 + $0xd0] sm:$0xf] }
 0x3a4   :  { %1797 = vmatpush.bf16.msrb.mxu2 %v5800_v18  ;;  %1810 = vmatpush.bf16.msrb.mxu3 %v5992_v22  ;;  %v7441_v18 = vld [vmem:[#allocation13 + $0x2e4] sm:$0xf]  ;;  %v5876_v22 = vor.u32 %v7396_v11, %v5875_v10  ;;  %v5973_v11 = vld [vmem:[#allocation13 + $0x238] sm:$0xf0] }
 0x3a5   :  { %v6072_v27 = vor.u32 %v7441_v18, %v6069_v19  ;;  %v7417_v10 = vld [vmem:[#allocation13 + $0x224] sm:$0xf]  ;;  %v7363_v18 = vld [vmem:[#allocation13 + $0x74] sm:$0xf]  ;;  %v5757_v19 = vld [vmem:[#allocation13 + $0x88] sm:$0xf0] }
 0x3a6   :  { %1774 = vmatpush.bf16.msrb.mxu0 %v5724_v44  ;;  %1788 = vmatpush.bf16.msrb.mxu1 %v5892_v0  ;;  %v7429_v44 = vld [vmem:[#allocation13 + $0x284] sm:$0xf]  ;;  %v5779_v0 = vld [vmem:[#allocation13 + $0xa0] sm:$0xf]  ;;  %v5760_v28 = vor.u32 %v7363_v18, %v5757_v19  ;;  %v7475_v18 = vld [vmem:[#allocation14 + $0xf4] sm:$0xf] }
 0x3a7   :  { %v6024_v51 = vor.u32 %v7429_v44, %v6021_v45  ;;  %v7399_v44 = vld [vmem:[#allocation13 + $0x194] sm:$0xf]  ;;  %v5901_v45 = vld [vmem:[#allocation13 + $0x1a8] sm:$0xf0] }
 0x3a8   :  { %1798 = vmatpush.bf16.msrb.mxu2 %v5776_v30  ;;  %1811 = vmatpush.bf16.msrb.mxu3 %v5968_v1  ;;  %v7387_v30 = vld [vmem:[#allocation13 + $0x134] sm:$0xf]  ;;  %v5852_v1 = vor.u32 %v7390_v24, %v5851_v60  ;;  %v5756_v60 = vor.u32 %v7366_v13, %v5755_v12  ;;  %v6195_v12 = vld [vmem:[#allocation14 + $0xf0] sm:$0xf]  ;;  %v7478_v13 = vld [vmem:[#allocation14 + $0x104] sm:$0xf0] }
 0x3a9   :  { %v5856_v40 = vor.u32 %v7387_v30, %v5853_v31  ;;  %v5923_v30 = vld [vmem:[#allocation13 + $0x1c0] sm:$0xf]  ;;  %v7408_v31 = vld [vmem:[#allocation13 + $0x1d4] sm:$0xf0]  ;;  %v6197_v19 = vld [vmem:[#allocation14 + $0x108] sm:$0xf0] }
 0x3aa   :  { %1775 = vmatpush.bf16.msrb.mxu0 %v5700_v59  ;;  %v7423_v59 = vld [vmem:[#allocation13 + $0x254] sm:$0xf] }
 0x3ab   :  { %v6000_v54 = vor.u32 %v7423_v59, %v5997_v61  ;;  %v5712_v59 = vor.u32 %v7351_v34, %v5709_v7  ;;  %v5904_v61 = vor.u32 %v7399_v44, %v5901_v45  ;;  %v7463_v34 = vld [vmem:[#allocation14 + $0x94] sm:$0xf]  ;;  %v6149_v7 = vld [vmem:[#allocation14 + $0xa8] sm:$0xf0] }
 0x3ac   :  { %1799 = vmatpush.bf16.msrb.mxu2 %v5752_v41  ;;  %1812 = vmatpush.bf16.msrb.mxu3 %v5944_v42  ;;  %v6048_v41 = vor.u32 %v7435_v32, %v6045_v33  ;;  %v6019_v42 = vld [vmem:[#allocation13 + $0x280] sm:$0xf]  ;;  %v7357_v32 = vld [vmem:[#allocation13 + $0x44] sm:$0xf]  ;;  %v5733_v33 = vld [vmem:[#allocation13 + $0x58] sm:$0xf0] }
 0x3ad   :  { %v6020_v47 = vor.u32 %v7432_v43, %v6019_v42  ;;  %v5736_v42 = vor.u32 %v7357_v32, %v5733_v33  ;;  %v7469_v32 = vld [vmem:[#allocation14 + $0xc4] sm:$0xf]  ;;  %v6173_v33 = vld [vmem:[#allocation14 + $0xd8] sm:$0xf0]  ;;  %v7511_v44 = vld [vmem:[#allocation14 + $0x214] sm:$0xf] }
 0x3ae   :  { %v6341_v45 = vld [vmem:[#allocation14 + $0x228] sm:$0xf0] }
 0x3b0   :  { %1800 = vmatpush.bf16.msrb.mxu2 %v5728_v49  ;;  %1813 = vmatpush.bf16.msrb.mxu3 %v5920_v52  ;;  %v7378_v49 = vld [vmem:[#allocation13 + $0xe4] sm:$0xf0]  ;;  %v5995_v52 = vld [vmem:[#allocation13 + $0x250] sm:$0xf] }
 0x3b1   :  { %v5804_v62 = vor.u32 %v7378_v49, %v5803_v48  ;;  %v5996_v63 = vor.u32 %v7426_v53, %v5995_v52  ;;  %v6435_v48 = vld [vmem:[#allocation14 + $0x2d0] sm:$0xf]  ;;  %v7538_v49 = vld [vmem:[#allocation14 + $0x2e4] sm:$0xf0]  ;;  %v6245_v53 = vld [vmem:[#allocation14 + $0x168] sm:$0xf0] }
 0x3b4   :  { %1801 = vmatpush.bf16.msrb.mxu2 %v5704_v2  ;;  %1814 = vmatpush.bf16.msrb.mxu3 %v5896_v4  ;;  %v7372_v2 = vld [vmem:[#allocation13 + $0xb4] sm:$0xf0]  ;;  %v5971_v4 = vld [vmem:[#allocation13 + $0x220] sm:$0xf] }
 0x3fa   :  { %v851_v8 = vpop.f32.mrf.mxu2  ;;  %v864_v57 = vpop.f32.mrf.mxu3 }
 0x3fb   :  { %v852_v15 = vadd.f32 %v851_v8, %v758_v6  ;;  %v865_v16 = vadd.f32 %v864_v57, %v759_v9  ;;  %v7369_v6 = vld [vmem:[#allocation13 + $0xa4] sm:$0xf]  ;;  %v5781_v9 = vld [vmem:[#allocation13 + $0xb8] sm:$0xf0]  ;;  %v5780_v8 = vor.u32 %v7372_v2, %v5779_v0  ;;  %v5972_v57 = vor.u32 %v7420_v5, %v5971_v4  ;;  %v6219_v0 = vld [vmem:[#allocation14 + $0x120] sm:$0xf] }
 0x3fc   :  { %v5784_v14 = vor.u32 %v7369_v6, %v5781_v9  ;;  %v7484_v2 = vld [vmem:[#allocation14 + $0x134] sm:$0xf0]  ;;  %v6411_v4 = vld [vmem:[#allocation14 + $0x2a0] sm:$0xf]  ;;  %v7481_v6 = vld [vmem:[#allocation14 + $0x124] sm:$0xf] }
 0x3fd   :  { %v8678_v20 = vpack.c.bf16 %v852_v15, %v852_v15  ;;  %v8680_v21 = vpack.c.bf16 %v865_v16, %v865_v16  ;;  %v5976_v15 = vor.u32 %v7417_v10, %v5973_v11  ;;  %v5947_v16 = vld [vmem:[#allocation13 + $0x1f0] sm:$0xf]  ;;  %v7532_v5 = vld [vmem:[#allocation14 + $0x2b4] sm:$0xf0]  ;;  %v6221_v9 = vld [vmem:[#allocation14 + $0x138] sm:$0xf0] }
 0x3fe   :  { %v5948_v24 = vor.u32 %v7414_v17, %v5947_v16  ;;  %v7529_v10 = vld [vmem:[#allocation14 + $0x2a4] sm:$0xf]  ;;  %v6413_v11 = vld [vmem:[#allocation14 + $0x2b8] sm:$0xf0]  ;;  %v6387_v16 = vld [vmem:[#allocation14 + $0x270] sm:$0xf] }
 0x3ff   :  { %1724 = vmatmul.bf16.vlgmr.msra.gmra.mxu0 %v8678_v20  ;;  %1737 = vmatmul.bf16.vlgmr.msra.gmra.mxu1 %v8680_v21  ;;  %v7526_v17 = vld [vmem:[#allocation14 + $0x284] sm:$0xf0] }
 0x400   :  { %1750 = vmatmul.bf16.vlgmr.msra.gmra.mxu2 %v8678_v20  ;;  %1763 = vmatmul.bf16.vlgmr.msra.gmra.mxu3 %v8680_v21 }
 0x401   :  { %1820 = vmatpush.bf16.msra.mxu0 %v5876_v22  ;;  %1833 = vmatpush.bf16.msra.mxu1 %v6068_v23  ;;  %v7411_v22 = vld [vmem:[#allocation13 + $0x1f4] sm:$0xf]  ;;  %v5949_v23 = vld [vmem:[#allocation13 + $0x208] sm:$0xf0] }
 0x402   :  { %1846 = vmatpush.bf16.msra.mxu2 %v5880_v26  ;;  %1859 = vmatpush.bf16.msra.mxu3 %v6072_v27  ;;  %v853_v38 = vpop.f32.mrf.mxu2  ;;  %v866_v39 = vpop.f32.mrf.mxu3  ;;  %v5731_v26 = vld [vmem:[#allocation13 + $0x40] sm:$0xf]  ;;  %v7360_v27 = vld [vmem:[#allocation13 + $0x54] sm:$0xf0]  ;;  %v5952_v29 = vor.u32 %v7411_v22, %v5949_v23  ;;  %v7523_v22 = vld [vmem:[#allocation14 + $0x274] sm:$0xf] }
 0x403   :  { %v5732_v37 = vor.u32 %v7360_v27, %v5731_v26  ;;  %v5924_v38 = vor.u32 %v7408_v31, %v5923_v30  ;;  %v7354_v39 = vld [vmem:[#allocation13 + $0x24] sm:$0xf0]  ;;  %v6389_v23 = vld [vmem:[#allocation14 + $0x288] sm:$0xf0]  ;;  %v6171_v26 = vld [vmem:[#allocation14 + $0xc0] sm:$0xf] }
 0x404   :  { %v7472_v27 = vld [vmem:[#allocation14 + $0xd4] sm:$0xf0]  ;;  %v6363_v30 = vld [vmem:[#allocation14 + $0x240] sm:$0xf] }
 0x405   :  { %1821 = vmatpush.bf16.msra.mxu0 %v5852_v1  ;;  %1834 = vmatpush.bf16.msra.mxu1 %v6044_v35  ;;  %v7405_v1 = vld [vmem:[#allocation13 + $0x1c4] sm:$0xf]  ;;  %v5925_v35 = vld [vmem:[#allocation13 + $0x1d8] sm:$0xf0]  ;;  %v7520_v31 = vld [vmem:[#allocation14 + $0x254] sm:$0xf0] }
 0x406   :  { %1847 = vmatpush.bf16.msra.mxu2 %v5856_v40  ;;  %1860 = vmatpush.bf16.msra.mxu3 %v6048_v41  ;;  %v5899_v40 = vld [vmem:[#allocation13 + $0x190] sm:$0xf]  ;;  %v7402_v41 = vld [vmem:[#allocation13 + $0x1a4] sm:$0xf0]  ;;  %v5928_v43 = vor.u32 %v7405_v1, %v5925_v35  ;;  %v7517_v1 = vld [vmem:[#allocation14 + $0x244] sm:$0xf] }
 0x407   :  { %v5900_v52 = vor.u32 %v7402_v41, %v5899_v40  ;;  %v6365_v35 = vld [vmem:[#allocation14 + $0x258] sm:$0xf0]  ;;  %v6176_v40 = vor.u32 %v7469_v32, %v6173_v33  ;;  %v7445_v32 = vld [vmem:[#allocation14 + $0x4] sm:$0xf] }
 0x408   :  { %v6368_v41 = vor.u32 %v7517_v1, %v6365_v35  ;;  %v6077_v33 = vld [vmem:[#allocation14 + $0x18] sm:$0xf0]  ;;  %v7493_v1 = vld [vmem:[#allocation14 + $0x184] sm:$0xf] }
 0x409   :  { %1822 = vmatpush.bf16.msra.mxu0 %v5828_v46  ;;  %1835 = vmatpush.bf16.msra.mxu1 %v6020_v47  ;;  %v6243_v46 = vld [vmem:[#allocation14 + $0x150] sm:$0xf]  ;;  %v7490_v47 = vld [vmem:[#allocation14 + $0x164] sm:$0xf0] }
 0x40a   :  { %1848 = vmatpush.bf16.msra.mxu2 %v5832_v50  ;;  %1861 = vmatpush.bf16.msra.mxu3 %v6024_v51  ;;  %v7487_v50 = vld [vmem:[#allocation14 + $0x154] sm:$0xf]  ;;  %v5708_v51 = vor.u32 %v7354_v39, %v5707_v36  ;;  %v1077_v36 = vpop.f32.mrf.mxu0  ;;  %v1105_v39 = vpop.f32.mrf.mxu2 }
 0x40d   :  { %1823 = vmatpush.bf16.msra.mxu0 %v5804_v62  ;;  %1836 = vmatpush.bf16.msra.mxu1 %v5996_v63  ;;  %v6244_v62 = vor.u32 %v7490_v47, %v6243_v46  ;;  %v6436_v63 = vor.u32 %v7538_v49, %v6435_v48  ;;  %v8694_v46 = vpop.f32.mrf.mxu1  ;;  %v902_v47 = vld [vmem:[#allocation11] sm:$0x3] }
 0x40e   :  { %1849 = vmatpush.bf16.msra.mxu2 %v5808_v3  ;;  %1862 = vmatpush.bf16.msra.mxu3 %v6000_v54  ;;  %v6248_v3 = vor.u32 %v7487_v50, %v6245_v53  ;;  %v6440_v54 = vor.u32 %v7535_v56, %v6437_v58  ;;  %v1119_v50 = vpop.f32.mrf.mxu3  ;;  %v6152_v53 = vor.u32 %v7463_v34, %v6149_v7  ;;  %v6315_v58 = vld [vmem:[#allocation14 + $0x1e0] sm:$0xf]  ;;  %v6253_v7 = vld [vmem:[#allocation14 + $0x170] sm:$0xf0] }
 0x40f   :  { %1776 = vmatmul.bf16.vlgmr.msrb.gmra.mxu0 %v8678_v20  ;;  %1789 = vmatmul.bf16.vlgmr.msrb.gmra.mxu1 %v8680_v21  ;;  %v6344_v56 = vor.u32 %v7511_v44, %v6341_v45  ;;  %v7536_v44 = vld [vmem:[#allocation14 + $0x2dc] sm:$0xf]  ;;  %v6445_v45 = vld [vmem:[#allocation14 + $0x2f0] sm:$0xf0] }
 0x410   :  { %1802 = vmatmul.bf16.vlgmr.msrb.gmra.mxu2 %v8678_v20  ;;  %1815 = vmatmul.bf16.vlgmr.msrb.gmra.mxu3 %v8680_v21 }
 0x411   :  { %1824 = vmatpush.bf16.msra.mxu0 %v5780_v8  ;;  %1837 = vmatpush.bf16.msra.mxu1 %v5972_v57  ;;  %v6220_v8 = vor.u32 %v7484_v2, %v6219_v0  ;;  %v6412_v57 = vor.u32 %v7532_v5, %v6411_v4  ;;  %v6317_v0 = vld [vmem:[#allocation14 + $0x1f8] sm:$0xf0]  ;;  %v904_v2 = vperm.slane %v902_v47, 0  ;;  %v6099_v5 = vld [vmem:[#allocation14 + $0x30] sm:$0xf] }
 0x412   :  { %1850 = vmatpush.bf16.msra.mxu2 %v5784_v14  ;;  %1863 = vmatpush.bf16.msra.mxu3 %v5976_v15  ;;  %v6224_v14 = vor.u32 %v7481_v6, %v6221_v9  ;;  %v6416_v15 = vor.u32 %v7529_v10, %v6413_v11  ;;  %v7454_v6 = vld [vmem:[#allocation14 + $0x44] sm:$0xf0]  ;;  %v1079_v11 = vpop.f32.mrf.mxu0 }
 0x415   :  { %1825 = vmatpush.bf16.msra.mxu0 %v5756_v60  ;;  %1838 = vmatpush.bf16.msra.mxu1 %v5948_v24  ;;  %v6196_v60 = vor.u32 %v7478_v13, %v6195_v12  ;;  %v6388_v24 = vor.u32 %v7526_v17, %v6387_v16  ;;  %v7451_v12 = vld [vmem:[#allocation14 + $0x34] sm:$0xf]  ;;  %v6101_v13 = vld [vmem:[#allocation14 + $0x48] sm:$0xf0]  ;;  %v1107_v16 = vpop.f32.mrf.mxu2  ;;  %v1078_v17 = vadd.f32 %v1077_v36, %v904_v2  ;;  %v6269_v36 = vld [vmem:[#allocation14 + $0x198] sm:$0xf0] }
 0x416   :  { %1851 = vmatpush.bf16.msra.mxu2 %v5760_v28  ;;  %1864 = vmatpush.bf16.msra.mxu3 %v5952_v29  ;;  %v6200_v28 = vor.u32 %v7475_v18, %v6197_v19  ;;  %v6392_v29 = vor.u32 %v7523_v22, %v6389_v23  ;;  %v6075_v19 = vld [vmem:[#allocation14] sm:$0xf]  ;;  %v1080_v22 = vadd.f32 %v1079_v11, %v904_v2  ;;  %v1121_v35 = vpop.f32.mrf.mxu3  ;;  %v6421_v2 = vld [vmem:[#allocation14 + $0x2c0] sm:$0xf0]  ;;  %v6395_v11 = vld [vmem:[#allocation14 + $0x278] sm:$0xf] }
 0x417   :  { %v6100_v23 = vor.u32 %v7454_v6, %v6099_v5  ;;  %v6203_v5 = vld [vmem:[#allocation14 + $0xf8] sm:$0xf]  ;;  %v7479_v6 = vld [vmem:[#allocation14 + $0x10c] sm:$0xf0] }
 0x419   :  { %1826 = vmatpush.bf16.msra.mxu0 %v5732_v37  ;;  %1839 = vmatpush.bf16.msra.mxu1 %v5924_v38  ;;  %v6147_v37 = vld [vmem:[#allocation14 + $0x90] sm:$0xf]  ;;  %v7466_v38 = vld [vmem:[#allocation14 + $0xa4] sm:$0xf0] }
 0x41a   :  { %1852 = vmatpush.bf16.msra.mxu2 %v5736_v42  ;;  %1865 = vmatpush.bf16.msra.mxu3 %v5928_v43  ;;  %v6339_v42 = vld [vmem:[#allocation14 + $0x210] sm:$0xf]  ;;  %v7514_v43 = vld [vmem:[#allocation14 + $0x224] sm:$0xf0]  ;;  %v6148_v48 = vor.u32 %v7466_v38, %v6147_v37  ;;  %v1092_v37 = vadd.f32 %v8694_v46, %v1078_v17 }
 0x41b   :  { %v6340_v49 = vor.u32 %v7514_v43, %v6339_v42  ;;  %v6227_v46 = vld [vmem:[#allocation14 + $0x128] sm:$0xf] }
 0x41c   :  { %v6179_v17 = vld [vmem:[#allocation14 + $0xc8] sm:$0xf] }
 0x41d   :  { %1827 = vmatpush.bf16.msra.mxu0 %v5708_v51  ;;  %1840 = vmatpush.bf16.msra.mxu1 %v5900_v52  ;;  %v6123_v51 = vld [vmem:[#allocation14 + $0x60] sm:$0xf]  ;;  %v7460_v52 = vld [vmem:[#allocation14 + $0x74] sm:$0xf0] }
 0x41e   :  { %1853 = vmatpush.bf16.msra.mxu2 %v5712_v59  ;;  %1866 = vmatpush.bf16.msra.mxu3 %v5904_v61  ;;  %v7508_v59 = vld [vmem:[#allocation14 + $0x1f4] sm:$0xf0]  ;;  %v7457_v61 = vld [vmem:[#allocation14 + $0x64] sm:$0xf] }
 0x41f   :  { %v6316_v4 = vor.u32 %v7508_v59, %v6315_v58  ;;  %v6419_v58 = vld [vmem:[#allocation14 + $0x2a8] sm:$0xf]  ;;  %v7533_v59 = vld [vmem:[#allocation14 + $0x2bc] sm:$0xf0] }
 0x420   :  { %1828 = vmatmul.bf16.vlgmr.msra.gmra.mxu0 %v8678_v20  ;;  %1841 = vmatmul.bf16.vlgmr.msra.gmra.mxu1 %v8680_v21 }
 0x421   :  { %2464 = vmatpush.bf16.msrb.mxu0 %v6244_v62  ;;  %2478 = vmatpush.bf16.msrb.mxu1 %v6436_v63  ;;  %v6125_v62 = vld [vmem:[#allocation14 + $0x78] sm:$0xf0]  ;;  %v7505_v63 = vld [vmem:[#allocation14 + $0x1e4] sm:$0xf] }
 0x422   :  { %2492 = vmatpush.bf16.msrb.mxu2 %v6248_v3  ;;  %2506 = vmatpush.bf16.msrb.mxu3 %v6440_v54  ;;  %v905_v3 = vperm.slane %v902_v47, 1  ;;  %v6124_v54 = vor.u32 %v7460_v52, %v6123_v51  ;;  %v6128_v9 = vor.u32 %v7457_v61, %v6125_v62  ;;  %v6320_v10 = vor.u32 %v7505_v63, %v6317_v0  ;;  %v7482_v61 = vld [vmem:[#allocation14 + $0x12c] sm:$0xf]  ;;  %v6229_v63 = vld [vmem:[#allocation14 + $0x140] sm:$0xf0] }
 0x423   :  { %1854 = vmatmul.bf16.vlgmr.msra.gmra.mxu2 %v8678_v20  ;;  %1867 = vmatmul.bf16.vlgmr.msra.gmra.mxu3 %v8680_v21  ;;  %v6172_v20 = vor.u32 %v7472_v27, %v6171_v26  ;;  %v6364_v21 = vor.u32 %v7520_v31, %v6363_v30  ;;  %v6267_v26 = vld [vmem:[#allocation14 + $0x180] sm:$0xf]  ;;  %v7496_v27 = vld [vmem:[#allocation14 + $0x194] sm:$0xf0]  ;;  %v1093_v30 = vpop.f32.mrf.mxu1  ;;  %v7530_v0 = vld [vmem:[#allocation14 + $0x2ac] sm:$0xf] }
 0x424   :  { %v1106_v18 = vadd.f32 %v1105_v39, %v905_v3  ;;  %v1108_v31 = vadd.f32 %v1107_v16, %v905_v3  ;;  %v6443_v39 = vld [vmem:[#allocation14 + $0x2d8] sm:$0xf]  ;;  %v1094_v42 = vadd.f32 %v1093_v30, %v1080_v22  ;;  %v6268_v34 = vor.u32 %v7496_v27, %v6267_v26  ;;  %v6181_v26 = vld [vmem:[#allocation14 + $0xe0] sm:$0xf0]  ;;  %v7518_v27 = vld [vmem:[#allocation14 + $0x24c] sm:$0xf] }
 0x425   :  { %2465 = vmatpush.bf16.msrb.mxu0 %v6220_v8  ;;  %2479 = vmatpush.bf16.msrb.mxu1 %v6412_v57  ;;  %v6291_v8 = vld [vmem:[#allocation14 + $0x1b0] sm:$0xf]  ;;  %v7502_v57 = vld [vmem:[#allocation14 + $0x1c4] sm:$0xf0] }
 0x426   :  { %2493 = vmatpush.bf16.msrb.mxu2 %v6224_v14  ;;  %2507 = vmatpush.bf16.msrb.mxu3 %v6416_v15  ;;  %v7499_v14 = vld [vmem:[#allocation14 + $0x1b4] sm:$0xf]  ;;  %v6293_v15 = vld [vmem:[#allocation14 + $0x1c8] sm:$0xf0]  ;;  %v1120_v38 = vadd.f32 %v1119_v50, %v1106_v18  ;;  %v1122_v47 = vadd.f32 %v1121_v35, %v1108_v31  ;;  %v7485_v50 = vld [vmem:[#allocation14 + $0x13c] sm:$0xf0]  ;;  %v8697_v62 = vpack.c.bf16 %v1094_v42, %v1092_v37 }
 0x427   :  { %v7473_v18 = vld [vmem:[#allocation14 + $0xdc] sm:$0xf0]  ;;  %v6155_v31 = vld [vmem:[#allocation14 + $0x98] sm:$0xf]  ;;  %v7512_v37 = vld [vmem:[#allocation14 + $0x21c] sm:$0xf] }
 0x428   :  { %v8699_v3 = vpack.c.bf16 %v1122_v47, %v1120_v38  ;;  %v6347_v35 = vld [vmem:[#allocation14 + $0x218] sm:$0xf]  ;;  %v6349_v38 = vld [vmem:[#allocation14 + $0x230] sm:$0xf0]  ;;  %v7461_v42 = vld [vmem:[#allocation14 + $0x7c] sm:$0xf0] }
 0x429   :  { %2466 = vmatpush.bf16.msrb.mxu0 %v6196_v60  ;;  %2480 = vmatpush.bf16.msrb.mxu1 %v6388_v24  ;;  %v6292_v60 = vor.u32 %v7502_v57, %v6291_v8  ;;  %v7448_v24 = vld [vmem:[#allocation14 + $0x14] sm:$0xf0]  ;;  %v7527_v8 = vld [vmem:[#allocation14 + $0x28c] sm:$0xf0]  ;;  %v7476_v57 = vld [vmem:[#allocation14 + $0xfc] sm:$0xf] }
 0x42a   :  { %2494 = vmatpush.bf16.msrb.mxu2 %v6200_v28  ;;  %2508 = vmatpush.bf16.msrb.mxu3 %v6392_v29  ;;  %v6104_v28 = vor.u32 %v7451_v12, %v6101_v13  ;;  %v6296_v29 = vor.u32 %v7499_v14, %v6293_v15  ;;  %v6076_v43 = vor.u32 %v7448_v24, %v6075_v19  ;;  %v6205_v12 = vld [vmem:[#allocation14 + $0x110] sm:$0xf0]  ;;  %v7524_v13 = vld [vmem:[#allocation14 + $0x27c] sm:$0xf]  ;;  %v7470_v24 = vld [vmem:[#allocation14 + $0xcc] sm:$0xf] }
 0x42b   :  { %v6397_v14 = vld [vmem:[#allocation14 + $0x290] sm:$0xf0]  ;;  %v6204_v15 = vor.u32 %v7479_v6, %v6203_v5  ;;  %v6396_v16 = vor.u32 %v7527_v8, %v6395_v11  ;;  %v6208_v19 = vor.u32 %v7476_v57, %v6205_v12  ;;  %v6133_v47 = vld [vmem:[#allocation14 + $0x80] sm:$0xf0]  ;;  %v7449_v6 = vld [vmem:[#allocation14 + $0x1c] sm:$0xf0] }
 0x42c   :  { %v6400_v22 = vor.u32 %v7524_v13, %v6397_v14  ;;  %v7446_v57 = vld [vmem:[#allocation14 + $0xc] sm:$0xf]  ;;  %v6085_v12 = vld [vmem:[#allocation14 + $0x20] sm:$0xf0] }
 0x42d   :  { %2467 = vmatpush.bf16.msrb.mxu0 %v6172_v20  ;;  %2481 = vmatpush.bf16.msrb.mxu1 %v6364_v21  ;;  %v6251_v20 = vld [vmem:[#allocation14 + $0x158] sm:$0xf]  ;;  %v7491_v21 = vld [vmem:[#allocation14 + $0x16c] sm:$0xf0]  ;;  %v7494_v13 = vld [vmem:[#allocation14 + $0x18c] sm:$0xf] }
 0x42e   :  { %2495 = vmatpush.bf16.msrb.mxu2 %v6176_v40  ;;  %2509 = vmatpush.bf16.msrb.mxu3 %v6368_v41  ;;  %v7539_v40 = vld [vmem:[#allocation14 + $0x2ec] sm:$0xf0]  ;;  %v7488_v41 = vld [vmem:[#allocation14 + $0x15c] sm:$0xf]  ;;  %v6252_v51 = vor.u32 %v7491_v21, %v6251_v20  ;;  %v6157_v21 = vld [vmem:[#allocation14 + $0xb0] sm:$0xf0] }
 0x42f   :  { %v6444_v52 = vor.u32 %v7539_v40, %v6443_v39  ;;  %v7464_v20 = vld [vmem:[#allocation14 + $0x9c] sm:$0xf]  ;;  %v6277_v14 = vld [vmem:[#allocation14 + $0x1a0] sm:$0xf0] }
 0x431   :  { %2468 = vmatpush.bf16.msrb.mxu0 %v6148_v48  ;;  %2482 = vmatpush.bf16.msrb.mxu1 %v6340_v49  ;;  %v6080_v48 = vor.u32 %v7445_v32, %v6077_v33  ;;  %v6272_v49 = vor.u32 %v7493_v1, %v6269_v36  ;;  %v7467_v32 = vld [vmem:[#allocation14 + $0xac] sm:$0xf0]  ;;  %v6184_v33 = vor.u32 %v7470_v24, %v6181_v26  ;;  %v7537_v24 = vld [vmem:[#allocation14 + $0x2e4] sm:$0xf]  ;;  %v6453_v26 = vld [vmem:[#allocation14 + $0x2f8] sm:$0xf0] }
 0x432   :  { %2496 = vmatpush.bf16.msrb.mxu2 %v6152_v53  ;;  %2510 = vmatpush.bf16.msrb.mxu3 %v6344_v56  ;;  %v6256_v53 = vor.u32 %v7488_v41, %v6253_v7  ;;  %v6448_v56 = vor.u32 %v7536_v44, %v6445_v45  ;;  %v7515_v36 = vld [vmem:[#allocation14 + $0x22c] sm:$0xf0]  ;;  %v6156_v39 = vor.u32 %v7467_v32, %v6155_v31  ;;  %v6131_v41 = vld [vmem:[#allocation14 + $0x68] sm:$0xf]  ;;  %v7509_v44 = vld [vmem:[#allocation14 + $0x1fc] sm:$0xf0] }
 0x433   :  { %v6348_v40 = vor.u32 %v7515_v36, %v6347_v35  ;;  %v6323_v7 = vld [vmem:[#allocation14 + $0x1e8] sm:$0xf]  ;;  %v7458_v45 = vld [vmem:[#allocation14 + $0x6c] sm:$0xf]  ;;  %v6235_v31 = vld [vmem:[#allocation14 + $0x130] sm:$0xf] }
 0x434   :  { %v7486_v32 = vld [vmem:[#allocation14 + $0x144] sm:$0xf0]  ;;  %v6427_v35 = vld [vmem:[#allocation14 + $0x2b0] sm:$0xf] }
 0x435   :  { %2469 = vmatpush.bf16.msrb.mxu0 %v6124_v54  ;;  %2483 = vmatpush.bf16.msrb.mxu1 %v6316_v4  ;;  %v6228_v54 = vor.u32 %v7485_v50, %v6227_v46  ;;  %v6420_v4 = vor.u32 %v7533_v59, %v6419_v58  ;;  %v6107_v46 = vld [vmem:[#allocation14 + $0x38] sm:$0xf]  ;;  %v7455_v50 = vld [vmem:[#allocation14 + $0x4c] sm:$0xf0]  ;;  %v7534_v36 = vld [vmem:[#allocation14 + $0x2c4] sm:$0xf0] }
 0x436   :  { %2497 = vmatpush.bf16.msrb.mxu2 %v6128_v9  ;;  %2511 = vmatpush.bf16.msrb.mxu3 %v6320_v10  ;;  %v6232_v9 = vor.u32 %v7482_v61, %v6229_v63  ;;  %v6424_v10 = vor.u32 %v7530_v0, %v6421_v2  ;;  %v6299_v58 = vld [vmem:[#allocation14 + $0x1b8] sm:$0xf]  ;;  %v7503_v59 = vld [vmem:[#allocation14 + $0x1cc] sm:$0xf0]  ;;  %v7452_v61 = vld [vmem:[#allocation14 + $0x3c] sm:$0xf] }
 0x437   :  { %v6109_v63 = vld [vmem:[#allocation14 + $0x50] sm:$0xf0]  ;;  %v7500_v0 = vld [vmem:[#allocation14 + $0x1bc] sm:$0xf]  ;;  %v6300_v5 = vor.u32 %v7503_v59, %v6299_v58  ;;  %v6379_v58 = vld [vmem:[#allocation14 + $0x250] sm:$0xf] }
 0x438   :  { %v6301_v2 = vld [vmem:[#allocation14 + $0x1d0] sm:$0xf0]  ;;  %v6112_v11 = vor.u32 %v7452_v61, %v6109_v63  ;;  %v7522_v59 = vld [vmem:[#allocation14 + $0x264] sm:$0xf0]  ;;  %v6189_v63 = vld [vmem:[#allocation14 + $0xe8] sm:$0xf0] }
 0x439   :  { %2470 = vmatpush.bf16.msrb.mxu0 %v6100_v23  ;;  %2484 = vmatpush.bf16.msrb.mxu1 %v6292_v60  ;;  %v6371_v23 = vld [vmem:[#allocation14 + $0x248] sm:$0xf]  ;;  %v7521_v60 = vld [vmem:[#allocation14 + $0x25c] sm:$0xf0]  ;;  %v6304_v8 = vor.u32 %v7500_v0, %v6301_v2  ;;  %v7471_v61 = vld [vmem:[#allocation14 + $0xd4] sm:$0xf] }
 0x43a   :  { %2498 = vmatpush.bf16.msrb.mxu2 %v6104_v28  ;;  %2512 = vmatpush.bf16.msrb.mxu3 %v6296_v29  ;;  %v6373_v28 = vld [vmem:[#allocation14 + $0x260] sm:$0xf0]  ;;  %v6180_v29 = vor.u32 %v7473_v18, %v6179_v17  ;;  %v6372_v30 = vor.u32 %v7521_v60, %v6371_v23  ;;  %v6451_v17 = vld [vmem:[#allocation14 + $0x2e0] sm:$0xf]  ;;  %v7540_v18 = vld [vmem:[#allocation14 + $0x2f4] sm:$0xf0] }
 0x43b   :  { %v6376_v1 = vor.u32 %v7518_v27, %v6373_v28  ;;  %v6261_v60 = vld [vmem:[#allocation14 + $0x178] sm:$0xf0]  ;;  %v6088_v27 = vor.u32 %v7446_v57, %v6085_v12  ;;  %v6280_v28 = vor.u32 %v7494_v13, %v6277_v14  ;;  %v7519_v0 = vld [vmem:[#allocation14 + $0x254] sm:$0xf]  ;;  %v6381_v2 = vld [vmem:[#allocation14 + $0x268] sm:$0xf0] }
 0x43c   :  { %v7465_v57 = vld [vmem:[#allocation14 + $0xa4] sm:$0xf]  ;;  %v6165_v12 = vld [vmem:[#allocation14 + $0xb8] sm:$0xf0] }
 0x43d   :  { %2471 = vmatpush.bf16.msrb.mxu0 %v6076_v43  ;;  %2485 = vmatpush.bf16.msrb.mxu1 %v6268_v34  ;;  %v6160_v43 = vor.u32 %v7464_v20, %v6157_v21  ;;  %v6352_v34 = vor.u32 %v7512_v37, %v6349_v38  ;;  %v7483_v20 = vld [vmem:[#allocation14 + $0x134] sm:$0xf]  ;;  %v6237_v21 = vld [vmem:[#allocation14 + $0x148] sm:$0xf0]  ;;  %v7513_v13 = vld [vmem:[#allocation14 + $0x224] sm:$0xf] }
 0x43e   :  { %2499 = vmatpush.bf16.msrb.mxu2 %v6080_v48  ;;  %2513 = vmatpush.bf16.msrb.mxu3 %v6272_v49  ;;  %v7506_v48 = vld [vmem:[#allocation14 + $0x1ec] sm:$0xf]  ;;  %v6325_v49 = vld [vmem:[#allocation14 + $0x200] sm:$0xf0]  ;;  %v7531_v37 = vld [vmem:[#allocation14 + $0x2b4] sm:$0xf] }
 0x43f   :  { %v6429_v38 = vld [vmem:[#allocation14 + $0x2c8] sm:$0xf0]  ;;  %v6357_v14 = vld [vmem:[#allocation14 + $0x238] sm:$0xf0] }
 0x440   :  { %2472 = vmatmul.bf16.vlgmr.msrb.gmra.mxu0 %v8697_v62  ;;  %2486 = vmatmul.bf16.vlgmr.msrb.gmra.mxu1 %v8699_v3 }
 0x441   :  { %2520 = vmatpush.bf16.msra.mxu0 %v6252_v51  ;;  %2534 = vmatpush.bf16.msra.mxu1 %v6444_v52  ;;  %v6132_v51 = vor.u32 %v7461_v42, %v6131_v41  ;;  %v6324_v52 = vor.u32 %v7509_v44, %v6323_v7  ;;  %v6211_v41 = vld [vmem:[#allocation14 + $0x100] sm:$0xf]  ;;  %v7480_v42 = vld [vmem:[#allocation14 + $0x114] sm:$0xf0] }
 0x442   :  { %2548 = vmatpush.bf16.msra.mxu2 %v6256_v53  ;;  %2562 = vmatpush.bf16.msra.mxu3 %v6448_v56  ;;  %v6136_v53 = vor.u32 %v7458_v45, %v6133_v47  ;;  %v6328_v56 = vor.u32 %v7506_v48, %v6325_v49  ;;  %v6403_v7 = vld [vmem:[#allocation14 + $0x280] sm:$0xf]  ;;  %v7528_v44 = vld [vmem:[#allocation14 + $0x294] sm:$0xf0]  ;;  %v7477_v45 = vld [vmem:[#allocation14 + $0x104] sm:$0xf] }
 0x443   :  { %2500 = vmatmul.bf16.vlgmr.msrb.gmra.mxu2 %v8697_v62  ;;  %2514 = vmatmul.bf16.vlgmr.msrb.gmra.mxu3 %v8699_v3  ;;  %v6213_v47 = vld [vmem:[#allocation14 + $0x118] sm:$0xf0]  ;;  %v7525_v48 = vld [vmem:[#allocation14 + $0x284] sm:$0xf] }
 0x444   :  { %v6405_v49 = vld [vmem:[#allocation14 + $0x298] sm:$0xf0] }
 0x445   :  { %2521 = vmatpush.bf16.msra.mxu0 %v6228_v54  ;;  %2535 = vmatpush.bf16.msra.mxu1 %v6420_v4  ;;  %v6083_v54 = vld [vmem:[#allocation14 + $0x8] sm:$0xf]  ;;  %v6108_v4 = vor.u32 %v7455_v50, %v6107_v46  ;;  %v6187_v46 = vld [vmem:[#allocation14 + $0xd0] sm:$0xf] }
 0x446   :  { %2549 = vmatpush.bf16.msra.mxu2 %v6232_v9  ;;  %2563 = vmatpush.bf16.msra.mxu3 %v6424_v10  ;;  %v6275_v9 = vld [vmem:[#allocation14 + $0x188] sm:$0xf]  ;;  %v7497_v10 = vld [vmem:[#allocation14 + $0x19c] sm:$0xf0] }
 0x447   :  { %v6276_v23 = vor.u32 %v7497_v10, %v6275_v9  ;;  %v7474_v50 = vld [vmem:[#allocation14 + $0xe4] sm:$0xf0]  ;;  %v6192_v9 = vor.u32 %v7471_v61, %v6189_v63  ;;  %v6384_v10 = vor.u32 %v7519_v0, %v6381_v2 }
 0x449   :  { %2522 = vmatpush.bf16.msra.mxu0 %v6204_v15  ;;  %2536 = vmatpush.bf16.msra.mxu1 %v6396_v16  ;;  %v6259_v15 = vld [vmem:[#allocation14 + $0x160] sm:$0xf]  ;;  %v7492_v16 = vld [vmem:[#allocation14 + $0x174] sm:$0xf0] }
 0x44a   :  { %2550 = vmatpush.bf16.msra.mxu2 %v6208_v19  ;;  %2564 = vmatpush.bf16.msra.mxu3 %v6400_v22  ;;  %v7489_v19 = vld [vmem:[#allocation14 + $0x164] sm:$0xf]  ;;  %v6084_v22 = vor.u32 %v7449_v6, %v6083_v54  ;;  %v6188_v54 = vor.u32 %v7474_v50, %v6187_v46  ;;  %v7468_v6 = vld [vmem:[#allocation14 + $0xb4] sm:$0xf0] }
 0x44d   :  { %2523 = vmatpush.bf16.msra.mxu0 %v6180_v29  ;;  %2537 = vmatpush.bf16.msra.mxu1 %v6372_v30  ;;  %v6260_v29 = vor.u32 %v7492_v16, %v6259_v15  ;;  %v6452_v30 = vor.u32 %v7540_v18, %v6451_v17  ;;  %v6139_v17 = vld [vmem:[#allocation14 + $0x70] sm:$0xf]  ;;  %v7462_v18 = vld [vmem:[#allocation14 + $0x84] sm:$0xf0] }
 0x44e   :  { %2551 = vmatpush.bf16.msra.mxu2 %v6184_v33  ;;  %2565 = vmatpush.bf16.msra.mxu3 %v6376_v1  ;;  %v6264_v33 = vor.u32 %v7489_v19, %v6261_v60  ;;  %v6456_v1 = vor.u32 %v7537_v24, %v6453_v26  ;;  %v6168_v19 = vor.u32 %v7465_v57, %v6165_v12  ;;  %v7510_v60 = vld [vmem:[#allocation14 + $0x204] sm:$0xf0]  ;;  %v7459_v24 = vld [vmem:[#allocation14 + $0x74] sm:$0xf]  ;;  %v6141_v26 = vld [vmem:[#allocation14 + $0x88] sm:$0xf0] }
 0x44f   :  { %v7588_v57 = vld [vmem:[#allocation16 + $0x174] sm:$0xf0]  ;;  %v6507_v12 = vld [vmem:[#allocation16 + $0x60] sm:$0xf] }
 0x451   :  { %2524 = vmatpush.bf16.msra.mxu0 %v6156_v39  ;;  %2538 = vmatpush.bf16.msra.mxu1 %v6348_v40  ;;  %v6236_v39 = vor.u32 %v7486_v32, %v6235_v31  ;;  %v6428_v40 = vor.u32 %v7534_v36, %v6427_v35  ;;  %v6115_v31 = vld [vmem:[#allocation14 + $0x40] sm:$0xf]  ;;  %v7456_v32 = vld [vmem:[#allocation14 + $0x54] sm:$0xf0] }
 0x452   :  { %2552 = vmatpush.bf16.msra.mxu2 %v6160_v43  ;;  %2566 = vmatpush.bf16.msra.mxu3 %v6352_v34  ;;  %v6240_v43 = vor.u32 %v7483_v20, %v6237_v21  ;;  %v6432_v34 = vor.u32 %v7531_v37, %v6429_v38  ;;  %v6307_v35 = vld [vmem:[#allocation14 + $0x1c0] sm:$0xf]  ;;  %v7504_v36 = vld [vmem:[#allocation14 + $0x1d4] sm:$0xf0]  ;;  %v7453_v20 = vld [vmem:[#allocation14 + $0x44] sm:$0xf] }
 0x453   :  { %v6117_v21 = vld [vmem:[#allocation14 + $0x58] sm:$0xf0]  ;;  %v7501_v37 = vld [vmem:[#allocation14 + $0x1c4] sm:$0xf] }
 0x454   :  { %v6309_v38 = vld [vmem:[#allocation14 + $0x1d8] sm:$0xf0] }
 0x455   :  { %2525 = vmatpush.bf16.msra.mxu0 %v6132_v51  ;;  %2539 = vmatpush.bf16.msra.mxu1 %v6324_v52  ;;  %v6212_v51 = vor.u32 %v7480_v42, %v6211_v41  ;;  %v6404_v52 = vor.u32 %v7528_v44, %v6403_v7  ;;  %v6091_v41 = vld [vmem:[#allocation14 + $0x10] sm:$0xf]  ;;  %v7450_v42 = vld [vmem:[#allocation14 + $0x24] sm:$0xf0] }
 0x456   :  { %2553 = vmatpush.bf16.msra.mxu2 %v6136_v53  ;;  %2567 = vmatpush.bf16.msra.mxu3 %v6328_v56  ;;  %v6216_v53 = vor.u32 %v7477_v45, %v6213_v47  ;;  %v6408_v56 = vor.u32 %v7525_v48, %v6405_v49  ;;  %v6283_v7 = vld [vmem:[#allocation14 + $0x190] sm:$0xf]  ;;  %v7498_v44 = vld [vmem:[#allocation14 + $0x1a4] sm:$0xf0]  ;;  %v7447_v45 = vld [vmem:[#allocation14 + $0x14] sm:$0xf] }
 0x457   :  { %v6093_v47 = vld [vmem:[#allocation14 + $0x28] sm:$0xf0]  ;;  %v7495_v48 = vld [vmem:[#allocation14 + $0x194] sm:$0xf] }
 0x458   :  { %v6285_v49 = vld [vmem:[#allocation14 + $0x1a8] sm:$0xf0]  ;;  %v6096_v46 = vor.u32 %v7447_v45, %v6093_v47  ;;  %v7568_v45 = vld [vmem:[#allocation16 + $0xd4] sm:$0xf0] }
 0x459   :  { %2526 = vmatpush.bf16.msra.mxu0 %v6108_v4  ;;  %2540 = vmatpush.bf16.msra.mxu1 %v6300_v5  ;;  %v6380_v4 = vor.u32 %v7522_v59, %v6379_v58  ;;  %v6163_v5 = vld [vmem:[#allocation14 + $0xa0] sm:$0xf]  ;;  %v6288_v50 = vor.u32 %v7495_v48, %v6285_v49  ;;  %v7582_v49 = vld [vmem:[#allocation16 + $0x144] sm:$0xf0] }
 0x45a   :  { %2554 = vmatpush.bf16.msra.mxu2 %v6112_v11  ;;  %2568 = vmatpush.bf16.msra.mxu3 %v6304_v8  ;;  %v6355_v11 = vld [vmem:[#allocation14 + $0x220] sm:$0xf]  ;;  %v7516_v8 = vld [vmem:[#allocation14 + $0x234] sm:$0xf0]  ;;  %v6164_v15 = vor.u32 %v7468_v6, %v6163_v5 }
 0x45b   :  { %v6356_v16 = vor.u32 %v7516_v8, %v6355_v11  ;;  %v7556_v11 = vld [vmem:[#allocation16 + $0x74] sm:$0xf0]  ;;  %v6643_v8 = vld [vmem:[#allocation16 + $0x170] sm:$0xf]  ;;  %v6619_v48 = vld [vmem:[#allocation16 + $0x140] sm:$0xf] }
 0x45d   :  { %2527 = vmatpush.bf16.msra.mxu0 %v6084_v22  ;;  %2541 = vmatpush.bf16.msra.mxu1 %v6276_v23  ;;  %v6360_v22 = vor.u32 %v7513_v13, %v6357_v14  ;;  %v6331_v23 = vld [vmem:[#allocation14 + $0x1f0] sm:$0xf]  ;;  %v6644_v13 = vor.u32 %v7588_v57, %v6643_v8  ;;  %v7554_v14 = vld [vmem:[#allocation16 + $0x64] sm:$0xf0]  ;;  %v6475_v8 = vld [vmem:[#allocation16 + $0x20] sm:$0xf] }
 0x45e   :  { %2555 = vmatpush.bf16.msra.mxu2 %v6088_v27  ;;  %2569 = vmatpush.bf16.msra.mxu3 %v6280_v28  ;;  %v7507_v27 = vld [vmem:[#allocation14 + $0x1f4] sm:$0xf]  ;;  %v6333_v28 = vld [vmem:[#allocation14 + $0x208] sm:$0xf0]  ;;  %v7546_v57 = vld [vmem:[#allocation16 + $0x24] sm:$0xf0] }
 0x460   :  { %2528 = vmatmul.bf16.vlgmr.msra.gmra.mxu0 %v8697_v62  ;;  %2542 = vmatmul.bf16.vlgmr.msra.gmra.mxu1 %v8699_v3 }
 0x461   :  { %2576 = vmatpush.bf16.msrb.mxu0 %v6260_v29  ;;  %2590 = vmatpush.bf16.msrb.mxu1 %v6452_v30  ;;  %v6140_v29 = vor.u32 %v7462_v18, %v6139_v17  ;;  %v6332_v30 = vor.u32 %v7510_v60, %v6331_v23  ;;  %v6508_v17 = vor.u32 %v7554_v14, %v6507_v12  ;;  %v6499_v60 = vld [vmem:[#allocation16 + $0x50] sm:$0xf]  ;;  %v7598_v14 = vld [vmem:[#allocation16 + $0x1c4] sm:$0xf0] }
 0x462   :  { %2604 = vmatpush.bf16.msrb.mxu2 %v6264_v33  ;;  %2618 = vmatpush.bf16.msrb.mxu3 %v6456_v1  ;;  %v6144_v33 = vor.u32 %v7459_v24, %v6141_v26  ;;  %v6336_v1 = vor.u32 %v7507_v27, %v6333_v28  ;;  %v7552_v24 = vld [vmem:[#allocation16 + $0x54] sm:$0xf0]  ;;  %v6707_v26 = vld [vmem:[#allocation16 + $0x1f0] sm:$0xf]  ;;  %v6571_v28 = vld [vmem:[#allocation16 + $0xe0] sm:$0xf]  ;;  %v6476_v12 = vor.u32 %v7546_v57, %v6475_v8 }
 0x463   :  { %2556 = vmatmul.bf16.vlgmr.msra.gmra.mxu2 %v8697_v62  ;;  %2570 = vmatmul.bf16.vlgmr.msra.gmra.mxu3 %v8699_v3  ;;  %v7604_v27 = vld [vmem:[#allocation16 + $0x1f4] sm:$0xf0]  ;;  %v6523_v8 = vld [vmem:[#allocation16 + $0x80] sm:$0xf]  ;;  %v7558_v57 = vld [vmem:[#allocation16 + $0x84] sm:$0xf0] }
 0x465   :  { %2577 = vmatpush.bf16.msrb.mxu0 %v6236_v39  ;;  %2591 = vmatpush.bf16.msrb.mxu1 %v6428_v40  ;;  %v6116_v39 = vor.u32 %v7456_v32, %v6115_v31  ;;  %v6308_v40 = vor.u32 %v7504_v36, %v6307_v35  ;;  %v6708_v32 = vor.u32 %v7604_v27, %v6707_v26  ;;  %v7584_v35 = vld [vmem:[#allocation16 + $0x154] sm:$0xf0]  ;;  %v6467_v26 = vld [vmem:[#allocation16 + $0x10] sm:$0xf] }
 0x466   :  { %2605 = vmatpush.bf16.msrb.mxu2 %v6240_v43  ;;  %2619 = vmatpush.bf16.msrb.mxu3 %v6432_v34  ;;  %v6120_v43 = vor.u32 %v7453_v20, %v6117_v21  ;;  %v6312_v34 = vor.u32 %v7501_v37, %v6309_v38  ;;  %v6500_v21 = vor.u32 %v7552_v24, %v6499_v60  ;;  %v6699_v37 = vld [vmem:[#allocation16 + $0x1e0] sm:$0xf]  ;;  %v7602_v38 = vld [vmem:[#allocation16 + $0x1e4] sm:$0xf0]  ;;  %v7544_v27 = vld [vmem:[#allocation16 + $0x14] sm:$0xf0] }
 0x469   :  { %2578 = vmatpush.bf16.msrb.mxu0 %v6212_v51  ;;  %2592 = vmatpush.bf16.msrb.mxu1 %v6404_v52  ;;  %v6092_v51 = vor.u32 %v7450_v42, %v6091_v41  ;;  %v6284_v52 = vor.u32 %v7498_v44, %v6283_v7  ;;  %v7550_v41 = vld [vmem:[#allocation16 + $0x44] sm:$0xf0]  ;;  %v6700_v42 = vor.u32 %v7602_v38, %v6699_v37  ;;  %v6563_v44 = vld [vmem:[#allocation16 + $0xd0] sm:$0xf]  ;;  %v7576_v38 = vld [vmem:[#allocation16 + $0x114] sm:$0xf0] }
 0x46a   :  { %2606 = vmatpush.bf16.msrb.mxu2 %v6216_v53  ;;  %2620 = vmatpush.bf16.msrb.mxu3 %v6408_v56  ;;  %v8712_v53 = vld [vmem:[%s9852_s12] sm:$0x3f]  ;;  %v6564_v47 = vor.u32 %v7568_v45, %v6563_v44  ;;  %v6595_v37 = vld [vmem:[#allocation16 + $0x110] sm:$0xf]  ;;  %v7560_v45 = vld [vmem:[#allocation16 + $0x94] sm:$0xf0] }
 0x46b   :  { %v1224_v56 = vperm.slane %v8712_v53, 0  ;;  %v6531_v44 = vld [vmem:[#allocation16 + $0x90] sm:$0xf]  ;;  %s9975_s12 = sld [smem:[#allocation63_spill]] }
 0x46d   :  { %2579 = vmatpush.bf16.msrb.mxu0 %v6188_v54  ;;  %2593 = vmatpush.bf16.msrb.mxu1 %v6380_v4 }
 0x46e   :  { %2607 = vmatpush.bf16.msrb.mxu2 %v6192_v9  ;;  %2621 = vmatpush.bf16.msrb.mxu3 %v6384_v10 }
 0x471   :  { %2580 = vmatpush.bf16.msrb.mxu0 %v6164_v15  ;;  %2594 = vmatpush.bf16.msrb.mxu1 %v6356_v16  ;;  %v6579_v15 = vld [vmem:[#allocation16 + $0xf0] sm:$0xf]  ;;  %v7572_v16 = vld [vmem:[#allocation16 + $0xf4] sm:$0xf0]  ;;  %s5416_s22 = sshll.u32 %s9975_s12, 4  ;;  %s5417_s22 = int_to_ptr.hbm [resolvable:$true] %s5416_s22 }
 0x472   :  { %2608 = vmatpush.bf16.msrb.mxu2 %v6168_v19  ;;  %2622 = vmatpush.bf16.msrb.mxu3 %v6360_v22  ;;  %v6580_v18 = vor.u32 %v7572_v16, %v6579_v15  ;;  %v6635_v19 = vld [vmem:[#allocation16 + $0x160] sm:$0xf]  ;;  %v7586_v22 = vld [vmem:[#allocation16 + $0x164] sm:$0xf0]  ;;  %v6547_v16 = vld [vmem:[#allocation16 + $0xb0] sm:$0xf] }
 0x473   :  { %v6636_v23 = vor.u32 %v7586_v22, %v6635_v19  ;;  %v6603_v19 = vld [vmem:[#allocation16 + $0x120] sm:$0xf]  ;;  %v7578_v22 = vld [vmem:[#allocation16 + $0x124] sm:$0xf0] }
 0x474   :  { %v6604_v24 = vor.u32 %v7578_v22, %v6603_v19  ;;  %v6651_v22 = vld [vmem:[#allocation16 + $0x180] sm:$0xf] }
 0x475   :  { %2581 = vmatpush.bf16.msrb.mxu0 %v6140_v29  ;;  %2595 = vmatpush.bf16.msrb.mxu1 %v6332_v30  ;;  %v7570_v29 = vld [vmem:[#allocation16 + $0xe4] sm:$0xf0] }
 0x476   :  { %2609 = vmatpush.bf16.msrb.mxu2 %v6144_v33  ;;  %2623 = vmatpush.bf16.msrb.mxu3 %v6336_v1  ;;  %v6572_v33 = vor.u32 %v7570_v29, %v6571_v28  ;;  %v6627_v1 = vld [vmem:[#allocation16 + $0x150] sm:$0xf] }
 0x479   :  { %2582 = vmatpush.bf16.msrb.mxu0 %v6116_v39  ;;  %2596 = vmatpush.bf16.msrb.mxu1 %v6308_v40  ;;  %v6628_v39 = vor.u32 %v7584_v35, %v6627_v1  ;;  %v6491_v40 = vld [vmem:[#allocation16 + $0x40] sm:$0xf]  ;;  %v7596_v1 = vld [vmem:[#allocation16 + $0x1b4] sm:$0xf0] }
 0x47a   :  { %2610 = vmatpush.bf16.msrb.mxu2 %v6120_v43  ;;  %2624 = vmatpush.bf16.msrb.mxu3 %v6312_v34  ;;  %v6492_v43 = vor.u32 %v7550_v41, %v6491_v40  ;;  %v6459_v40 = vld [vmem:[#allocation16] sm:$0xf]  ;;  %v7542_v41 = vld [vmem:[#allocation16 + $0x4] sm:$0xf0] }
 0x47c   :  { %v1725_v58 = vpop.f32.mrf.mxu0  ;;  %v1738_v59 = vpop.f32.mrf.mxu1 }
 0x47d   :  { %2583 = vmatpush.bf16.msrb.mxu0 %v6092_v51  ;;  %2597 = vmatpush.bf16.msrb.mxu1 %v6284_v52  ;;  %v1726_v61 = vadd.f32 %v1725_v58, %v1224_v56  ;;  %v6620_v51 = vor.u32 %v7582_v49, %v6619_v48  ;;  %v6483_v52 = vld [vmem:[#allocation16 + $0x30] sm:$0xf]  ;;  %v6532_v48 = vor.u32 %v7560_v45, %v6531_v44  ;;  %v6587_v49 = vld [vmem:[#allocation16 + $0x100] sm:$0xf] }
 0x47e   :  { %2611 = vmatpush.bf16.msrb.mxu2 %v6096_v46  ;;  %2625 = vmatpush.bf16.msrb.mxu3 %v6288_v50  ;;  %v7548_v46 = vld [vmem:[#allocation16 + $0x34] sm:$0xf0] }
 0x47f   :  { %v8719_v63 = vadd.f32 %v1738_v59, %v1726_v61  ;;  %v6484_v58 = vor.u32 %v7548_v46, %v6483_v52  ;;  %v6691_v59 = vld [vmem:[#allocation16 + $0x1d0] sm:$0xf]  ;;  %v7600_v61 = vld [vmem:[#allocation16 + $0x1d4] sm:$0xf0]  ;;  %v1225_v52 = vperm.slane %v8712_v53, 1  ;;  %v1229_v46 = vperm.slane %v8712_v53, 5 }
 0x480   :  { %2584 = vmatmul.bf16.vlgmr.msrb.gmra.mxu0 %v8697_v62  ;;  %2598 = vmatmul.bf16.vlgmr.msrb.gmra.mxu1 %v8699_v3 }
 0x481   :  { %2612 = vmatmul.bf16.vlgmr.msrb.gmra.mxu2 %v8697_v62  ;;  %2626 = vmatmul.bf16.vlgmr.msrb.gmra.mxu3 %v8699_v3  ;;  %v6515_v62 = vld [vmem:[#allocation16 + $0x70] sm:$0xf] }
 0x482   :  { %v6516_v3 = vor.u32 %v7556_v11, %v6515_v62  ;;  %3310 = vmatpush.bf16.msra.mxu2 %v6644_v13  ;;  %3296 = vmatpush.bf16.msra.mxu1 %v6580_v18  ;;  %v6611_v62 = vld [vmem:[#allocation16 + $0x130] sm:$0xf]  ;;  %v7580_v11 = vld [vmem:[#allocation16 + $0x134] sm:$0xf0]  ;;  %v6683_v13 = vld [vmem:[#allocation16 + $0x1c0] sm:$0xf] }
 0x483   :  { %v8721_v0 = vpop.f32.mrf.mxu2  ;;  %v8723_v2 = vpop.f32.mrf.mxu3  ;;  %3324 = vmatpush.bf16.msra.mxu3 %v6708_v32  ;;  %v6684_v15 = vor.u32 %v7598_v14, %v6683_v13  ;;  %v6468_v32 = vor.u32 %v7544_v27, %v6467_v26  ;;  %v6524_v14 = vor.u32 %v7558_v57, %v6523_v8  ;;  %v6835_v57 = vld [vmem:[#allocation16 + $0x2f0] sm:$0xf] }
 0x484   :  { %v1727_v54 = vpop.f32.mrf.mxu0  ;;  %v1740_v4 = vpop.f32.mrf.mxu1  ;;  %3282 = vmatpush.bf16.msra.mxu0 %v6516_v3  ;;  %v6612_v3 = vor.u32 %v7580_v11, %v6611_v62  ;;  %v6659_v11 = vld [vmem:[#allocation16 + $0x190] sm:$0xf] }
 0x485   :  { %v6692_v54 = vor.u32 %v7600_v61, %v6691_v59  ;;  %v6555_v4 = vld [vmem:[#allocation16 + $0xc0] sm:$0xf] }
 0x486   :  { %3311 = vmatpush.bf16.msra.mxu2 %v6636_v23  ;;  %3297 = vmatpush.bf16.msra.mxu1 %v6572_v33  ;;  %v6675_v33 = vld [vmem:[#allocation16 + $0x1b0] sm:$0xf] }
 0x487   :  { %3325 = vmatpush.bf16.msra.mxu3 %v6700_v42  ;;  %v6676_v35 = vor.u32 %v7596_v1, %v6675_v33  ;;  %v6460_v42 = vor.u32 %v7542_v41, %v6459_v40  ;;  %v7569_v33 = vld [vmem:[#allocation16 + $0xe4] sm:$0xf]  ;;  %v6573_v1 = vld [vmem:[#allocation16 + $0xe8] sm:$0xf0]  ;;  %v7620_v41 = vld [vmem:[#allocation16 + $0x274] sm:$0xf0] }
 0x488   :  { %3283 = vmatpush.bf16.msra.mxu0 %v6508_v17  ;;  %v7564_v17 = vld [vmem:[#allocation16 + $0xb4] sm:$0xf0] }
 0x489   :  { %v6548_v18 = vor.u32 %v7564_v17, %v6547_v16  ;;  %v7553_v17 = vld [vmem:[#allocation16 + $0x64] sm:$0xf] }
 0x48a   :  { %3312 = vmatpush.bf16.msra.mxu2 %v6628_v39  ;;  %3298 = vmatpush.bf16.msra.mxu1 %v6564_v47  ;;  %v6596_v39 = vor.u32 %v7576_v38, %v6595_v37  ;;  %v1228_v47 = vperm.slane %v8712_v53, 4  ;;  %v8760_v37 = vld [vmem:[%s9854_s14] sm:$0x3f]  ;;  %v7549_v38 = vld [vmem:[#allocation16 + $0x44] sm:$0xf] }
 0x48b   :  { %v1753_v5 = vpop.f32.mrf.mxu2  ;;  %v1766_v6 = vpop.f32.mrf.mxu3  ;;  %3326 = vmatpush.bf16.msra.mxu3 %v6692_v54  ;;  %v7555_v54 = vld [vmem:[#allocation16 + $0x74] sm:$0xf] }
 0x48c   :  { %v8725_v9 = vpop.f32.mrf.mxu0  ;;  %v8727_v10 = vpop.f32.mrf.mxu1  ;;  %3284 = vmatpush.bf16.msra.mxu0 %v6500_v21  ;;  %v7566_v5 = vld [vmem:[#allocation16 + $0xc4] sm:$0xf0] }
 0x48d   :  { %v6556_v6 = vor.u32 %v7566_v5, %v6555_v4  ;;  %v6517_v4 = vld [vmem:[#allocation16 + $0x78] sm:$0xf0]  ;;  %v1226_v5 = vperm.slane %v8712_v53, 2 }
 0x48e   :  { %3313 = vmatpush.bf16.msra.mxu2 %v6620_v51  ;;  %v7574_v51 = vld [vmem:[#allocation16 + $0x104] sm:$0xf0]  ;;  %v6520_v62 = vor.u32 %v7555_v54, %v6517_v4 }
 0x48f   :  { %3299 = vmatpush.bf16.msra.mxu1 %v6556_v6  ;;  %3327 = vmatpush.bf16.msra.mxu3 %v6684_v15  ;;  %v6588_v61 = vor.u32 %v7574_v51, %v6587_v49  ;;  %v1227_v6 = vperm.slane %v8712_v53, 3  ;;  %v1752_v15 = vadd.f32 %v8721_v0, %v1225_v52  ;;  %v1778_v26 = vadd.f32 %v8725_v9, %v1226_v5  ;;  %v7547_v52 = vld [vmem:[#allocation16 + $0x34] sm:$0xf]  ;;  %v7618_v54 = vld [vmem:[#allocation16 + $0x264] sm:$0xf0] }
 0x490   :  { %3285 = vmatpush.bf16.msra.mxu0 %v6492_v43  ;;  %v6667_v43 = vld [vmem:[#allocation16 + $0x1a0] sm:$0xf]  ;;  %v1972_v49 = vperm.slane %v8760_v37, 0 }
 0x491   :  { %v8755_v9 = vadd.f32 %v8727_v10, %v1778_v26  ;;  %v6771_v10 = vld [vmem:[#allocation16 + $0x270] sm:$0xf]  ;;  %v7616_v26 = vld [vmem:[#allocation16 + $0x254] sm:$0xf0] }
 0x492   :  { %3314 = vmatpush.bf16.msra.mxu2 %v6612_v3  ;;  %v7592_v3 = vld [vmem:[#allocation16 + $0x194] sm:$0xf0] }
 0x493   :  { %v8729_v30 = vpop.f32.mrf.mxu2  ;;  %v8731_v31 = vpop.f32.mrf.mxu3  ;;  %3300 = vmatpush.bf16.msra.mxu1 %v6548_v18  ;;  %3328 = vmatpush.bf16.msra.mxu3 %v6676_v35  ;;  %v6660_v13 = vor.u32 %v7592_v3, %v6659_v11  ;;  %v6509_v18 = vld [vmem:[#allocation16 + $0x68] sm:$0xf0] }
 0x494   :  { %v1779_v36 = vpop.f32.mrf.mxu0  ;;  %v1792_v20 = vpop.f32.mrf.mxu1  ;;  %3286 = vmatpush.bf16.msra.mxu0 %v6484_v58  ;;  %v1804_v19 = vadd.f32 %v8729_v30, %v1227_v6  ;;  %v6512_v53 = vor.u32 %v7553_v17, %v6509_v18  ;;  %v8750_v30 = vadd.f32 %v8723_v2, %v1752_v15  ;;  %v7565_v6 = vld [vmem:[#allocation16 + $0xc4] sm:$0xf]  ;;  %v6477_v17 = vld [vmem:[#allocation16 + $0x28] sm:$0xf0] }
 0x495   :  { %v6539_v36 = vld [vmem:[#allocation16 + $0xa0] sm:$0xf]  ;;  %v7562_v20 = vld [vmem:[#allocation16 + $0xa4] sm:$0xf0] }
 0x496   :  { %3315 = vmatpush.bf16.msra.mxu2 %v6604_v24  ;;  %v6540_v21 = vor.u32 %v7562_v20, %v6539_v36  ;;  %v7590_v24 = vld [vmem:[#allocation16 + $0x184] sm:$0xf0]  ;;  %v1817_v20 = vadd.f32 %v8731_v31, %v1804_v19  ;;  %v2638_v2 = vrot.slane %v8750_v30, 7  ;;  %v1973_v19 = vperm.slane %v8760_v37, 1 }
 0x497   :  { %v6652_v27 = vor.u32 %v7590_v24, %v6651_v22  ;;  %v6755_v24 = vld [vmem:[#allocation16 + $0x250] sm:$0xf]  ;;  %v7634_v30 = vld [vmem:[#allocation16 + $0x2e4] sm:$0xf0] }
 0x498   :  { %3287 = vmatpush.bf16.msra.mxu0 %v6476_v12  ;;  %3301 = vmatpush.bf16.msra.mxu1 %v6540_v21  ;;  %v6576_v21 = vor.u32 %v7569_v33, %v6573_v1  ;;  %v2640_v31 = vrot.slane %v1817_v20, 5  ;;  %v2644_v18 = vsel %vm2643_vm6, %v8719_v63, %v2638_v2  ;;  %v6827_v1 = vld [vmem:[#allocation16 + $0x2e0] sm:$0xf] }
 0x49a   :  { %3316 = vmatpush.bf16.msra.mxu2 %v6596_v39  ;;  %v6493_v39 = vld [vmem:[#allocation16 + $0x48] sm:$0xf0] }
 0x49b   :  { %v1805_v34 = vpop.f32.mrf.mxu2  ;;  %v1818_v7 = vpop.f32.mrf.mxu3  ;;  %v6496_v40 = vor.u32 %v7549_v38, %v6493_v39  ;;  %v6747_v38 = vld [vmem:[#allocation16 + $0x240] sm:$0xf]  ;;  %v7614_v39 = vld [vmem:[#allocation16 + $0x244] sm:$0xf0] }
 0x49c   :  { %3288 = vmatpush.bf16.msra.mxu0 %v6468_v32  ;;  %v7594_v34 = vld [vmem:[#allocation16 + $0x1a4] sm:$0xf0]  ;;  %3302 = vmatpush.bf16.msra.mxu1 %v6532_v48 }
 0x49d   :  { %v8733_v50 = vpop.f32.mrf.mxu0  ;;  %v8735_v56 = vpop.f32.mrf.mxu1  ;;  %v6668_v7 = vor.u32 %v7594_v34, %v6667_v43  ;;  %v6772_v43 = vor.u32 %v7620_v41, %v6771_v10  ;;  %v7567_v34 = vld [vmem:[#allocation16 + $0xd4] sm:$0xf]  ;;  %v6748_v41 = vor.u32 %v7614_v39, %v6747_v38  ;;  %v6645_v38 = vld [vmem:[#allocation16 + $0x178] sm:$0xf0] }
 0x49e   :  { %3317 = vmatpush.bf16.msra.mxu2 %v6588_v61  ;;  %v1830_v12 = vadd.f32 %v8733_v50, %v1228_v47  ;;  %v6581_v50 = vld [vmem:[#allocation16 + $0xf8] sm:$0xf0]  ;;  %v6763_v61 = vld [vmem:[#allocation16 + $0x260] sm:$0xf] }
 0x49f   :  { %3329 = vmatpush.bf16.msra.mxu3 %v6668_v7  ;;  %v6565_v7 = vld [vmem:[#allocation16 + $0xd8] sm:$0xf0]  ;;  %v6764_v5 = vor.u32 %v7618_v54, %v6763_v61  ;;  %v7612_v61 = vld [vmem:[#allocation16 + $0x234] sm:$0xf0] }
 0x4a0   :  { %3289 = vmatpush.bf16.msra.mxu0 %v6460_v42  ;;  %3303 = vmatpush.bf16.msra.mxu1 %v6524_v14  ;;  %v1843_v32 = vadd.f32 %v8735_v56, %v1830_v12  ;;  %v2639_v42 = vrot.slane %v8755_v9, 6  ;;  %v6568_v47 = vor.u32 %v7567_v34, %v6565_v7  ;;  %v7636_v12 = vld [vmem:[#allocation16 + $0x2f4] sm:$0xf0]  ;;  %v6828_v9 = vor.u32 %v7634_v30, %v6827_v1  ;;  %v6819_v7 = vld [vmem:[#allocation16 + $0x2d0] sm:$0xf] }
 0x4a1   :  { %v6836_v15 = vor.u32 %v7636_v12, %v6835_v57  ;;  %v7630_v57 = vld [vmem:[#allocation16 + $0x2c4] sm:$0xf0]  ;;  %v6795_v1 = vld [vmem:[#allocation16 + $0x2a0] sm:$0xf] }
 0x4a2   :  { %3366 = vmatpush.bf16.msrb.mxu2 %v6520_v62  ;;  %v2641_v56 = vrot.slane %v1843_v32, 4  ;;  %v6557_v62 = vld [vmem:[#allocation16 + $0xc8] sm:$0xf0]  ;;  %v7563_v32 = vld [vmem:[#allocation16 + $0xb4] sm:$0xf] }
 0x4a3   :  { %3330 = vmatpush.bf16.msra.mxu3 %v6660_v13  ;;  %v6560_v8 = vor.u32 %v7565_v6, %v6557_v62  ;;  %v7559_v62 = vld [vmem:[#allocation16 + $0x94] sm:$0xf]  ;;  %v7626_v30 = vld [vmem:[#allocation16 + $0x2a4] sm:$0xf0] }
 0x4a4   :  { %v2658_v44 = vsel %vm2657_vm14, %v2640_v31, %v2641_v56  ;;  %3338 = vmatpush.bf16.msrb.mxu0 %v6772_v43  ;;  %v2648_v11 = vsel %vm9885_vm3, %v2640_v31, %v2641_v56  ;;  %3352 = vmatpush.bf16.msrb.mxu1 %v6836_v15  ;;  %v6469_v56 = vld [vmem:[#allocation16 + $0x18] sm:$0xf0]  ;;  %v6541_v43 = vld [vmem:[#allocation16 + $0xa8] sm:$0xf0] }
 0x4a5   :  { %v1831_v28 = vpop.f32.mrf.mxu0  ;;  %v1844_v29 = vpop.f32.mrf.mxu1 }
 0x4a6   :  { %v1855_v23 = vpop.f32.mrf.mxu2  ;;  %v8737_v60 = vpop.f32.mrf.mxu3  ;;  %v7571_v28 = vld [vmem:[#allocation16 + $0xf4] sm:$0xf]  ;;  %3367 = vmatpush.bf16.msrb.mxu2 %v6512_v53 }
 0x4a7   :  { %v1856_v16 = vadd.f32 %v1855_v23, %v1229_v46  ;;  %v7551_v29 = vld [vmem:[#allocation16 + $0x54] sm:$0xf]  ;;  %v6584_v0 = vor.u32 %v7571_v28, %v6581_v50  ;;  %v6501_v23 = vld [vmem:[#allocation16 + $0x58] sm:$0xf0]  ;;  %3331 = vmatpush.bf16.msra.mxu3 %v6652_v27  ;;  %v2646_v27 = vsel %vm2645_vm7, %v2644_v18, %v2639_v42 }
 0x4a8   :  { %v6504_v36 = vor.u32 %v7551_v29, %v6501_v23  ;;  %v6485_v46 = vld [vmem:[#allocation16 + $0x38] sm:$0xf0]  ;;  %3339 = vmatpush.bf16.msrb.mxu0 %v6764_v5  ;;  %v6756_v29 = vor.u32 %v7616_v26, %v6755_v24  ;;  %3353 = vmatpush.bf16.msrb.mxu1 %v6828_v9  ;;  %v6525_v24 = vld [vmem:[#allocation16 + $0x88] sm:$0xf0]  ;;  %v6715_v9 = vld [vmem:[#allocation16 + $0x200] sm:$0xf] }
 0x4a9   :  { %v1869_v35 = vadd.f32 %v8737_v60, %v1856_v16  ;;  %v7545_v16 = vld [vmem:[#allocation16 + $0x24] sm:$0xf] }
 0x4aa   :  { %3368 = vmatpush.bf16.msrb.mxu2 %v6504_v36  ;;  %v6480_v22 = vor.u32 %v7545_v16, %v6477_v17  ;;  %v6731_v16 = vld [vmem:[#allocation16 + $0x220] sm:$0xf]  ;;  %v7610_v17 = vld [vmem:[#allocation16 + $0x224] sm:$0xf0] }
 0x4ab   :  { %3380 = vmatpush.bf16.msrb.mxu3 %v6584_v0  ;;  %v2642_v60 = vrot.slane %v1869_v35, 3  ;;  %v6549_v0 = vld [vmem:[#allocation16 + $0xb8] sm:$0xf0] }
 0x4ac   :  { %v6552_v33 = vor.u32 %v7563_v32, %v6549_v0  ;;  %3340 = vmatpush.bf16.msrb.mxu0 %v6756_v29  ;;  %v6723_v0 = vld [vmem:[#allocation16 + $0x210] sm:$0xf] }
 0x4ad   :  { %v2660_v48 = vsel %vm2659_vm15, %v2658_v44, %v2642_v60  ;;  %v2650_v13 = vsel %vm2649_vm5, %v2648_v11, %v2642_v60  ;;  %v7632_v44 = vld [vmem:[#allocation16 + $0x2d4] sm:$0xf0]  ;;  %v6533_v11 = vld [vmem:[#allocation16 + $0x98] sm:$0xf0] }
 0x4ae   :  { %v1857_v58 = vpop.f32.mrf.mxu2  ;;  %v1870_v59 = vpop.f32.mrf.mxu3  ;;  %3369 = vmatpush.bf16.msrb.mxu2 %v6496_v40  ;;  %v8780_v23 = vsel %vm2651_vm8, %v2646_v27, %v2650_v13  ;;  %v6803_v27 = vld [vmem:[#allocation16 + $0x2b0] sm:$0xf] }
 0x4af   :  { %3381 = vmatpush.bf16.msrb.mxu3 %v6576_v21  ;;  %v2654_v58 = vsel %vm2653_vm1, %v8719_v63, %v2638_v2  ;;  %v6488_v59 = vor.u32 %v7547_v52, %v6485_v46  ;;  %v7543_v21 = vld [vmem:[#allocation16 + $0x14] sm:$0xf]  ;;  %v2664_v31 = vperm.slane %v8780_v23, 0  ;;  %v2665_v12 = vperm.slane %v8780_v23, 1 }
 0x4b0   :  { %v2656_v4 = vsel %vm2655_vm2, %v2654_v58, %v2639_v42  ;;  %v6472_v60 = vor.u32 %v7543_v21, %v6469_v56  ;;  %v7561_v42 = vld [vmem:[#allocation16 + $0xa4] sm:$0xf]  ;;  %3341 = vmatpush.bf16.msrb.mxu0 %v6748_v41  ;;  %v7606_v21 = vld [vmem:[#allocation16 + $0x204] sm:$0xf0]  ;;  %v1974_v56 = vperm.slane %v8760_v37, 2 }
 0x4b1   :  { %v2662_v3 = vsel %vm2661_vm4, %v2656_v4, %v2660_v48  ;;  %v6544_v34 = vor.u32 %v7561_v42, %v6541_v43  ;;  %v6820_v48 = vor.u32 %v7632_v44, %v6819_v7  ;;  %v7585_v42 = vld [vmem:[#allocation16 + $0x164] sm:$0xf]  ;;  %v6637_v43 = vld [vmem:[#allocation16 + $0x168] sm:$0xf0] }
 0x4b2   :  { %3370 = vmatpush.bf16.msrb.mxu2 %v6488_v59  ;;  %v8777_v28 = vrot.slane %v2662_v3, 1  ;;  %v6739_v59 = vld [vmem:[#allocation16 + $0x230] sm:$0xf]  ;;  %v6536_v3 = vor.u32 %v7559_v62, %v6533_v11  ;;  %v6640_v44 = vor.u32 %v7585_v42, %v6637_v43  ;;  %v2666_v62 = vperm.slane %v8780_v23, 2  ;;  %v6685_v43 = vld [vmem:[#allocation16 + $0x1c8] sm:$0xf0] }
 0x4b3   :  { %3382 = vmatpush.bf16.msrb.mxu3 %v6568_v47  ;;  %3354 = vmatpush.bf16.msrb.mxu1 %v6820_v48  ;;  %v6740_v6 = vor.u32 %v7612_v61, %v6739_v59  ;;  %v1975_v48 = vperm.slane %v8760_v37, 3 }
 0x4b4   :  { %v2670_v10 = vperm.slane %v8777_v28, 0 }
 0x4b5   :  { %3342 = vmatpush.bf16.msrb.mxu0 %v6740_v6  ;;  %v6629_v6 = vld [vmem:[#allocation16 + $0x158] sm:$0xf0] }
 0x4b6   :  { %3371 = vmatpush.bf16.msrb.mxu2 %v6480_v22  ;;  %v7557_v22 = vld [vmem:[#allocation16 + $0x84] sm:$0xf] }
 0x4b7   :  { %3383 = vmatpush.bf16.msrb.mxu3 %v6560_v8  ;;  %v6811_v8 = vld [vmem:[#allocation16 + $0x2c0] sm:$0xf]  ;;  %v6528_v26 = vor.u32 %v7557_v22, %v6525_v24  ;;  %v6621_v22 = vld [vmem:[#allocation16 + $0x148] sm:$0xf0] }
 0x4b8   :  { %v6812_v15 = vor.u32 %v7630_v57, %v6811_v8  ;;  %v7619_v8 = vld [vmem:[#allocation16 + $0x274] sm:$0xf]  ;;  %v6773_v57 = vld [vmem:[#allocation16 + $0x278] sm:$0xf0] }
 0x4ba   :  { %3372 = vmatpush.bf16.msrb.mxu2 %v6472_v60  ;;  %3355 = vmatpush.bf16.msrb.mxu1 %v6812_v15  ;;  %v7587_v60 = vld [vmem:[#allocation16 + $0x174] sm:$0xf]  ;;  %v6701_v15 = vld [vmem:[#allocation16 + $0x1e8] sm:$0xf0] }
 0x4bb   :  { %3384 = vmatpush.bf16.msrb.mxu3 %v6552_v33  ;;  %v6648_v39 = vor.u32 %v7587_v60, %v6645_v38  ;;  %v7579_v60 = vld [vmem:[#allocation16 + $0x134] sm:$0xf]  ;;  %v6613_v38 = vld [vmem:[#allocation16 + $0x138] sm:$0xf0] }
 0x4bd   :  { %v2473_v45 = vpop.f32.mrf.mxu0  ;;  %v2487_v51 = vpop.f32.mrf.mxu1 }
 0x4be   :  { %v2474_v14 = vadd.f32 %v2473_v45, %v1972_v49 }
 0x4bf   :  { %3385 = vmatpush.bf16.msrb.mxu3 %v6544_v34 }
 0x4c0   :  { %v2488_v35 = vadd.f32 %v2487_v51, %v2474_v14  ;;  %v6461_v51 = vld [vmem:[#allocation16 + $0x8] sm:$0xf0]  ;;  %v2671_v14 = vperm.slane %v8777_v28, 1 }
 0x4c2   :  { %v2688_v45 = vmul.f32 %v2664_v31, %v2488_v35  ;;  %v6796_v35 = vor.u32 %v7626_v30, %v6795_v1  ;;  %v6787_v31 = vld [vmem:[#allocation16 + $0x290] sm:$0xf]  ;;  %v6693_v1 = vld [vmem:[#allocation16 + $0x1d8] sm:$0xf0]  ;;  %v2667_v30 = vperm.slane %v8780_v23, 3 }
 0x4c3   :  { %3386 = vmatpush.bf16.msrb.mxu3 %v6536_v3  ;;  %v2672_v3 = vperm.slane %v8777_v28, 2 }
 0x4c5   :  { %v2475_v63 = vpop.f32.mrf.mxu0  ;;  %v2489_v20 = vpop.f32.mrf.mxu1 }
 0x4c6   :  { %v2501_v53 = vpop.f32.mrf.mxu2  ;;  %v2515_v50 = vpop.f32.mrf.mxu3  ;;  %v2476_v36 = vadd.f32 %v2475_v63, %v1972_v49  ;;  %v7541_v49 = vld [vmem:[#allocation16 + $0x4] sm:$0xf]  ;;  %v7608_v63 = vld [vmem:[#allocation16 + $0x214] sm:$0xf0] }
 0x4c7   :  { %v2502_v2 = vadd.f32 %v2501_v53, %v1973_v19  ;;  %v6464_v58 = vor.u32 %v7541_v49, %v6461_v51  ;;  %v6732_v53 = vor.u32 %v7610_v17, %v6731_v16  ;;  %3387 = vmatpush.bf16.msrb.mxu3 %v6528_v26  ;;  %v6724_v33 = vor.u32 %v7608_v63, %v6723_v0 }
 0x4c8   :  { %v2490_v40 = vadd.f32 %v2489_v20, %v2476_v36 }
 0x4c9   :  { %v2516_v52 = vadd.f32 %v2515_v50, %v2502_v2  ;;  %3373 = vmatpush.bf16.msrb.mxu2 %v6464_v58  ;;  %v7628_v50 = vld [vmem:[#allocation16 + $0x2b4] sm:$0xf0]  ;;  %3343 = vmatpush.bf16.msrb.mxu0 %v6732_v53  ;;  %v6716_v2 = vor.u32 %v7606_v21, %v6715_v9  ;;  %v7581_v53 = vld [vmem:[#allocation16 + $0x144] sm:$0xf] }
 0x4ca   :  { %v2694_v47 = vmul.f32 %v2670_v10, %v2490_v40  ;;  %v6804_v32 = vor.u32 %v7628_v50, %v6803_v27  ;;  %v7624_v40 = vld [vmem:[#allocation16 + $0x294] sm:$0xf0]  ;;  %v7617_v27 = vld [vmem:[#allocation16 + $0x264] sm:$0xf]  ;;  %v6765_v50 = vld [vmem:[#allocation16 + $0x268] sm:$0xf0] }
 0x4cb   :  { %v2689_v18 = vmul.f32 %v2665_v12, %v2516_v52  ;;  %v6788_v10 = vor.u32 %v7624_v40, %v6787_v31  ;;  %v7603_v52 = vld [vmem:[#allocation16 + $0x1f4] sm:$0xf]  ;;  %v6757_v31 = vld [vmem:[#allocation16 + $0x258] sm:$0xf0]  ;;  %v6616_v40 = vor.u32 %v7579_v60, %v6613_v38 }
 0x4cc   :  { %v8784_v54 = vpack.c.bf16 %v2694_v47, %v2688_v45  ;;  %3356 = vmatpush.bf16.msrb.mxu1 %v6804_v32  ;;  %v6779_v45 = vld [vmem:[#allocation16 + $0x280] sm:$0xf]  ;;  %v7622_v47 = vld [vmem:[#allocation16 + $0x284] sm:$0xf0]  ;;  %v6624_v32 = vor.u32 %v7581_v53, %v6621_v22  ;;  %v6661_v53 = vld [vmem:[#allocation16 + $0x198] sm:$0xf0] }
 0x4cd   :  { %3344 = vmatpush.bf16.msrb.mxu0 %v6724_v33  ;;  %v6780_v51 = vor.u32 %v7622_v47, %v6779_v45  ;;  %v7599_v33 = vld [vmem:[#allocation16 + $0x1d4] sm:$0xf]  ;;  %v7633_v45 = vld [vmem:[#allocation16 + $0x2e4] sm:$0xf]  ;;  %v6829_v47 = vld [vmem:[#allocation16 + $0x2e8] sm:$0xf0] }
 0x4ce   :  { %v2503_v46 = vpop.f32.mrf.mxu2  ;;  %v2517_v5 = vpop.f32.mrf.mxu3  ;;  %3290 = vmatmul.bf16.vlgmr.msra.gmra.mxu0 %v8784_v54  ;;  %v6696_v9 = vor.u32 %v7599_v33, %v6693_v1  ;;  %v7609_v1 = vld [vmem:[#allocation16 + $0x224] sm:$0xf]  ;;  %v6805_v60 = vld [vmem:[#allocation16 + $0x2b8] sm:$0xf0]  ;;  %v7607_v38 = vld [vmem:[#allocation16 + $0x214] sm:$0xf] }
 0x4cf   :  { %v2504_v4 = vadd.f32 %v2503_v46, %v1973_v19  ;;  %v6709_v46 = vld [vmem:[#allocation16 + $0x1f8] sm:$0xf0] }
 0x4d0   :  { %3357 = vmatpush.bf16.msrb.mxu1 %v6796_v35  ;;  %v6712_v61 = vor.u32 %v7603_v52, %v6709_v46 }
 0x4d1   :  { %v2518_v13 = vadd.f32 %v2517_v5, %v2504_v4  ;;  %3345 = vmatpush.bf16.msrb.mxu0 %v6716_v2  ;;  %v7583_v5 = vld [vmem:[#allocation16 + $0x154] sm:$0xf]  ;;  %v6837_v2 = vld [vmem:[#allocation16 + $0x2f8] sm:$0xf0] }
 0x4d2   :  { %v6632_v12 = vor.u32 %v7583_v5, %v6629_v6  ;;  %v6749_v5 = vld [vmem:[#allocation16 + $0x248] sm:$0xf0] }
 0x4d3   :  { %v2695_v19 = vmul.f32 %v2671_v14, %v2518_v13  ;;  %v7601_v14 = vld [vmem:[#allocation16 + $0x1e4] sm:$0xf] }
 0x4d4   :  { %3358 = vmatpush.bf16.msrb.mxu1 %v6788_v10  ;;  %v7597_v10 = vld [vmem:[#allocation16 + $0x1c4] sm:$0xf] }
 0x4d5   :  { %v8789_v29 = vpack.c.bf16 %v2695_v19, %v2689_v18  ;;  %3394 = vmatpush.bf16.msra.mxu0 %v6648_v39  ;;  %v6704_v18 = vor.u32 %v7601_v14, %v6701_v15  ;;  %v6776_v19 = vor.u32 %v7619_v8, %v6773_v57  ;;  %v7615_v39 = vld [vmem:[#allocation16 + $0x254] sm:$0xf]  ;;  %v6741_v15 = vld [vmem:[#allocation16 + $0x238] sm:$0xf0] }
 0x4d6   :  { %v6760_v46 = vor.u32 %v7615_v39, %v6757_v31  ;;  %v7611_v14 = vld [vmem:[#allocation16 + $0x234] sm:$0xf]  ;;  %v6725_v39 = vld [vmem:[#allocation16 + $0x218] sm:$0xf0] }
 0x4d7   :  { %3304 = vmatmul.bf16.vlgmr.msra.gmra.mxu1 %v8789_v29 }
 0x4d8   :  { %3359 = vmatpush.bf16.msrb.mxu1 %v6780_v51  ;;  %v7595_v51 = vld [vmem:[#allocation16 + $0x1b4] sm:$0xf] }
 0x4d9   :  { %3395 = vmatpush.bf16.msra.mxu0 %v6640_v44 }
 0x4dc   :  { %3408 = vmatpush.bf16.msra.mxu1 %v6712_v61  ;;  %v6597_v61 = vld [vmem:[#allocation16 + $0x118] sm:$0xf0] }
 0x4dd   :  { %v2529_v36 = vpop.f32.mrf.mxu0  ;;  %v2543_v20 = vpop.f32.mrf.mxu1  ;;  %3396 = vmatpush.bf16.msra.mxu0 %v6632_v12  ;;  %v7631_v12 = vld [vmem:[#allocation16 + $0x2d4] sm:$0xf] }
 0x4de   :  { %v2530_v41 = vadd.f32 %v2529_v36, %v1974_v56  ;;  %v2673_v36 = vperm.slane %v8777_v28, 3 }
 0x4e0   :  { %v2544_v58 = vadd.f32 %v2543_v20, %v2530_v41  ;;  %3409 = vmatpush.bf16.msra.mxu1 %v6704_v18  ;;  %v7635_v20 = vld [vmem:[#allocation16 + $0x2f4] sm:$0xf]  ;;  %v6589_v18 = vld [vmem:[#allocation16 + $0x108] sm:$0xf0] }
 0x4e1   :  { %3397 = vmatpush.bf16.msra.mxu0 %v6624_v32  ;;  %v6840_v44 = vor.u32 %v7635_v20, %v6837_v2  ;;  %v6744_v32 = vor.u32 %v7611_v14, %v6741_v15  ;;  %v6653_v20 = vld [vmem:[#allocation16 + $0x188] sm:$0xf0]  ;;  %v7627_v2 = vld [vmem:[#allocation16 + $0x2b4] sm:$0xf]  ;;  %v7621_v14 = vld [vmem:[#allocation16 + $0x284] sm:$0xf] }
 0x4e2   :  { %v2690_v16 = vmul.f32 %v2666_v62, %v2544_v58  ;;  %v6677_v58 = vld [vmem:[#allocation16 + $0x1b8] sm:$0xf0]  ;;  %v7593_v62 = vld [vmem:[#allocation16 + $0x1a4] sm:$0xf]  ;;  %v2669_v15 = vperm.slane %v8780_v23, 5 }
 0x4e3   :  { %v6680_v6 = vor.u32 %v7595_v51, %v6677_v58  ;;  %v2668_v51 = vperm.slane %v8780_v23, 4  ;;  %v2674_v58 = vperm.slane %v8777_v28, 4 }
 0x4e4   :  { %3410 = vmatpush.bf16.msra.mxu1 %v6696_v9 }
 0x4e5   :  { %v2531_v49 = vpop.f32.mrf.mxu0  ;;  %v2545_v4 = vpop.f32.mrf.mxu1  ;;  %3398 = vmatpush.bf16.msra.mxu0 %v6616_v40 }
 0x4e6   :  { %v2557_v34 = vpop.f32.mrf.mxu2  ;;  %v2571_v7 = vpop.f32.mrf.mxu3  ;;  %v2532_v59 = vadd.f32 %v2531_v49, %v1974_v56  ;;  %v6768_v56 = vor.u32 %v7617_v27, %v6765_v50  ;;  %v1976_v50 = vperm.slane %v8760_v37, 4 }
 0x4e7   :  { %v2558_v13 = vadd.f32 %v2557_v34, %v1975_v48  ;;  %v7577_v34 = vld [vmem:[#allocation16 + $0x124] sm:$0xf] }
 0x4e8   :  { %v2546_v11 = vadd.f32 %v2545_v4, %v2532_v59  ;;  %v7575_v59 = vld [vmem:[#allocation16 + $0x114] sm:$0xf]  ;;  %v7613_v4 = vld [vmem:[#allocation16 + $0x244] sm:$0xf] }
 0x4e9   :  { %v2572_v0 = vadd.f32 %v2571_v7, %v2558_v13  ;;  %v6605_v7 = vld [vmem:[#allocation16 + $0x128] sm:$0xf0]  ;;  %v6600_v8 = vor.u32 %v7575_v59, %v6597_v61  ;;  %v6752_v57 = vor.u32 %v7613_v4, %v6749_v5  ;;  %v6821_v13 = vld [vmem:[#allocation16 + $0x2d8] sm:$0xf0] }
 0x4ea   :  { %v2696_v17 = vmul.f32 %v2672_v3, %v2546_v11  ;;  %v6608_v49 = vor.u32 %v7577_v34, %v6605_v7  ;;  %v6669_v11 = vld [vmem:[#allocation16 + $0x1a8] sm:$0xf0]  ;;  %v6832_v3 = vor.u32 %v7633_v45, %v6829_v47  ;;  %v6824_v27 = vor.u32 %v7631_v12, %v6821_v13 }
 0x4eb   :  { %v2691_v41 = vmul.f32 %v2667_v30, %v2572_v0  ;;  %v7629_v0 = vld [vmem:[#allocation16 + $0x2c4] sm:$0xf]  ;;  %v6733_v30 = vld [vmem:[#allocation16 + $0x228] sm:$0xf0]  ;;  %v6728_v7 = vor.u32 %v7607_v38, %v6725_v39 }
 0x4ec   :  { %v8796_v24 = vpack.c.bf16 %v2696_v17, %v2690_v16  ;;  %3399 = vmatpush.bf16.msra.mxu0 %v6608_v49  ;;  %v6672_v16 = vor.u32 %v7593_v62, %v6669_v11  ;;  %v7573_v17 = vld [vmem:[#allocation16 + $0x104] sm:$0xf]  ;;  %v6797_v45 = vld [vmem:[#allocation16 + $0x2a8] sm:$0xf0]  ;;  %v6789_v62 = vld [vmem:[#allocation16 + $0x298] sm:$0xf0] }
 0x4ed   :  { %v6592_v33 = vor.u32 %v7573_v17, %v6589_v18  ;;  %v6717_v49 = vld [vmem:[#allocation16 + $0x208] sm:$0xf0]  ;;  %v2675_v17 = vperm.slane %v8777_v28, 5 }
 0x4ee   :  { %v2559_v26 = vpop.f32.mrf.mxu2  ;;  %v2573_v35 = vpop.f32.mrf.mxu3  ;;  %3318 = vmatmul.bf16.vlgmr.msra.gmra.mxu2 %v8796_v24 }
 0x4ef   :  { %v2560_v63 = vadd.f32 %v2559_v26, %v1975_v48  ;;  %3422 = vmatpush.bf16.msra.mxu2 %v6776_v19  ;;  %v6688_v48 = vor.u32 %v7597_v10, %v6685_v43  ;;  %v7591_v19 = vld [vmem:[#allocation16 + $0x194] sm:$0xf]  ;;  %v6808_v43 = vor.u32 %v7627_v2, %v6805_v60 }
 0x4f0   :  { %3400 = vmatpush.bf16.msra.mxu0 %v6600_v8 }
 0x4f1   :  { %v2574_v21 = vadd.f32 %v2573_v35, %v2560_v63  ;;  %3411 = vmatpush.bf16.msra.mxu1 %v6688_v48  ;;  %v6813_v63 = vld [vmem:[#allocation16 + $0x2c8] sm:$0xf0]  ;;  %v6664_v35 = vor.u32 %v7591_v19, %v6661_v53  ;;  %v7605_v48 = vld [vmem:[#allocation16 + $0x204] sm:$0xf] }
 0x4f2   :  { %v6816_v9 = vor.u32 %v7629_v0, %v6813_v63  ;;  %v6720_v5 = vor.u32 %v7605_v48, %v6717_v49 }
 0x4f3   :  { %v2697_v42 = vmul.f32 %v2673_v36, %v2574_v21  ;;  %3423 = vmatpush.bf16.msra.mxu2 %v6768_v56  ;;  %v7589_v36 = vld [vmem:[#allocation16 + $0x184] sm:$0xf]  ;;  %v6736_v56 = vor.u32 %v7609_v1, %v6733_v30 }
 0x4f4   :  { %3401 = vmatpush.bf16.msra.mxu0 %v6592_v33  ;;  %v6656_v31 = vor.u32 %v7589_v36, %v6653_v20 }
 0x4f5   :  { %v8801_v52 = vpack.c.bf16 %v2697_v42, %v2691_v41  ;;  %3412 = vmatpush.bf16.msra.mxu1 %v6680_v6  ;;  %v1977_v41 = vperm.slane %v8760_v37, 5  ;;  %v7623_v6 = vld [vmem:[#allocation16 + $0x294] sm:$0xf] }
 0x4f6   :  { %v6792_v12 = vor.u32 %v7623_v6, %v6789_v62 }
 0x4f7   :  { %3332 = vmatmul.bf16.vlgmr.msra.gmra.mxu3 %v8801_v52  ;;  %3424 = vmatpush.bf16.msra.mxu2 %v6760_v46 }
 0x4f8   :  { %3436 = vmatpush.bf16.msra.mxu3 %v6840_v44  ;;  %v7625_v44 = vld [vmem:[#allocation16 + $0x2a4] sm:$0xf] }
 0x4f9   :  { %3413 = vmatpush.bf16.msra.mxu1 %v6672_v16  ;;  %v6800_v59 = vor.u32 %v7625_v44, %v6797_v45 }
 0x4fb   :  { %3425 = vmatpush.bf16.msra.mxu2 %v6752_v57 }
 0x4fc   :  { %3437 = vmatpush.bf16.msra.mxu3 %v6832_v3 }
 0x4fd   :  { %v2585_v22 = vpop.f32.mrf.mxu0  ;;  %v2599_v26 = vpop.f32.mrf.mxu1  ;;  %3414 = vmatpush.bf16.msra.mxu1 %v6664_v35 }
 0x4fe   :  { %3374 = vmatmul.bf16.vlgmr.msrb.gmra.mxu2 %v8784_v54  ;;  %v2586_v21 = vadd.f32 %v2585_v22, %v1976_v50 }
 0x4ff   :  { %3426 = vmatpush.bf16.msra.mxu2 %v6744_v32 }
 0x500   :  { %3438 = vmatpush.bf16.msra.mxu3 %v6824_v27  ;;  %v2600_v34 = vadd.f32 %v2599_v26, %v2586_v21 }
 0x501   :  { %3415 = vmatpush.bf16.msra.mxu1 %v6656_v31 }
 0x502   :  { %v2692_v61 = vmul.f32 %v2668_v51, %v2600_v34 }
 0x503   :  { %3427 = vmatpush.bf16.msra.mxu2 %v6736_v56 }
 0x504   :  { %v2613_v40 = vpop.f32.mrf.mxu2  ;;  %v2627_v10 = vpop.f32.mrf.mxu3  ;;  %3439 = vmatpush.bf16.msra.mxu3 %v6816_v9 }
 0x505   :  { %v2587_v42 = vpop.f32.mrf.mxu0  ;;  %v2601_v47 = vpop.f32.mrf.mxu1  ;;  %v2614_v37 = vadd.f32 %v2613_v40, %v1977_v41 }
 0x506   :  { %v2588_v54 = vadd.f32 %v2587_v42, %v1976_v50 }
 0x507   :  { %3388 = vmatmul.bf16.vlgmr.msrb.gmra.mxu3 %v8789_v29  ;;  %3428 = vmatpush.bf16.msra.mxu2 %v6728_v7  ;;  %v2628_v8 = vadd.f32 %v2627_v10, %v2614_v37  ;;  %v6781_v29 = vld [vmem:[#allocation16 + $0x288] sm:$0xf0] }
 0x508   :  { %v2602_v46 = vadd.f32 %v2601_v47, %v2588_v54  ;;  %3440 = vmatpush.bf16.msra.mxu3 %v6808_v43  ;;  %v6784_v53 = vor.u32 %v7621_v14, %v6781_v29 }
 0x509   :  { %v2693_v18 = vmul.f32 %v2669_v15, %v2628_v8 }
 0x50a   :  { %v2698_v4 = vmul.f32 %v2674_v58, %v2602_v46 }
 0x50b   :  { %3429 = vmatpush.bf16.msra.mxu2 %v6720_v5 }
 0x50c   :  { %v2704_v11 = vpack.c.bf16 %v2698_v4, %v2692_v61  ;;  %v2615_v3 = vpop.f32.mrf.mxu2  ;;  %3441 = vmatpush.bf16.msra.mxu3 %v6800_v59  ;;  %v2629_v13 = vpop.f32.mrf.mxu3 }
 0x50d   :  { %v2616_v57 = vadd.f32 %v2615_v3, %v1977_v41 }
 0x50e   :  { %3346 = vmatmul.bf16.vlgmr.msrb.gmra.mxu0 %v2704_v11  ;;  %3430 = vmatmul.bf16.vlgmr.msra.gmra.mxu2 %v2704_v11 }
 0x50f   :  { %v2630_v16 = vadd.f32 %v2629_v13, %v2616_v57 }
 0x510   :  { %3442 = vmatpush.bf16.msra.mxu3 %v6792_v12 }
 0x511   :  { %v2699_v19 = vmul.f32 %v2675_v17, %v2630_v16 }
 0x513   :  { %v2705_v22 = vpack.c.bf16 %v2699_v19, %v2693_v18 }
 0x514   :  { %3443 = vmatpush.bf16.msra.mxu3 %v6784_v53 }
 0x515   :  { %3360 = vmatmul.bf16.vlgmr.msrb.gmra.mxu1 %v2705_v22 }
 0x517   :  { %3444 = vmatmul.bf16.vlgmr.msra.gmra.mxu3 %v2705_v22 }
 0x51e   :  { %3402 = vmatmul.bf16.vlgmr.msra.gmra.mxu0 %v8796_v24 }
 0x525   :  { %3416 = vmatmul.bf16.vlgmr.msra.gmra.mxu1 %v8801_v52 }
 0x54b   :  { %v3291_v26 = vpop.f32.mrf.mxu0 }
 0x553   :  { %v3293_v32 = vpop.f32.mrf.mxu0 }
 0x554   :  { %v3305_v23 = vpop.f32.mrf.mxu1 }
 0x555   :  { %v3306_v33 = vadd.f32 %v3305_v23, %v3291_v26 }
 0x55c   :  { %v3307_v63 = vpop.f32.mrf.mxu1 }
 0x55d   :  { %v3308_v56 = vadd.f32 %v3307_v63, %v3293_v32 }
 0x571   :  { %v3319_v27 = vpop.f32.mrf.mxu2 }
 0x572   :  { %v3320_v30 = vadd.f32 %v3319_v27, %v3306_v33 }
 0x579   :  { %v3321_v0 = vpop.f32.mrf.mxu2 }
 0x57a   :  { %v3333_v50 = vpop.f32.mrf.mxu3  ;;  %v3322_v52 = vadd.f32 %v3321_v0, %v3308_v56 }
 0x57b   :  { %v3334_v36 = vadd.f32 %v3333_v50, %v3320_v30 }
 0x581   :  { %v3375_v35 = vpop.f32.mrf.mxu2 }
 0x582   :  { %v3335_v28 = vpop.f32.mrf.mxu3 }
 0x583   :  { %v3336_v39 = vadd.f32 %v3335_v28, %v3322_v52 }
 0x589   :  { %v3377_v40 = vpop.f32.mrf.mxu2 }
 0x58a   :  { %v3389_v20 = vpop.f32.mrf.mxu3 }
 0x58b   :  { %v3347_v1 = vpop.f32.mrf.mxu0  ;;  %v3390_v48 = vadd.f32 %v3389_v20, %v3375_v35 }
 0x58c   :  { %v3348_v9 = vadd.f32 %v3347_v1, %v3334_v36 }
 0x591   :  { %v3431_v37 = vpop.f32.mrf.mxu2 }
 0x592   :  { %v3361_v21 = vpop.f32.mrf.mxu1  ;;  %v3391_v41 = vpop.f32.mrf.mxu3 }
 0x593   :  { %v3362_v24 = vadd.f32 %v3361_v21, %v3348_v9  ;;  %v3349_v2 = vpop.f32.mrf.mxu0  ;;  %v3392_v29 = vadd.f32 %v3391_v41, %v3377_v40 }
 0x594   :  { %v3350_v10 = vadd.f32 %v3349_v2, %v3336_v39 }
 0x595   :  { %v8814_v60 = vmax.f32 %v3362_v24, 0.0  ;;  %v3502_v38 = vsub.f32 0.0, %v3362_v24 }
 0x597   :  { %7808 = vrsqrt.f32 %v8814_v60  ;;  %v8817_v31 = vmax.f32 %v3502_v38, 0.0  ;;  %vm3461_vm9 = vcmp.eq.f32.partialorder %v8814_v60, inf  ;;  %v3464_v27 = vand.u32 2147483648, %v8814_v60 }
 0x598   :  { %vm3463_vm11 = vcmp.eq.f32.partialorder %v8814_v60, 0.0 }
 0x599   :  { %7810 = vrsqrt.f32 %v8817_v31  ;;  %vm3517_vm10 = vcmp.eq.f32.partialorder %v8817_v31, inf  ;;  %v3520_v0 = vand.u32 2147483648, %v8817_v31  ;;  %v3433_v1 = vpop.f32.mrf.mxu2  ;;  %vm3519_vm12 = vcmp.eq.f32.partialorder %v8817_v31, 0.0 }
 0x59a   :  { %v3363_v42 = vpop.f32.mrf.mxu1  ;;  %v3445_v6 = vpop.f32.mrf.mxu3 }
 0x59b   :  { %v3364_v43 = vadd.f32 %v3363_v42, %v3350_v10  ;;  %v3403_v34 = vpop.f32.mrf.mxu0 }
 0x59c   :  { %v3404_v58 = vadd.f32 %v3403_v34, %v3390_v48 }
 0x59d   :  { %v7809_v54 = vpop.eup %7808  ;;  %v8820_v7 = vmax.f32 %v3364_v43, 0.0  ;;  %v3504_v44 = vsub.f32 0.0, %v3364_v43 }
 0x59e   :  { %v3455_v45 = vmul.f32 %v7809_v54, %v8814_v60 }
 0x59f   :  { %v7811_v47 = vpop.eup %7810  ;;  %7812 = vrsqrt.f32 %v8820_v7  ;;  %v8824_v49 = vmax.f32 %v3504_v44, 0.0  ;;  %vm3485_vm14 = vcmp.eq.f32.partialorder %v8820_v7, inf }
 0x5a0   :  { %v3456_v51 = vmul.f32 %v7809_v54, %v3455_v45  ;;  %v3511_v46 = vmul.f32 %v7811_v47, %v8817_v31 }
 0x5a1   :  { %7814 = vrsqrt.f32 %v8824_v49  ;;  %vm3541_vm15 = vcmp.eq.f32.partialorder %v8824_v49, inf  ;;  %vm3543_vm5 = vcmp.eq.f32.partialorder %v8824_v49, 0.0 }
 0x5a2   :  { %v3417_v59 = vpop.f32.mrf.mxu1  ;;  %v3457_v61 = vmul.f32 0.5, %v3456_v51  ;;  %v3512_v4 = vmul.f32 %v7811_v47, %v3511_v46  ;;  %v3447_v21 = vpop.f32.mrf.mxu3 }
 0x5a3   :  { %v3418_v5 = vadd.f32 %v3417_v59, %v3404_v58  ;;  %v3405_v57 = vpop.f32.mrf.mxu0 }
 0x5a4   :  { %v3458_v62 = vsub.f32 1.5, %v3457_v61  ;;  %v3513_v11 = vmul.f32 0.5, %v3512_v4  ;;  %v3406_v26 = vadd.f32 %v3405_v57, %v3392_v29 }
 0x5a5   :  { %v7813_v3 = vpop.eup %7812  ;;  %v3432_v8 = vadd.f32 %v3431_v37, %v3418_v5 }
 0x5a6   :  { %v3459_v12 = vmul.f32 %v7809_v54, %v3458_v62  ;;  %v3514_v13 = vsub.f32 1.5, %v3513_v11  ;;  %v3479_v18 = vmul.f32 %v7813_v3, %v8820_v7 }
 0x5a7   :  { %v7815_v14 = vpop.eup %7814  ;;  %v3446_v15 = vadd.f32 %v3445_v6, %v3432_v8 }
 0x5a8   :  { %v3460_v16 = vmul.f32 %v3459_v12, %v8814_v60  ;;  %v3515_v17 = vmul.f32 %v7811_v47, %v3514_v13  ;;  %v3535_v19 = vmul.f32 %v7815_v14, %v8824_v49  ;;  %v3480_v35 = vmul.f32 %v7813_v3, %v3479_v18 }
 0x5a9   :  { %v8832_v53 = vmax.f32 %v3446_v15, 0.0  ;;  %v3503_v22 = vsub.f32 0.0, %v3446_v15 }
 0x5aa   :  { %v3419_v50 = vpop.f32.mrf.mxu1  ;;  %v3462_v23 = vsel %vm3461_vm9, %v8814_v60, %v3460_v16  ;;  %v3516_v32 = vmul.f32 %v3515_v17, %v8817_v31  ;;  %v3536_v33 = vmul.f32 %v7815_v14, %v3535_v19  ;;  %v3481_v39 = vmul.f32 0.5, %v3480_v35 }
 0x5ab   :  { %v8839_v28 = vmax.f32 %v3503_v22, 0.0  ;;  %v3420_v63 = vadd.f32 %v3419_v50, %v3406_v26  ;;  %7816 = vrsqrt.f32 %v8832_v53  ;;  %v3465_v20 = vsel %vm3463_vm11, %v3464_v27, %v3462_v23 }
 0x5ac   :  { %v3518_v30 = vsel %vm3517_vm10, %v8817_v31, %v3516_v32  ;;  %v3537_v2 = vmul.f32 0.5, %v3536_v33  ;;  %v3482_v34 = vsub.f32 1.5, %v3481_v39  ;;  %vm3473_vm2 = vcmp.eq.f32.partialorder %v8832_v53, inf }
 0x5ad   :  { %v3434_v36 = vadd.f32 %v3433_v1, %v3420_v63  ;;  %v3521_v9 = vsel %vm3519_vm12, %v3520_v0, %v3518_v30  ;;  %7818 = vrsqrt.f32 %v8839_v28  ;;  %vm3475_vm4 = vcmp.eq.f32.partialorder %v8832_v53, 0.0 }
 0x5ae   :  { %v8846_v56 = vsub.f32 %v3465_v20, %v3521_v9  ;;  %v3538_v41 = vsub.f32 1.5, %v3537_v2  ;;  %v3483_v46 = vmul.f32 %v7813_v3, %v3482_v34  ;;  %vm3529_vm6 = vcmp.eq.f32.partialorder %v8839_v28, inf }
 0x5af   :  { %v3448_v24 = vadd.f32 %v3447_v21, %v3434_v36  ;;  %vm3531_vm8 = vcmp.eq.f32.partialorder %v8839_v28, 0.0  ;;  %v3532_v29 = vand.u32 2147483648, %v8839_v28  ;;  %v3544_v27 = vand.u32 2147483648, %v8824_v49 }
 0x5b0   :  { %3564 = vrot.lane.b32.xlu2 %v8846_v56, %s8333_s0  ;;  %v3539_v45 = vmul.f32 %v7815_v14, %v3538_v41  ;;  %v3484_v3 = vmul.f32 %v3483_v46, %v8820_v7  ;;  %v3476_v14 = vand.u32 2147483648, %v8832_v53  ;;  %v3580_v19 = vrot.slane %v8846_v56, 4 }
 0x5b1   :  { %v7817_v52 = vpop.eup %7816  ;;  %v8850_v60 = vmax.f32 %v3448_v24, 0.0  ;;  %v3505_v38 = vsub.f32 0.0, %v3448_v24  ;;  %vm3487_vm9 = vcmp.eq.f32.partialorder %v8820_v7, 0.0  ;;  %v8338_v41 = vmov 1983009808  }
 0x5b2   :  { %v3467_v31 = vmul.f32 %v7817_v52, %v8832_v53  ;;  %v3540_v4 = vmul.f32 %v3539_v45, %v8824_v49  ;;  %v3486_v0 = vsel %vm3485_vm14, %v8820_v7, %v3484_v3 }
 0x5b3   :  { %v7819_v40 = vpop.eup %7818  ;;  %v8853_v10 = vmax.f32 %v3505_v38, 0.0  ;;  %7820 = vrsqrt.f32 %v8850_v60  ;;  %vm3497_vm10 = vcmp.eq.f32.partialorder %v8850_v60, inf  ;;  %v3500_v9 = vand.u32 2147483648, %v8850_v60 }
 0x5b4   :  { %v3468_v42 = vmul.f32 %v7817_v52, %v3467_v31  ;;  %v3523_v43 = vmul.f32 %v7819_v40, %v8839_v28  ;;  %v3542_v18 = vsel %vm3541_vm15, %v8824_v49, %v3540_v4  ;;  %vm3499_vm12 = vcmp.eq.f32.partialorder %v8850_v60, 0.0 }
 0x5b5   :  { %7822 = vrsqrt.f32 %v8853_v10  ;;  %v3545_v63 = vsel %vm3543_vm5, %v3544_v27, %v3542_v18  ;;  %vm3553_vm11 = vcmp.eq.f32.partialorder %v8853_v10, inf  ;;  %v3556_v21 = vand.u32 2147483648, %v8853_v10 }
 0x5b6   :  { %v3469_v54 = vmul.f32 0.5, %v3468_v42  ;;  %v3524_v44 = vmul.f32 %v7819_v40, %v3523_v43  ;;  %vm3555_vm14 = vcmp.eq.f32.partialorder %v8853_v10, 0.0  ;;  %v3583_v42 = vunpack.c.l.s4 %v8338_v41 }
 0x5b7   :  { %vm3706_vm15 = vcmask 519168  }
 0x5b8   :  { %v3470_v47 = vsub.f32 1.5, %v3469_v54  ;;  %v3525_v48 = vmul.f32 0.5, %v3524_v44 }
 0x5b9   :  { %v7821_v51 = vpop.eup %7820 }
 0x5ba   :  { %v3471_v58 = vmul.f32 %v7817_v52, %v3470_v47  ;;  %v3526_v37 = vsub.f32 1.5, %v3525_v48  ;;  %v3491_v59 = vmul.f32 %v7821_v51, %v8850_v60 }
 0x5bb   :  { %v7823_v61 = vpop.eup %7822 }
 0x5bc   :  { %v3472_v5 = vmul.f32 %v3471_v58, %v8832_v53  ;;  %v3527_v6 = vmul.f32 %v7819_v40, %v3526_v37  ;;  %v3492_v62 = vmul.f32 %v7821_v51, %v3491_v59  ;;  %v3547_v11 = vmul.f32 %v7823_v61, %v8853_v10 }
 0x5be   :  { %v3474_v8 = vsel %vm3473_vm2, %v8832_v53, %v3472_v5  ;;  %v3528_v57 = vmul.f32 %v3527_v6, %v8839_v28  ;;  %v3493_v12 = vmul.f32 0.5, %v3492_v62  ;;  %v3548_v13 = vmul.f32 %v7823_v61, %v3547_v11 }
 0x5bf   :  { %v3477_v22 = vsel %vm3475_vm4, %v3476_v14, %v3474_v8 }
 0x5c0   :  { %v3530_v15 = vsel %vm3529_vm6, %v8839_v28, %v3528_v57  ;;  %v3494_v16 = vsub.f32 1.5, %v3493_v12  ;;  %v3549_v17 = vmul.f32 0.5, %v3548_v13  ;;  %v3488_v28 = vand.u32 2147483648, %v8820_v7 }
 0x5c1   :  { %v3533_v26 = vsel %vm3531_vm8, %v3532_v29, %v3530_v15 }
 0x5c2   :  { %v3559_v50 = vsub.f32 %v3477_v22, %v3533_v26  ;;  %v3495_v23 = vmul.f32 %v7821_v51, %v3494_v16  ;;  %v3550_v32 = vsub.f32 1.5, %v3549_v17  ;;  %v3489_v35 = vsel %vm3487_vm9, %v3488_v28, %v3486_v0 }
 0x5c3   :  { %v3560_v49 = vsub.f32 %v3489_v35, %v3545_v63 }
 0x5c4   :  { %3572 = vrot.lane.b32.xlu0 %v3559_v50, %s8333_s0  ;;  %v3578_v53 = vrot.slane %v3559_v50, 4  ;;  %v3581_v33 = vsel %vm721_vm13, %v3559_v50, %v3580_v19  ;;  %v3496_v1 = vmul.f32 %v3495_v23, %v8850_v60  ;;  %v3551_v30 = vmul.f32 %v7823_v61, %v3550_v32 }
 0x5c5   :  { %v3636_v38 = vrot.slane %v3560_v49, 4 }
 0x5c6   :  { %v3579_v36 = vsel %vm721_vm13, %v3578_v53, %v8846_v56  ;;  %v3498_v20 = vsel %vm3497_vm10, %v8850_v60, %v3496_v1  ;;  %v3552_v7 = vmul.f32 %v3551_v30, %v8853_v10  ;;  %v8907_v60 = vunpack.c.0.s8 %v3583_v42 }
 0x5c7   :  { %v3501_v2 = vsel %vm3499_vm12, %v3500_v9, %v3498_v20 }
 0x5c8   :  { %v3554_v24 = vsel %vm3553_vm11, %v8853_v10, %v3552_v7  ;;  %9914 = vst [vmem:[#allocation41_spill] sm:$0xff] %v8907_v60  ;;  %v3589_v10 = vperm.slane %v3581_v33, %v8907_v60  ;;  %v3585_v54 = vperm.slane %v3579_v36, %v8907_v60 }
 0x5c9   :  { %v3557_v52 = vsel %vm3555_vm14, %v3556_v21, %v3554_v24 }
 0x5ca   :  { %v3561_v56 = vsub.f32 %v3501_v2, %v3557_v52  ;;  %v3616_v48 = vrot.slane %v3589_v10, 4  ;;  %v3604_v61 = vrot.slane %v3585_v54, 4 }
 0x5cc   :  { %3574 = vrot.lane.b32.xlu1 %v3561_v56, %s8333_s0  ;;  %v3634_v39 = vrot.slane %v3561_v56, 4  ;;  %3566 = vrot.lane.b32.xlu0 %v3560_v49, %s8333_s0  ;;  %v3637_v31 = vsel %vm721_vm13, %v3561_v56, %v3636_v38 }
 0x5cd   :  { %v3645_v18 = vperm.slane %v3637_v31, %v8907_v60 }
 0x5ce   :  { %v3635_v40 = vsel %vm721_vm13, %v3634_v39, %v3560_v49 }
 0x5cf   :  { %v3641_v27 = vperm.slane %v3635_v40, %v8907_v60  ;;  %v3672_v36 = vrot.slane %v3645_v18, 4 }
 0x5d1   :  { %v3660_v20 = vrot.slane %v3641_v27, 4 }
 0x60a   :  { %v3565_v43 = vpop.permute.xlu2 %3564 }
 0x60b   :  { %v3592_v34 = vrot.slane %v3565_v43, 4 }
 0x636   :  { %v3573_v44 = vpop.permute.xlu0 %3572 }
 0x637   :  { %v3590_v45 = vrot.slane %v3573_v44, 4  ;;  %v3593_v47 = vsel %vm721_vm13, %v3573_v44, %v3592_v34 }
 0x638   :  { %v3601_v51 = vperm.slane %v3593_v47, %v8907_v60 }
 0x639   :  { %v3591_v46 = vsel %vm721_vm13, %v3590_v45, %v3565_v43 }
 0x63a   :  { %v3597_v58 = vperm.slane %v3591_v46, %v8907_v60  ;;  %v3614_v37 = vrot.slane %v3601_v51, 4  ;;  %v3617_v59 = vsel %vm721_vm13, %v3601_v51, %v3616_v48 }
 0x63b   :  { %v8917_v4 = vperm.slane %v3617_v59, %v8655_v55 }
 0x63c   :  { %v3602_v5 = vrot.slane %v3597_v58, 4  ;;  %v3615_v6 = vsel %vm721_vm13, %v3614_v37, %v3589_v10  ;;  %v3605_v62 = vsel %vm721_vm13, %v3597_v58, %v3604_v61 }
 0x63d   :  { %v3696_v11 = vmul.f32 %v8917_v4, %v8917_v4  ;;  %v8924_v3 = vperm.slane %v3605_v62, %v8655_v55  ;;  %v8927_v8 = vperm.slane %v3615_v6, %v8655_v55  ;;  %v3632_v57 = vrot.slane %v8917_v4, 4 }
 0x63e   :  { %v3575_v12 = vpop.permute.xlu1 %3574  ;;  %v3567_v13 = vpop.permute.xlu0 %3566  ;;  %v3603_v14 = vsel %vm721_vm13, %v3602_v5, %v3585_v54 }
 0x63f   :  { %v3646_v29 = vrot.slane %v3575_v12, 4  ;;  %v3648_v15 = vrot.slane %v3567_v13, 4  ;;  %v3725_v16 = vsel %vm3706_vm15, %v3696_v11, 0.0  ;;  %v3692_v17 = vmul.f32 %v8924_v3, %v8924_v3 }
 0x640   :  { %3726 = vadd.xlane.f32.xlu1 %v3725_v16  ;;  %v3630_v19 = vrot.slane %v8927_v8, 4  ;;  %v8937_v22 = vsel %vm721_vm13, 0.0, %v3632_v57  ;;  %v8940_v26 = vperm.slane %v3603_v14, %v8655_v55  ;;  %v3628_v35 = vrot.slane %v8924_v3, 4 }
 0x641   :  { %v3647_v50 = vsel %vm721_vm13, %v3646_v29, %v3567_v13  ;;  %v3649_v23 = vsel %vm721_vm13, %v3575_v12, %v3648_v15  ;;  %v3713_v32 = vsel %vm3706_vm15, %v3692_v17, 0.0  ;;  %v3697_v33 = vmul.f32 %v8937_v22, %v8937_v22 }
 0x642   :  { %v3653_v0 = vperm.slane %v3647_v50, %v8907_v60  ;;  %v3657_v28 = vperm.slane %v3649_v23, %v8907_v60  ;;  %3714 = vadd.xlane.f32.xlu2 %v3713_v32  ;;  %v8949_v63 = vsel %vm721_vm13, 0.0, %v3630_v19  ;;  %v3626_v1 = vrot.slane %v8940_v26, 4 }
 0x643   :  { %v3695_v53 = vmul.f32 %v8949_v63, %v8949_v63  ;;  %v3690_v49 = vmul.f32 %v8940_v26, %v8940_v26  ;;  %v3728_v56 = vsel %vm3706_vm15, %v3697_v33, 0.0  ;;  %v8968_v38 = vsel %vm721_vm13, 0.0, %v3628_v35 }
 0x644   :  { %v3658_v30 = vrot.slane %v3653_v0, 4  ;;  %v8961_v9 = vsel %vm721_vm13, 0.0, %v3626_v1  ;;  %v3673_v24 = vsel %vm721_vm13, %v3657_v28, %v3672_v36  ;;  %v3661_v2 = vsel %vm721_vm13, %v3653_v0, %v3660_v20 }
 0x645   :  { %v3722_v7 = vsel %vm3706_vm15, %v3695_v53, 0.0  ;;  %v3670_v52 = vrot.slane %v3657_v28, 4  ;;  %v8971_v39 = vperm.slane %v3673_v24, %v8655_v55  ;;  %v3707_v31 = vsel %vm3706_vm15, %v3690_v49, 0.0 }
 0x646   :  { %3723 = vadd.xlane.f32.xlu0 %v3722_v7  ;;  %v3659_v21 = vsel %vm721_vm13, %v3658_v30, %v3641_v27  ;;  %v3691_v40 = vmul.f32 %v8961_v9, %v8961_v9  ;;  %v8980_v42 = vperm.slane %v3661_v2, %v8655_v55  ;;  %v3693_v43 = vmul.f32 %v8968_v38, %v8968_v38 }
 0x647   :  { %9915 = vst [vmem:[#allocation42_spill] sm:$0xff] %v8971_v39  ;;  %v8977_v41 = vperm.slane %v3659_v21, %v8655_v55  ;;  %v3671_v10 = vsel %vm721_vm13, %v3670_v52, %v3645_v18  ;;  %v3688_v34 = vrot.slane %v8971_v39, 4  ;;  %v3704_v29 = vmul.f32 %v8971_v39, %v8971_v39 }
 0x648   :  { %3729 = vadd.xlane.f32.xlu1 %v3728_v56  ;;  %9917 = vst [vmem:[#allocation44_spill] sm:$0xff] %v8980_v42  ;;  %v3710_v54 = vsel %vm3706_vm15, %v3691_v40, 0.0  ;;  %v3684_v45 = vrot.slane %v8980_v42, 4  ;;  %v8991_v47 = vperm.slane %v3671_v10, %v8655_v55  ;;  %v3716_v48 = vsel %vm3706_vm15, %v3693_v43, 0.0 }
 0x649   :  { %9916 = vst [vmem:[#allocation43_spill] sm:$0xff] %v8977_v41  ;;  %v3698_v44 = vmul.f32 %v8977_v41, %v8977_v41  ;;  %v8995_v51 = vsel %vm721_vm13, 0.0, %v3688_v34  ;;  %v3700_v58 = vmul.f32 %v8980_v42, %v8980_v42  ;;  %v3682_v11 = vrot.slane %v8977_v41, 4 }
 0x64a   :  { %3708 = vadd.xlane.f32.xlu2 %v3707_v31  ;;  %9918 = vst [vmem:[#allocation45_spill] sm:$0xff] %v8991_v47  ;;  %v9001_v37 = vsel %vm721_vm13, 0.0, %v3684_v45  ;;  %v3686_v59 = vrot.slane %v8991_v47, 4  ;;  %v3705_v61 = vmul.f32 %v8995_v51, %v8995_v51  ;;  %v3749_v17 = vsel %vm3706_vm15, %v3704_v29, 0.0 }
 0x64b   :  { %9919 = vst [vmem:[#allocation46_spill] sm:$0xff] %v8995_v51  ;;  %v3731_v46 = vsel %vm3706_vm15, %v3698_v44, 0.0  ;;  %v3737_v5 = vsel %vm3706_vm15, %v3700_v58, 0.0  ;;  %v3701_v6 = vmul.f32 %v9001_v37, %v9001_v37  ;;  %v9018_v14 = vsel %vm721_vm13, 0.0, %v3682_v11 }
 0x64c   :  { %9920 = vst [vmem:[#allocation47_spill] sm:$0xff] %v9001_v37  ;;  %v9010_v62 = vsel %vm721_vm13, 0.0, %v3686_v59  ;;  %v3752_v57 = vsel %vm3706_vm15, %v3705_v61, 0.0  ;;  %v3699_v16 = vmul.f32 %v9018_v14, %v9018_v14  ;;  %v3702_v19 = vmul.f32 %v8991_v47, %v8991_v47 }
 0x64d   :  { %9921 = vst [vmem:[#allocation48_spill] sm:$0xff] %v9010_v62  ;;  %v3740_v12 = vsel %vm3706_vm15, %v3701_v6, 0.0  ;;  %v3703_v13 = vmul.f32 %v9010_v62, %v9010_v62  ;;  %v3694_v50 = vmul.f32 %v8927_v8, %v8927_v8 }
 0x64e   :  { %3711 = vadd.xlane.f32.xlu0 %v3710_v54  ;;  %9922 = vst [vmem:[#allocation49_spill] sm:$0xff] %v9018_v14  ;;  %v3734_v18 = vsel %vm3706_vm15, %v3699_v16, 0.0  ;;  %v3743_v27 = vsel %vm3706_vm15, %v3702_v19, 0.0 }
 0x64f   :  { %v3746_v15 = vsel %vm3706_vm15, %v3703_v13, 0.0  ;;  %v3719_v23 = vsel %vm3706_vm15, %v3694_v50, 0.0 }
 0x650   :  { %3717 = vadd.xlane.f32.xlu1 %v3716_v48 }
 0x652   :  { %3732 = vadd.xlane.f32.xlu2 %v3731_v46 }
 0x656   :  { %3738 = vadd.xlane.f32.xlu0 %v3737_v5 }
 0x658   :  { %3753 = vadd.xlane.f32.xlu1 %v3752_v57 }
 0x65a   :  { %3741 = vadd.xlane.f32.xlu2 %v3740_v12 }
 0x65e   :  { %3747 = vadd.xlane.f32.xlu0 %v3746_v15 }
 0x660   :  { %3750 = vadd.xlane.f32.xlu1 %v3749_v17 }
 0x662   :  { %3735 = vadd.xlane.f32.xlu2 %v3734_v18 }
 0x666   :  { %3744 = vadd.xlane.f32.xlu0 %v3743_v27 }
 0x66a   :  { %3720 = vadd.xlane.f32.xlu2 %v3719_v23 }
 0x6b3   :  { %v3727_v32 = vpop.xlane.xlu1 %3726 }
 0x6b4   :  { %7824 = vrsqrt.f32 %v3727_v32  ;;  %vm3834_vm2 = vcmp.eq.f32.partialorder %v3727_v32, inf  ;;  %vm3836_vm4 = vcmp.eq.f32.partialorder %v3727_v32, 0.0  ;;  %v3837_v40 = vand.u32 2147483648, %v3727_v32 }
 0x6b5   :  { %v9033_v0 = vpop.xlane.xlu2 %3714 }
 0x6b6   :  { %7826 = vrsqrt.f32 %v9033_v0  ;;  %vm3786_vm5 = vcmp.eq.f32.partialorder %v9033_v0, inf  ;;  %vm3788_vm6 = vcmp.eq.f32.partialorder %v9033_v0, 0.0  ;;  %v3789_v48 = vand.u32 2147483648, %v9033_v0 }
 0x6b9   :  { %v9036_v28 = vpop.xlane.xlu0 %3723 }
 0x6ba   :  { %v7825_v53 = vpop.eup %7824  ;;  %7828 = vrsqrt.f32 %v9036_v28  ;;  %vm3822_vm8 = vcmp.eq.f32.partialorder %v9036_v28, inf  ;;  %vm3824_vm9 = vcmp.eq.f32.partialorder %v9036_v28, 0.0  ;;  %v3825_v6 = vand.u32 2147483648, %v9036_v28 }
 0x6bb   :  { %v3828_v33 = vmul.f32 %v7825_v53, %v3727_v32  ;;  %v9039_v1 = vpop.xlane.xlu1 %3729 }
 0x6bc   :  { %v7827_v30 = vpop.eup %7826  ;;  %7830 = vrsqrt.f32 %v9039_v1  ;;  %vm3846_vm10 = vcmp.eq.f32.partialorder %v9039_v1, inf  ;;  %vm3848_vm11 = vcmp.eq.f32.partialorder %v9039_v1, 0.0  ;;  %v3849_v16 = vand.u32 2147483648, %v9039_v1 }
 0x6bd   :  { %v3829_v35 = vmul.f32 %v7825_v53, %v3828_v33  ;;  %v3780_v36 = vmul.f32 %v7827_v30, %v9033_v0  ;;  %v9043_v20 = vpop.xlane.xlu2 %3708 }
 0x6be   :  { %7832 = vrsqrt.f32 %v9043_v20  ;;  %vm3762_vm12 = vcmp.eq.f32.partialorder %v9043_v20, inf  ;;  %vm3764_vm14 = vcmp.eq.f32.partialorder %v9043_v20, 0.0 }
 0x6bf   :  { %v3830_v7 = vmul.f32 0.5, %v3829_v35  ;;  %v3781_v49 = vmul.f32 %v7827_v30, %v3780_v36 }
 0x6c0   :  { %v7829_v21 = vpop.eup %7828 }
 0x6c1   :  { %v3831_v24 = vsub.f32 1.5, %v3830_v7  ;;  %v3782_v2 = vmul.f32 0.5, %v3781_v49  ;;  %v3816_v52 = vmul.f32 %v7829_v21, %v9036_v28  ;;  %v9047_v56 = vpop.xlane.xlu0 %3711  ;;  %v3765_v7 = vand.u32 2147483648, %v9043_v20 }
 0x6c2   :  { %v7831_v31 = vpop.eup %7830  ;;  %7834 = vrsqrt.f32 %v9047_v56  ;;  %vm3774_vm15 = vcmp.eq.f32.partialorder %v9047_v56, inf }
 0x6c3   :  { %v3832_v43 = vmul.f32 %v7825_v53, %v3831_v24  ;;  %v3783_v10 = vsub.f32 1.5, %v3782_v2  ;;  %v3817_v34 = vmul.f32 %v7829_v21, %v3816_v52  ;;  %v3840_v54 = vmul.f32 %v7831_v31, %v9039_v1  ;;  %v9052_v44 = vpop.xlane.xlu1 %3717 }
 0x6c4   :  { %v7833_v45 = vpop.eup %7832  ;;  %7836 = vrsqrt.f32 %v9052_v44 }
 0x6c5   :  { %v3833_v46 = vmul.f32 %v3832_v43, %v3727_v32  ;;  %v3784_v58 = vmul.f32 %v7827_v30, %v3783_v10  ;;  %v3818_v59 = vmul.f32 0.5, %v3817_v34  ;;  %v3841_v61 = vmul.f32 %v7831_v31, %v3840_v54  ;;  %v9058_v5 = vpop.xlane.xlu2 %3732 }
 0x6c6   :  { %v3756_v11 = vmul.f32 %v7833_v45, %v9043_v20  ;;  %7838 = vrsqrt.f32 %v9058_v5 }
 0x6c7   :  { %v3835_v57 = vsel %vm3834_vm2, %v3727_v32, %v3833_v46  ;;  %v3785_v12 = vmul.f32 %v3784_v58, %v9033_v0  ;;  %v3819_v13 = vsub.f32 1.5, %v3818_v59  ;;  %v3842_v29 = vmul.f32 0.5, %v3841_v61 }
 0x6c8   :  { %v7835_v15 = vpop.eup %7834  ;;  %v3757_v17 = vmul.f32 %v7833_v45, %v3756_v11  ;;  %v3838_v18 = vsel %vm3836_vm4, %v3837_v40, %v3835_v57  ;;  %vm3776_vm2 = vcmp.eq.f32.partialorder %v9047_v56, 0.0  ;;  %vm3798_vm4 = vcmp.eq.f32.partialorder %v9052_v44, inf }
 0x6c9   :  { %v3787_v19 = vsel %vm3786_vm5, %v9033_v0, %v3785_v12  ;;  %v3820_v27 = vmul.f32 %v7829_v21, %v3819_v13  ;;  %v3843_v50 = vsub.f32 1.5, %v3842_v29  ;;  %v9074_v23 = vpop.xlane.xlu0 %3738  ;;  %v3768_v35 = vmul.f32 %v7835_v15, %v9047_v56 }
 0x6ca   :  { %v7837_v53 = vpop.eup %7836  ;;  %v3790_v33 = vsel %vm3788_vm6, %v3789_v48, %v3787_v19  ;;  %v3758_v30 = vmul.f32 0.5, %v3757_v17  ;;  %7840 = vrsqrt.f32 %v9074_v23  ;;  %v9083_v21 = vmax.f32 %v3838_v18, 1e-12 }
 0x6cb   :  { %v3821_v32 = vmul.f32 %v3820_v27, %v9036_v28  ;;  %v3844_v36 = vmul.f32 %v7831_v31, %v3843_v50  ;;  %v3769_v2 = vmul.f32 %v7835_v15, %v3768_v35  ;;  %v3792_v0 = vmul.f32 %v7837_v53, %v9052_v44 }
 0x6cc   :  { %v7839_v49 = vpop.eup %7838  ;;  %v3759_v24 = vsub.f32 1.5, %v3758_v30  ;;  %v9086_v52 = vmax.f32 %v3790_v33, 1e-12  ;;  %7842 = vrcp.f32 %v9083_v21  ;;  %vm3800_vm5 = vcmp.eq.f32.partialorder %v9052_v44, 0.0 }
 0x6cd   :  { %v3823_v40 = vsel %vm3822_vm8, %v9036_v28, %v3821_v32  ;;  %v3845_v43 = vmul.f32 %v3844_v36, %v9039_v1  ;;  %v3852_v31 = vmul.f32 %v7839_v49, %v9058_v5  ;;  %v3770_v54 = vmul.f32 0.5, %v3769_v2  ;;  %v9102_v61 = vpop.xlane.xlu2 %3741 }
 0x6ce   :  { %v3826_v10 = vsel %vm3824_vm9, %v3825_v6, %v3823_v40  ;;  %v3760_v34 = vmul.f32 %v7833_v45, %v3759_v24  ;;  %v3793_v48 = vmul.f32 %v7837_v53, %v3792_v0  ;;  %7844 = vrcp.f32 %v9086_v52 }
 0x6cf   :  { %v9096_v46 = vmax.f32 %v3826_v10, 1e-12  ;;  %v3847_v58 = vsel %vm3846_vm10, %v9039_v1, %v3845_v43  ;;  %v3853_v59 = vmul.f32 %v7839_v49, %v3852_v31  ;;  %v3771_v45 = vsub.f32 1.5, %v3770_v54 }
 0x6d0   :  { %v7841_v11 = vpop.eup %7840  ;;  %v3850_v57 = vsel %vm3848_vm11, %v3849_v16, %v3847_v58  ;;  %v3761_v28 = vmul.f32 %v3760_v34, %v9043_v20  ;;  %v3794_v6 = vmul.f32 0.5, %v3793_v48  ;;  %v9115_v16 = vpop.xlane.xlu1 %3753  ;;  %v3777_v32 = vand.u32 2147483648, %v9047_v56 }
 0x6d1   :  { %v9108_v12 = vmax.f32 %v3850_v57, 1e-12  ;;  %v3854_v13 = vmul.f32 0.5, %v3853_v59  ;;  %v3876_v29 = vmul.f32 %v7841_v11, %v9074_v23  ;;  %v3772_v18 = vmul.f32 %v7835_v15, %v3771_v45  ;;  %v9138_v40 = vpop.xlane.xlu0 %3747 }
 0x6d2   :  { %v3763_v17 = vsel %vm3762_vm12, %v9043_v20, %v3761_v28  ;;  %v3795_v1 = vsub.f32 1.5, %v3794_v6  ;;  %7846 = vrcp.f32 %v9096_v46  ;;  %v9132_v24 = vpop.eup %7842  ;;  %vm3858_vm6 = vcmp.eq.f32.partialorder %v9058_v5, inf }
 0x6d3   :  { %v3766_v19 = vsel %vm3764_vm14, %v3765_v7, %v3763_v17  ;;  %v3855_v27 = vsub.f32 1.5, %v3854_v13  ;;  %v3877_v50 = vmul.f32 %v7841_v11, %v3876_v29  ;;  %7848 = vrcp.f32 %v9108_v12 }
 0x6d4   :  { %v9121_v33 = vmax.f32 %v3766_v19, 1e-12  ;;  %v3773_v30 = vmul.f32 %v3772_v18, %v9047_v56  ;;  %v3796_v35 = vmul.f32 %v7837_v53, %v3795_v1  ;;  %7850 = vrsqrt.f32 %v9115_v16  ;;  %v9140_v43 = vpop.eup %7844 }
 0x6d5   :  { %v3856_v15 = vmul.f32 %v7839_v49, %v3855_v27  ;;  %v3878_v36 = vmul.f32 0.5, %v3877_v50  ;;  %v3801_v49 = vand.u32 2147483648, %v9052_v44  ;;  %v3861_v48 = vand.u32 2147483648, %v9058_v5  ;;  %v9151_v59 = vpop.xlane.xlu2 %3735 }
 0x6d6   :  { %7852 = vrcp.f32 %v9121_v33  ;;  %v3775_v20 = vsel %vm3774_vm15, %v9047_v56, %v3773_v30  ;;  %v3797_v7 = vmul.f32 %v3796_v35, %v9052_v44  ;;  %vm3860_vm8 = vcmp.eq.f32.partialorder %v9058_v5, 0.0 }
 0x6d7   :  { %v3778_v53 = vsel %vm3776_vm2, %v3777_v32, %v3775_v20  ;;  %v3857_v2 = vmul.f32 %v3856_v15, %v9058_v5  ;;  %v3879_v0 = vsub.f32 1.5, %v3878_v36  ;;  %vm3882_vm9 = vcmp.eq.f32.partialorder %v9074_v23, inf }
 0x6d8   :  { %v9142_v31 = vmax.f32 %v3778_v53, 1e-12  ;;  %v3799_v10 = vsel %vm3798_vm4, %v9052_v44, %v3797_v7  ;;  %v9147_v34 = vpop.eup %7846  ;;  %v9162_v45 = vmul.f32 %v9140_v43, %v9086_v52  ;;  %v9175_v18 = vmul.f32 %v9132_v24, %v9083_v21  ;;  %v9179_v19 = vpop.xlane.xlu1 %3750 }
 0x6d9   :  { %v3802_v56 = vsel %vm3800_vm5, %v3801_v49, %v3799_v10  ;;  %v3859_v54 = vsel %vm3858_vm6, %v9058_v5, %v3857_v2  ;;  %v3880_v58 = vmul.f32 %v7841_v11, %v3879_v0  ;;  %v9153_v57 = vpop.eup %7848  ;;  %v3885_v5 = vand.u32 2147483648, %v9074_v23  ;;  %v9209_v2 = vpop.xlane.xlu0 %3744 }
 0x6da   :  { %7854 = vrcp.f32 %v9142_v31  ;;  %v9156_v28 = vmax.f32 %v3802_v56, 1e-12  ;;  %v7851_v44 = vpop.eup %7850  ;;  %v3862_v6 = vsel %vm3860_vm8, %v3861_v48, %v3859_v54  ;;  %vm3884_vm10 = vcmp.eq.f32.partialorder %v9074_v23, 0.0 }
 0x6db   :  { %v3881_v11 = vmul.f32 %v3880_v58, %v9074_v23  ;;  %7856 = vrsqrt.f32 %v9102_v61  ;;  %v9169_v29 = vmax.f32 %v3862_v6, 1e-12  ;;  %v3936_v17 = vmul.f32 %v7851_v44, %v9115_v16 }
 0x6dc   :  { %v9166_v13 = vpop.eup %7852  ;;  %7858 = vrcp.f32 %v9156_v28  ;;  %v9183_v27 = vmul.f32 %v9147_v34, %v9096_v46  ;;  %v9188_v35 = vmul.f32 %v9153_v57, %v9108_v12  ;;  %vm3942_vm11 = vcmp.eq.f32.partialorder %v9115_v16, inf }
 0x6dd   :  { %v3883_v1 = vsel %vm3882_vm9, %v9074_v23, %v3881_v11  ;;  %7860 = vrcp.f32 %v9169_v29  ;;  %v3937_v30 = vmul.f32 %v7851_v44, %v3936_v17  ;;  %v9192_v32 = vmul.f32 %v9166_v13, %v9121_v33 }
 0x6de   :  { %v3886_v50 = vsel %vm3884_vm10, %v3885_v5, %v3883_v1  ;;  %7862 = vrsqrt.f32 %v9138_v40  ;;  %vm3944_vm12 = vcmp.eq.f32.partialorder %v9115_v16, 0.0  ;;  %v3945_v49 = vand.u32 2147483648, %v9115_v16  ;;  %v9223_v5 = vpop.xlane.xlu2 %3720 }
 0x6df   :  { %v9194_v15 = vmax.f32 %v3886_v50, 1e-12  ;;  %v3938_v20 = vmul.f32 0.5, %v3937_v30  ;;  %7864 = vrsqrt.f32 %v9179_v19  ;;  %v3965_v58 = vsub.f32 1.0, %v9192_v32 }
 0x6e0   :  { %v9197_v23 = vpop.eup %7854  ;;  %v3897_v11 = vand.u32 2147483648, %v9102_v61  ;;  %vm3894_vm14 = vcmp.eq.f32.partialorder %v9102_v61, inf  ;;  %vm3896_vm15 = vcmp.eq.f32.partialorder %v9102_v61, 0.0  ;;  %vm3918_vm2 = vcmp.eq.f32.partialorder %v9138_v40, inf }
 0x6e1   :  { %v7857_v7 = vpop.eup %7856  ;;  %v9204_v53 = vmul.f32 %v9197_v23, %v9142_v31  ;;  %7866 = vrcp.f32 %v9194_v15  ;;  %v3939_v56 = vsub.f32 1.5, %v3938_v20  ;;  %v3813_v36 = vand.u32 2147483648, %v9223_v5 }
 0x6e2   :  { %v9211_v0 = vpop.eup %7858  ;;  %v3888_v54 = vmul.f32 %v7857_v7, %v9102_v61  ;;  %7868 = vrsqrt.f32 %v9151_v59  ;;  %vm3920_vm4 = vcmp.eq.f32.partialorder %v9138_v40, 0.0  ;;  %vm3930_vm5 = vcmp.eq.f32.partialorder %v9179_v19, inf }
 0x6e3   :  { %v9220_v6 = vmul.f32 %v9211_v0, %v9156_v28  ;;  %v9225_v17 = vpop.eup %7860  ;;  %v3940_v1 = vmul.f32 %v7851_v44, %v3939_v56  ;;  %7870 = vrsqrt.f32 %v9209_v2  ;;  %vm3932_vm6 = vcmp.eq.f32.partialorder %v9179_v19, 0.0 }
 0x6e4   :  { %v3889_v50 = vmul.f32 %v7857_v7, %v3888_v54  ;;  %v7863_v20 = vpop.eup %7862  ;;  %v9232_v32 = vmul.f32 %v9225_v17, %v9169_v29  ;;  %7872 = vrsqrt.f32 %v9223_v5  ;;  %vm3870_vm8 = vcmp.eq.f32.partialorder %v9151_v59, inf }
 0x6e5   :  { %v7865_v25 = vpop.eup %7864  ;;  %v3941_v44 = vmul.f32 %v3940_v1, %v9115_v16  ;;  %v3912_v54 = vmul.f32 %v7863_v20, %v9138_v40  ;;  %vm3968_vm9 = vweird.f32 %v9121_v33  ;;  %vm3872_vm10 = vcmp.eq.f32.partialorder %v9151_v59, 0.0 }
 0x6e6   :  { %v3890_v56 = vmul.f32 0.5, %v3889_v50  ;;  %v3924_v10 = vmul.f32 %v7865_v25, %v9179_v19 }
 0x6e7   :  { %v9241_v48 = vpop.eup %7866  ;;  %v3943_v50 = vsel %vm3942_vm11, %v9115_v16, %v3941_v44  ;;  %v3913_v39 = vmul.f32 %v7863_v20, %v3912_v54  ;;  %v3966_v44 = vmul.f32 %v9166_v13, %v3965_v58  ;;  %vm3969_vm11 = vweird.f32 %v9166_v13 }
 0x6e8   :  { %v7869_v51 = vpop.eup %7868  ;;  %v9249_v1 = vmul.f32 %v9241_v48, %v9194_v15  ;;  %v3891_v60 = vsub.f32 1.5, %v3890_v56  ;;  %v3946_v30 = vsel %vm3944_vm12, %v3945_v49, %v3943_v50  ;;  %v3925_v55 = vmul.f32 %v7865_v25, %v3924_v10  ;;  %vm9283_vm3 = vmor %vm3968_vm9, %vm3969_vm11 }
 0x6e9   :  { %v3864_v62 = vmul.f32 %v7869_v51, %v9151_v59  ;;  %v7871_v47 = vpop.eup %7870  ;;  %v9260_v42 = vmax.f32 %v3946_v30, 1e-12  ;;  %v3914_v41 = vmul.f32 0.5, %v3913_v39  ;;  %v3967_v50 = vadd.f32 %v9166_v13, %v3966_v44 }
 0x6ea   :  { %v4115_v37 = vsub.f32 1.0, %v9249_v1  ;;  %v3892_v14 = vmul.f32 %v7857_v7, %v3891_v60  ;;  %v3926_v16 = vmul.f32 0.5, %v3925_v55  ;;  %v3900_v10 = vmul.f32 %v7871_v47, %v9209_v2  ;;  %v7873_v56 = vpop.eup %7872 }
 0x6eb   :  { %v3865_v49 = vmul.f32 %v7869_v51, %v3864_v62  ;;  %7874 = vrcp.f32 %v9260_v42  ;;  %v3915_v54 = vsub.f32 1.5, %v3914_v41  ;;  %v3804_v62 = vmul.f32 %v7873_v56, %v9223_v5 }
 0x6ec   :  { %v3893_v30 = vmul.f32 %v3892_v14, %v9102_v61  ;;  %v3927_v60 = vsub.f32 1.5, %v3926_v16  ;;  %v3901_v55 = vmul.f32 %v7871_v47, %v3900_v10  ;;  %vm3906_vm12 = vcmp.eq.f32.partialorder %v9209_v2, inf }
 0x6ed   :  { %v3866_v39 = vmul.f32 0.5, %v3865_v49  ;;  %v3916_v58 = vmul.f32 %v7863_v20, %v3915_v54  ;;  %v3805_v44 = vmul.f32 %v7873_v56, %v3804_v62  ;;  %vm3812_vm9 = vcmp.eq.f32.partialorder %v9223_v5, 0.0 }
 0x6ee   :  { %v3895_v7 = vsel %vm3894_vm14, %v9102_v61, %v3893_v30  ;;  %v3928_v14 = vmul.f32 %v7865_v25, %v3927_v60  ;;  %v3902_v49 = vmul.f32 0.5, %v3901_v55  ;;  %vm3908_vm14 = vcmp.eq.f32.partialorder %v9209_v2, 0.0 }
 0x6ef   :  { %v3898_v41 = vsel %vm3896_vm15, %v3897_v11, %v3895_v7  ;;  %v3867_v16 = vsub.f32 1.5, %v3866_v39  ;;  %v3917_v20 = vmul.f32 %v3916_v58, %v9138_v40  ;;  %v3971_v25 = vsel %vm9283_vm3, %v9166_v13, %v3967_v50 }
 0x6f0   :  { %v9287_v30 = vmax.f32 %v3898_v41, 1e-12  ;;  %v3929_v61 = vmul.f32 %v3928_v14, %v9179_v19  ;;  %v3903_v54 = vsub.f32 1.5, %v3902_v49  ;;  %vm3810_vm15 = vcmp.eq.f32.partialorder %v9223_v5, inf }
 0x6f1   :  { %v3868_v11 = vmul.f32 %v7869_v51, %v3867_v16  ;;  %v3972_v60 = vand.u32 2147483647, %v9121_v33  ;;  %v9297_v39 = vpop.eup %7874  ;;  %v3919_v55 = vsel %vm3918_vm2, %v9138_v40, %v3917_v20  ;;  %v3806_v62 = vmul.f32 0.5, %v3805_v44 }
 0x6f2   :  { %7876 = vrcp.f32 %v9287_v30  ;;  %v3974_v13 = vand.u32 2147483648, %v9121_v33  ;;  %v9307_v51 = vmul.f32 %v9297_v39, %v9260_v42  ;;  %v9925_v7 = vand.u32 2147483648, %v9138_v40 }
 0x6f3   :  { %v3931_v50 = vsel %vm3930_vm5, %v9179_v19, %v3929_v61  ;;  %v3869_v41 = vmul.f32 %v3868_v11, %v9151_v59  ;;  %v9926_v16 = vand.u32 2147483648, %v9179_v19  ;;  %v3904_v49 = vmul.f32 %v7871_v47, %v3903_v54 }
 0x6f4   :  { %v3922_v58 = vsel %vm3920_vm4, %v9925_v7, %v3919_v55  ;;  %v3807_v10 = vsub.f32 1.5, %v3806_v62  ;;  %v4190_v20 = vsub.f32 1.0, %v9307_v51  ;;  %vm9329_vm3 = vcmp.eq.f32.partialorder %v3972_v60, 8.507059e+37 }
 0x6f5   :  { %v9317_v14 = vmax.f32 %v3922_v58, 1e-12  ;;  %v3934_v33 = vsel %vm3932_vm6, %v9926_v16, %v3931_v50  ;;  %v3871_v40 = vsel %vm3870_vm8, %v9151_v59, %v3869_v41  ;;  %v9929_v11 = vand.u32 2147483648, %v9151_v59 }
 0x6f6   :  { %v9324_v44 = vmax.f32 %v3934_v33, 1e-12  ;;  %v3905_v19 = vmul.f32 %v3904_v49, %v9209_v2  ;;  %v3808_v54 = vmul.f32 %v7873_v56, %v3807_v10  ;;  %v3975_v62 = vor.u32 1.1754944e-38, %v3974_v13 }
 0x6f7   :  { %7878 = vrcp.f32 %v9317_v14  ;;  %v3874_v47 = vsel %vm3872_vm10, %v9929_v11, %v3871_v40  ;;  %v9930_v60 = vsub.f32 1.0, %v9204_v53  ;;  %vm3983_vm2 = vweird.f32 %v9142_v31 }
 0x6f8   :  { %7880 = vrcp.f32 %v9324_v44  ;;  %v9340_v55 = vmax.f32 %v3874_v47, 1e-12  ;;  %v9345_v58 = vpop.eup %7876  ;;  %v3907_v50 = vsel %vm3906_vm12, %v9209_v2, %v3905_v19  ;;  %v3809_v59 = vmul.f32 %v3808_v54, %v9223_v5 }
 0x6f9   :  { %v3981_v7 = vmul.f32 %v9197_v23, %v9930_v60  ;;  %vm3984_vm4 = vweird.f32 %v9197_v23  ;;  %v9355_v56 = vmul.f32 %v9345_v58, %v9287_v30  ;;  %v9931_v53 = vand.u32 2147483648, %v9209_v2 }
 0x6fa   :  { %7882 = vrcp.f32 %v9340_v55  ;;  %v3976_v41 = vsel %vm9329_vm3, %v3975_v62, %v3971_v25  ;;  %v3811_v33 = vsel %vm3810_vm15, %v9223_v5, %v3809_v59  ;;  %vm9378_vm5 = vmor %vm3983_vm2, %vm3984_vm4  ;;  %v3987_v61 = vand.u32 2147483647, %v9142_v31 }
 0x6fb   :  { %v3910_v13 = vsel %vm3908_vm14, %v9931_v53, %v3907_v50  ;;  %v9370_v49 = vmul.f32 %v3976_v41, %v8940_v26  ;;  %v3982_v10 = vadd.f32 %v9197_v23, %v3981_v7  ;;  %v4130_v40 = vsub.f32 1.0, %v9355_v56 }
 0x6fc   :  { %v9364_v16 = vmax.f32 %v3910_v13, 1e-12  ;;  %v3814_v2 = vsel %vm3812_vm9, %v3813_v36, %v3811_v33  ;;  %v3989_v11 = vand.u32 2147483648, %v9142_v31  ;;  %v9934_v36 = vsub.f32 1.0, %v9162_v45 }
 0x6fd   :  { %v9384_v47 = vpop.eup %7878  ;;  %v9387_v26 = vmax.f32 %v3814_v2, 1e-12  ;;  %v3986_v19 = vsel %vm9378_vm5, %v9197_v23, %v3982_v10  ;;  %vm3988_vm6 = vcmp.eq.f32.partialorder %v3987_v61, 8.507059e+37  ;;  %vm3998_vm8 = vweird.f32 %v9086_v52 }
 0x6fe   :  { %7884 = vrcp.f32 %v9364_v16  ;;  %v3996_v5 = vmul.f32 %v9140_v43, %v9934_v36  ;;  %v9395_v54 = vpop.eup %7880  ;;  %v9399_v62 = vmul.f32 %v9384_v47, %v9317_v14  ;;  %v3990_v31 = vor.u32 1.1754944e-38, %v3989_v11 }
 0x6ff   :  { %v9404_v60 = vmul.f32 %v9395_v54, %v9324_v44  ;;  %7886 = vrcp.f32 %v9387_v26  ;;  %vm3999_vm10 = vweird.f32 %v9140_v43  ;;  %v4002_v53 = vand.u32 2147483647, %v9086_v52 }
 0x700   :  { %v3997_v45 = vadd.f32 %v9140_v43, %v3996_v5  ;;  %v9409_v23 = vpop.eup %7882  ;;  %v4160_v7 = vsub.f32 1.0, %v9399_v62  ;;  %v3991_v50 = vsel %vm3988_vm6, %v3990_v31, %v3986_v19  ;;  %vm9412_vm11 = vmor %vm3998_vm8, %vm3999_vm10  ;;  %v4004_v13 = vand.u32 2147483648, %v9086_v52 }
 0x701   :  { %v9420_v41 = vmul.f32 %v9409_v23, %v9340_v55  ;;  %v9423_v33 = vmul.f32 %v3991_v50, %v8961_v9  ;;  %v9937_v2 = vsub.f32 1.0, %v9220_v6  ;;  %vm4003_vm12 = vcmp.eq.f32.partialorder %v4002_v53, 8.507059e+37 }
 0x702   :  { %v4001_v10 = vsel %vm9412_vm11, %v9140_v43, %v3997_v45  ;;  %v4005_v61 = vor.u32 1.1754944e-38, %v4004_v13  ;;  %vm4013_vm14 = vweird.f32 %v9156_v28  ;;  %vm4014_vm15 = vweird.f32 %v9211_v0 }
 0x703   :  { %v4011_v25 = vmul.f32 %v9211_v0, %v9937_v2  ;;  %v4100_v11 = vsub.f32 1.0, %v9420_v41  ;;  %v4017_v19 = vand.u32 2147483647, %v9156_v28  ;;  %v4019_v43 = vand.u32 2147483648, %v9156_v28  ;;  %vm4015_vm9 = vmor %vm4013_vm14, %vm4014_vm15 }
 0x704   :  { %v9433_v52 = vpop.eup %7884  ;;  %v4006_v36 = vsel %vm4003_vm12, %v4005_v61, %v4001_v10  ;;  %vm4028_vm3 = vweird.f32 %v9387_v26  ;;  %v4032_v5 = vand.u32 2147483647, %v9387_v26  ;;  %v4034_v2 = vand.u32 2147483648, %v9387_v26 }
 0x705   :  { %v4012_v9 = vadd.f32 %v9211_v0, %v4011_v25  ;;  %v9441_v6 = vmul.f32 %v9433_v52, %v9364_v16  ;;  %v7887_v31 = vpop.eup %7886  ;;  %v9446_v45 = vmul.f32 %v4006_v36, %v8924_v3  ;;  %vm4018_vm2 = vcmp.eq.f32.partialorder %v4017_v19, 8.507059e+37 }
 0x706   :  { %v4020_v59 = vor.u32 1.1754944e-38, %v4019_v43  ;;  %v4024_v53 = vmul.f32 %v7887_v31, %v9387_v26  ;;  %vm4029_vm4 = vweird.f32 %v7887_v31  ;;  %vm9451_vm5 = vcmp.eq.f32.partialorder %v4032_v5, 8.507059e+37 }
 0x707   :  { %v4016_v50 = vsel %vm4015_vm9, %v9211_v0, %v4012_v9  ;;  %v4145_v28 = vsub.f32 1.0, %v9441_v6  ;;  %v9940_v25 = vsub.f32 1.0, %v9183_v27  ;;  %vm4043_vm6 = vweird.f32 %v9096_v46  ;;  %vm4030_vm9 = vmor %vm4028_vm3, %vm4029_vm4 }
 0x708   :  { %v4021_v10 = vsel %vm4018_vm2, %v4020_v59, %v4016_v50  ;;  %v4025_v61 = vsub.f32 1.0, %v4024_v53  ;;  %vm4044_vm8 = vweird.f32 %v9147_v34  ;;  %v4047_v9 = vand.u32 2147483647, %v9096_v46 }
 0x709   :  { %v4041_v3 = vmul.f32 %v9147_v34, %v9940_v25  ;;  %v9461_v0 = vmul.f32 %v4021_v10, %v8968_v38  ;;  %v4035_v19 = vor.u32 1.1754944e-38, %v4034_v2  ;;  %v4049_v36 = vand.u32 2147483648, %v9096_v46  ;;  %vm4045_vm10 = vmor %vm4043_vm6, %vm4044_vm8 }
 0x70a   :  { %v4055_v5 = vsub.f32 1.0, %v9175_v18  ;;  %v4026_v27 = vmul.f32 %v7887_v31, %v4025_v61  ;;  %vm4048_vm11 = vcmp.eq.f32.partialorder %v4047_v9, 8.507059e+37  ;;  %vm4058_vm12 = vweird.f32 %v9083_v21 }
 0x70b   :  { %v4042_v43 = vadd.f32 %v9147_v34, %v4041_v3  ;;  %vm4059_vm14 = vweird.f32 %v9132_v24  ;;  %v4050_v50 = vor.u32 1.1754944e-38, %v4049_v36  ;;  %v4062_v53 = vand.u32 2147483647, %v9083_v21 }
 0x70c   :  { %v4056_v59 = vmul.f32 %v9132_v24, %v4055_v5  ;;  %v4027_v10 = vadd.f32 %v7887_v31, %v4026_v27  ;;  %v4064_v2 = vand.u32 2147483648, %v9083_v21  ;;  %v9941_v46 = vsub.f32 1.0, %v9188_v35  ;;  %vm4060_vm8 = vmor %vm4058_vm12, %vm4059_vm14 }
 0x70d   :  { %v4046_v38 = vsel %vm4045_vm10, %v9147_v34, %v4042_v43  ;;  %vm4073_vm15 = vweird.f32 %v9108_v12  ;;  %vm4063_vm2 = vcmp.eq.f32.partialorder %v4062_v53, 8.507059e+37  ;;  %vm4074_vm6 = vweird.f32 %v9153_v57 }
 0x70e   :  { %v4071_v18 = vmul.f32 %v9153_v57, %v9941_v46  ;;  %v4051_v25 = vsel %vm4048_vm11, %v4050_v50, %v4046_v38  ;;  %v4057_v34 = vadd.f32 %v9132_v24, %v4056_v59  ;;  %v4031_v3 = vsel %vm4030_vm9, %v7887_v31, %v4027_v10  ;;  %vm9494_vm3 = vmor %vm4073_vm15, %vm4074_vm6 }
 0x70f   :  { %v9484_v61 = vmul.f32 %v4051_v25, %v8949_v63  ;;  %v4065_v35 = vor.u32 1.1754944e-38, %v4064_v2  ;;  %v4036_v26 = vsel %vm9451_vm5, %v4035_v19, %v4031_v3  ;;  %v4077_v63 = vand.u32 2147483647, %v9108_v12 }
 0x710   :  { %v4072_v9 = vadd.f32 %v9153_v57, %v4071_v18  ;;  %v4061_v43 = vsel %vm4060_vm8, %v9132_v24, %v4057_v34  ;;  %v4079_v31 = vand.u32 2147483648, %v9108_v12  ;;  %v9501_v5 = vmul.f32 %v4036_v26, %v8927_v8 }
 0x711   :  { %v4066_v21 = vsel %vm4063_vm2, %v4065_v35, %v4061_v43  ;;  %v9944_v13 = vsub.f32 1.0, %v9232_v32  ;;  %vm4078_vm4 = vcmp.eq.f32.partialorder %v4077_v63, 8.507059e+37  ;;  %vm4088_vm5 = vweird.f32 %v9169_v29  ;;  %v9948_v35 = vld [vmem:[#allocation49_spill] sm:$0xff] }
 0x712   :  { %v4076_v27 = vsel %vm9494_vm3, %v9153_v57, %v4072_v9  ;;  %v9510_v19 = vmul.f32 %v4066_v21, %v8917_v4  ;;  %v4080_v38 = vor.u32 1.1754944e-38, %v4079_v31  ;;  %vm4089_vm10 = vweird.f32 %v9225_v17 }
 0x713   :  { %v4086_v24 = vmul.f32 %v9225_v17, %v9944_v13  ;;  %v4092_v8 = vand.u32 2147483647, %v9169_v29  ;;  %v4094_v50 = vand.u32 2147483648, %v9169_v29  ;;  %vm4090_vm11 = vmor %vm4088_vm5, %vm4089_vm10  ;;  %v4101_v32 = vmul.f32 %v9409_v23, %v4100_v11 }
 0x714   :  { %v4081_v57 = vsel %vm4078_vm4, %v4080_v38, %v4076_v27  ;;  %vm4103_vm12 = vweird.f32 %v9340_v55  ;;  %vm4104_vm14 = vweird.f32 %v9409_v23  ;;  %v4107_v29 = vand.u32 2147483647, %v9340_v55  ;;  %v9953_v27 = vld [vmem:[#allocation44_spill] sm:$0xff] }
 0x715   :  { %v4087_v12 = vadd.f32 %v9225_v17, %v4086_v24  ;;  %v9523_v4 = vmul.f32 %v4081_v57, %v8937_v22  ;;  %vm4093_vm15 = vcmp.eq.f32.partialorder %v4092_v8, 8.507059e+37  ;;  %v4095_v53 = vor.u32 1.1754944e-38, %v4094_v50  ;;  %vm4105_vm9 = vmor %vm4103_vm12, %vm4104_vm14  ;;  %v9954_v50 = vld [vmem:[#allocation47_spill] sm:$0xff] }
 0x716   :  { %v4102_v10 = vadd.f32 %v9409_v23, %v4101_v32  ;;  %v4109_v2 = vand.u32 2147483648, %v9340_v55  ;;  %v4116_v41 = vmul.f32 %v9241_v48, %v4115_v37  ;;  %vm4118_vm2 = vweird.f32 %v9194_v15 }
 0x717   :  { %v4091_v59 = vsel %vm4090_vm11, %v9225_v17, %v4087_v12  ;;  %vm4119_vm6 = vweird.f32 %v9241_v48  ;;  %v4122_v22 = vand.u32 2147483647, %v9194_v15  ;;  %v9945_v17 = vld [vmem:[#allocation43_spill] sm:$0xff]  ;;  %vm4108_vm8 = vcmp.eq.f32.partialorder %v4107_v29, 8.507059e+37 }
 0x718   :  { %v4096_v11 = vsel %vm4093_vm15, %v4095_v53, %v4091_v59  ;;  %v4106_v18 = vsel %vm4105_vm9, %v9409_v23, %v4102_v10  ;;  %v4110_v25 = vor.u32 1.1754944e-38, %v4109_v2  ;;  %v4117_v55 = vadd.f32 %v9241_v48, %v4116_v41  ;;  %vm4120_vm4 = vmor %vm4118_vm2, %vm4119_vm6  ;;  %v9955_v59 = vld [vmem:[#allocation45_spill] sm:$0xff] }
 0x719   :  { %v9536_v46 = vmul.f32 %v4096_v11, %v9945_v17  ;;  %vm9540_vm3 = vcmp.eq.f32.partialorder %v4122_v22, 8.507059e+37  ;;  %v4124_v37 = vand.u32 2147483648, %v9194_v15  ;;  %v4131_v34 = vmul.f32 %v9345_v58, %v4130_v40  ;;  %v9956_v22 = vld [vmem:[#allocation48_spill] sm:$0xff] }
 0x71a   :  { %v4111_v3 = vsel %vm4108_vm8, %v4110_v25, %v4106_v18  ;;  %vm4133_vm5 = vweird.f32 %v9287_v30  ;;  %vm4134_vm10 = vweird.f32 %v9345_v58  ;;  %v4137_v23 = vand.u32 2147483647, %v9287_v30  ;;  %v6955_v25 = vld [vmem:[#allocation17 + $0xe0] sm:$0xf] }
 0x71b   :  { %v9552_v9 = vmul.f32 %v4111_v3, %v9948_v35  ;;  %v4121_v26 = vsel %vm4120_vm4, %v9241_v48, %v4117_v55  ;;  %v4125_v43 = vor.u32 1.1754944e-38, %v4124_v37  ;;  %v4132_v15 = vadd.f32 %v9345_v58, %v4131_v34  ;;  %vm9556_vm11 = vmor %vm4133_vm5, %vm4134_vm10 }
 0x71c   :  { %vm9560_vm12 = vcmp.eq.f32.partialorder %v4137_v23, 8.507059e+37  ;;  %v4139_v36 = vand.u32 2147483648, %v9287_v30  ;;  %v4146_v63 = vmul.f32 %v9433_v52, %v4145_v28  ;;  %vm4148_vm14 = vweird.f32 %v9364_v16  ;;  %v9959_v23 = vld [vmem:[#allocation42_spill] sm:$0xff] }
 0x71d   :  { %v4126_v48 = vsel %vm9540_vm3, %v4125_v43, %v4121_v26  ;;  %v4136_v31 = vsel %vm9556_vm11, %v9345_v58, %v4132_v15  ;;  %vm4149_vm15 = vweird.f32 %v9433_v52  ;;  %v4152_v21 = vand.u32 2147483647, %v9364_v16 }
 0x71e   :  { %v9577_v13 = vmul.f32 %v4126_v48, %v9953_v27  ;;  %v4140_v30 = vor.u32 1.1754944e-38, %v4139_v36  ;;  %v4147_v6 = vadd.f32 %v9433_v52, %v4146_v63  ;;  %v4154_v28 = vand.u32 2147483648, %v9364_v16  ;;  %vm4150_vm9 = vmor %vm4148_vm14, %vm4149_vm15  ;;  %v9961_v36 = vld [vmem:[#allocation46_spill] sm:$0xff] }
 0x71f   :  { %vm4153_vm2 = vcmp.eq.f32.partialorder %v4152_v21, 8.507059e+37  ;;  %v4161_v24 = vmul.f32 %v9384_v47, %v4160_v7  ;;  %vm4163_vm6 = vweird.f32 %v9317_v14  ;;  %vm4164_vm8 = vweird.f32 %v9384_v47 }
 0x720   :  { %v4141_v58 = vsel %vm9560_vm12, %v4140_v30, %v4136_v31  ;;  %v4151_v38 = vsel %vm4150_vm9, %v9433_v52, %v4147_v6  ;;  %v4155_v12 = vor.u32 1.1754944e-38, %v4154_v28  ;;  %v4167_v8 = vand.u32 2147483647, %v9317_v14  ;;  %vm4165_vm3 = vmor %vm4163_vm6, %vm4164_vm8 }
 0x721   :  { %v4142_v16 = vmul.f32 %v4141_v58, %v9954_v50  ;;  %v4162_v57 = vadd.f32 %v9384_v47, %v4161_v24  ;;  %v4169_v62 = vand.u32 2147483648, %v9317_v14  ;;  %v4175_v7 = vsub.f32 1.0, %v9404_v60 }
 0x722   :  { %v4156_v32 = vsel %vm4153_vm2, %v4155_v12, %v4151_v38  ;;  %vm4168_vm4 = vcmp.eq.f32.partialorder %v4167_v8, 8.507059e+37  ;;  %vm4178_vm5 = vweird.f32 %v9324_v44  ;;  %vm4179_vm10 = vweird.f32 %v9395_v54  ;;  %v9962_v38 = vld [vmem:[#allocation40_spill] sm:$0xff] }
 0x723   :  { %v4157_v52 = vmul.f32 %v4156_v32, %v9955_v59  ;;  %v4166_v53 = vsel %vm4165_vm3, %v9384_v47, %v4162_v57  ;;  %v4170_v10 = vor.u32 1.1754944e-38, %v4169_v62  ;;  %v4176_v29 = vmul.f32 %v9395_v54, %v4175_v7  ;;  %vm4180_vm14 = vmor %vm4178_vm5, %vm4179_vm10 }
 0x724   :  { %v4182_v2 = vand.u32 2147483647, %v9324_v44  ;;  %v4184_v14 = vand.u32 2147483648, %v9324_v44  ;;  %v4191_v60 = vmul.f32 %v9297_v39, %v4190_v20  ;;  %vm4193_vm11 = vweird.f32 %v9260_v42 }
 0x725   :  { %v4171_v41 = vsel %vm4168_vm4, %v4170_v10, %v4166_v53  ;;  %v4177_v11 = vadd.f32 %v9395_v54, %v4176_v29  ;;  %vm4194_vm12 = vweird.f32 %v9297_v39  ;;  %v4197_v47 = vand.u32 2147483647, %v9260_v42 }
 0x726   :  { %v4172_v17 = vmul.f32 %v4171_v41, %v9956_v22  ;;  %vm4183_vm15 = vcmp.eq.f32.partialorder %v4182_v2, 8.507059e+37  ;;  %v4185_v18 = vor.u32 1.1754944e-38, %v4184_v14  ;;  %v4192_v51 = vadd.f32 %v9297_v39, %v4191_v60  ;;  %vm9613_vm9 = vmor %vm4193_vm11, %vm4194_vm12  ;;  %v6963_v2 = vld [vmem:[#allocation17 + $0xf0] sm:$0xf]  ;;  %v7668_v14 = vld [vmem:[#allocation17 + $0xf4] sm:$0xf0] }
 0x727   :  { %v4181_v20 = vsel %vm4180_vm14, %v9395_v54, %v4177_v11  ;;  %vm4198_vm2 = vcmp.eq.f32.partialorder %v4197_v47, 8.507059e+37  ;;  %v4199_v55 = vand.u32 2147483648, %v9260_v42  ;;  %v4203_v1 = vrot.slane %v9446_v45, 4  ;;  %v9960_v42 = vld [vmem:[#allocation41_spill] sm:$0xff]  ;;  %v7667_v47 = vld [vmem:[#allocation17 + $0xf4] sm:$0xf] }
 0x728   :  { %v4186_v37 = vsel %vm4183_vm15, %v4185_v18, %v4181_v20  ;;  %v4196_v44 = vsel %vm9613_vm9, %v9297_v39, %v4192_v51  ;;  %v4209_v34 = vrot.slane %v9461_v0, 4  ;;  %v4215_v3 = vrot.slane %v9510_v19, 4  ;;  %v6965_v22 = vld [vmem:[#allocation17 + $0xf8] sm:$0xf0] }
 0x729   :  { %v4187_v54 = vmul.f32 %v4186_v37, %v9959_v23  ;;  %v4200_v35 = vor.u32 1.1754944e-38, %v4199_v55  ;;  %v4204_v26 = vsel %vm721_vm13, %v4203_v1, %v9370_v49  ;;  %v4221_v43 = vrot.slane %v9523_v4, 4  ;;  %v7666_v55 = vld [vmem:[#allocation17 + $0xe4] sm:$0xf0]  ;;  %v6957_v23 = vld [vmem:[#allocation17 + $0xe8] sm:$0xf0] }
 0x72a   :  { %v4208_v15 = vperm.slane %v4204_v26, %v9960_v42  ;;  %v4210_v45 = vsel %vm721_vm13, %v4209_v34, %v9423_v33  ;;  %v4216_v39 = vsel %vm721_vm13, %v4215_v3, %v9501_v5  ;;  %v4259_v0 = vrot.slane %v9577_v13, 4  ;;  %v7665_v3 = vld [vmem:[#allocation17 + $0xe4] sm:$0xf] }
 0x72b   :  { %v4201_v56 = vsel %vm4198_vm2, %v4200_v35, %v4196_v44  ;;  %v4214_v19 = vperm.slane %v4210_v45, %v9960_v42  ;;  %v4220_v40 = vperm.slane %v4216_v39, %v9960_v42  ;;  %v4222_v49 = vsel %vm721_vm13, %v4221_v43, %v9484_v61  ;;  %v7663_v45 = vld [vmem:[#allocation17 + $0xd4] sm:$0xf]  ;;  %v6949_v39 = vld [vmem:[#allocation17 + $0xd8] sm:$0xf0] }
 0x72c   :  { %v4202_v4 = vmul.f32 %v4201_v56, %v9961_v36  ;;  %v4226_v63 = vperm.slane %v4222_v49, %v9960_v42  ;;  %v4260_v33 = vsel %vm721_vm13, %v4259_v0, %v9536_v46  ;;  %v4265_v48 = vrot.slane %v4142_v16, 4  ;;  %v6899_v49 = vld [vmem:[#allocation17 + $0x70] sm:$0xf]  ;;  %v7652_v36 = vld [vmem:[#allocation17 + $0x74] sm:$0xf0] }
 0x72d   :  { %v4227_v31 = vrot.slane %v4214_v19, 4  ;;  %v4264_v5 = vperm.slane %v4260_v33, %v9960_v42  ;;  %v4271_v21 = vrot.slane %v4187_v54, 4  ;;  %v4229_v27 = vrot.slane %v4208_v15, 4 }
 0x72e   :  { %v4239_v13 = vrot.slane %v4226_v63, 4  ;;  %v4266_v30 = vsel %vm721_vm13, %v4265_v48, %v9552_v9  ;;  %v4277_v6 = vrot.slane %v4202_v4, 4  ;;  %v4241_v28 = vrot.slane %v4220_v40, 4 }
 0x72f   :  { %v4228_v61 = vsel %vm721_vm13, %v4227_v31, %v4208_v15  ;;  %v4270_v24 = vperm.slane %v4266_v30, %v9960_v42  ;;  %v4272_v58 = vsel %vm721_vm13, %v4271_v21, %v4157_v52  ;;  %v4230_v46 = vsel %vm721_vm13, %v4214_v19, %v4229_v27  ;;  %v7664_v15 = vld [vmem:[#allocation17 + $0xd4] sm:$0xf0]  ;;  %v7651_v31 = vld [vmem:[#allocation17 + $0x74] sm:$0xf] }
 0x730   :  { %v9650_v12 = vperm.slane %v4228_v61, %v9962_v38  ;;  %v4240_v8 = vsel %vm721_vm13, %v4239_v13, %v4220_v40  ;;  %v4276_v50 = vperm.slane %v4272_v58, %v9960_v42  ;;  %v4278_v16 = vsel %vm721_vm13, %v4277_v6, %v4172_v17  ;;  %v6939_v61 = vld [vmem:[#allocation17 + $0xc0] sm:$0xf] }
 0x731   :  { %v4282_v9 = vperm.slane %v4278_v16, %v9960_v42  ;;  %v4283_v57 = vrot.slane %v4270_v24, 4  ;;  %v4238_v62 = vperm.slane %v4230_v46, %v9962_v38  ;;  %v9658_v7 = vperm.slane %v4240_v8, %v9962_v38  ;;  %v6947_v42 = vld [vmem:[#allocation17 + $0xd0] sm:$0xf]  ;;  %v7661_v8 = vld [vmem:[#allocation17 + $0xc4] sm:$0xf] }
 0x732   :  { %v4242_v32 = vsel %vm721_vm13, %v4226_v63, %v4241_v28  ;;  %v4285_v59 = vrot.slane %v4264_v5, 4  ;;  %v4297_v52 = vrot.slane %v4276_v50, 4  ;;  %v4253_v60 = vrot.slane %v9650_v12, 4 }
 0x733   :  { %v4284_v53 = vsel %vm721_vm13, %v4283_v57, %v4264_v5  ;;  %v4295_v10 = vrot.slane %v4282_v9, 4  ;;  %v4250_v29 = vperm.slane %v4242_v32, %v9962_v38  ;;  %v4257_v18 = vrot.slane %v4238_v62, 4  ;;  %v6901_v5 = vld [vmem:[#allocation17 + $0x78] sm:$0xf0]  ;;  %v7660_v32 = vld [vmem:[#allocation17 + $0xb4] sm:$0xf0] }
 0x734   :  { %v4290_v41 = vperm.slane %v4284_v53, %v9962_v38  ;;  %v4286_v11 = vsel %vm721_vm13, %v4270_v24, %v4285_v59  ;;  %v4298_v20 = vsel %vm721_vm13, %v4282_v9, %v4297_v52  ;;  %v4254_v1 = vsel %vm721_vm13, %v9658_v7, %v4253_v60  ;;  %v6933_v59 = vld [vmem:[#allocation17 + $0xb8] sm:$0xf0] }
 0x735   :  { %v4296_v17 = vsel %vm721_vm13, %v4295_v10, %v4276_v50  ;;  %v4294_v51 = vperm.slane %v4286_v11, %v9962_v38  ;;  %v4306_v34 = vperm.slane %v4298_v20, %v9962_v38  ;;  %v4258_v54 = vsel %vm721_vm13, %v4250_v29, %v4257_v18  ;;  %v6941_v50 = vld [vmem:[#allocation17 + $0xc8] sm:$0xf0]  ;;  %v6923_v10 = vld [vmem:[#allocation17 + $0xa0] sm:$0xf]  ;;  %v7656_v11 = vld [vmem:[#allocation17 + $0x94] sm:$0xf0] }
 0x736   :  { %v4302_v37 = vperm.slane %v4296_v17, %v9962_v38  ;;  %v4309_v44 = vrot.slane %v4290_v41, 4  ;;  %v6964_v26 = vor.u32 %v7668_v14, %v6963_v2  ;;  %v6968_v43 = vor.u32 %v7667_v47, %v6965_v22  ;;  %v7662_v38 = vld [vmem:[#allocation17 + $0xc4] sm:$0xf0]  ;;  %v7657_v2 = vld [vmem:[#allocation17 + $0xa4] sm:$0xf] }
 0x737   :  { %v4313_v35 = vrot.slane %v4294_v51, 4  ;;  %v4255_v19 = vrot.slane %v4250_v29, 4  ;;  %v6956_v40 = vor.u32 %v7666_v55, %v6955_v25  ;;  %v4311_v63 = vrot.slane %v4306_v34, 4  ;;  %v7658_v29 = vld [vmem:[#allocation17 + $0xa4] sm:$0xf0] }
 0x738   :  { %v4307_v0 = vrot.slane %v4302_v37, 4  ;;  %v4310_v56 = vsel %vm721_vm13, %v4302_v37, %v4309_v44  ;;  %4549 = vmatpush.bf16.msrb.mxu1 %v6964_v26  ;;  %4577 = vmatpush.bf16.msrb.mxu3 %v6968_v43  ;;  %v6960_v48 = vor.u32 %v7665_v3, %v6957_v23  ;;  %v4251_v21 = vrot.slane %v9658_v7, 4  ;;  %v6931_v7 = vld [vmem:[#allocation17 + $0xb0] sm:$0xf]  ;;  %v6925_v14 = vld [vmem:[#allocation17 + $0xa8] sm:$0xf0] }
 0x739   :  { %v7787_v4 = vpack.i.bf16 %v4310_v56, %v4254_v1  ;;  %v4314_v33 = vsel %vm721_vm13, %v4306_v34, %v4313_v35  ;;  %v6948_v13 = vor.u32 %v7664_v15, %v6947_v42  ;;  %v6952_v30 = vor.u32 %v7663_v45, %v6949_v39  ;;  %v7655_v47 = vld [vmem:[#allocation17 + $0x94] sm:$0xf]  ;;  %v6917_v22 = vld [vmem:[#allocation17 + $0x98] sm:$0xf0]  ;;  %v7650_v20 = vld [vmem:[#allocation17 + $0x64] sm:$0xf0] }
 0x73a   :  { %v7792_v27 = vpack.i.bf16 %v4314_v33, %v4258_v54  ;;  %v6900_v6 = vor.u32 %v7652_v36, %v6899_v49  ;;  %v6904_v28 = vor.u32 %v7651_v31, %v6901_v5  ;;  %v9680_v24 = vsel %vm721_vm13, %v4311_v63, %v4294_v51  ;;  %v6891_v51 = vld [vmem:[#allocation17 + $0x60] sm:$0xf]  ;;  %v7649_v25 = vld [vmem:[#allocation17 + $0x64] sm:$0xf]  ;;  %v6893_v1 = vld [vmem:[#allocation17 + $0x68] sm:$0xf0] }
 0x73b   :  { %7788 = vrot.lane.b32.xlu1 %v7787_v4, %s8333_s0  ;;  %v9683_v58 = vsel %vm721_vm13, %v4255_v19, %v4238_v62  ;;  %v9686_v46 = vsel %vm721_vm13, %v4307_v0, %v4290_v41  ;;  %v9690_v16 = vsel %vm721_vm13, %v4251_v21, %v9650_v12  ;;  %v6940_v9 = vor.u32 %v7662_v38, %v6939_v61  ;;  %v7659_v62 = vld [vmem:[#allocation17 + $0xb4] sm:$0xf]  ;;  %v6915_v41 = vld [vmem:[#allocation17 + $0x90] sm:$0xf]  ;;  %v6907_v37 = vld [vmem:[#allocation17 + $0x80] sm:$0xf] }
 0x73c   :  { %7793 = vrot.lane.b32.xlu2 %v7792_v27, %s8333_s0  ;;  %4550 = vmatpush.bf16.msrb.mxu1 %v6956_v40  ;;  %v6944_v57 = vor.u32 %v7661_v8, %v6941_v50  ;;  %v6932_v52 = vor.u32 %v7660_v32, %v6931_v7  ;;  %v6936_v53 = vor.u32 %v7659_v62, %v6933_v59  ;;  %v7654_v44 = vld [vmem:[#allocation17 + $0x84] sm:$0xf0]  ;;  %v7653_v23 = vld [vmem:[#allocation17 + $0x84] sm:$0xf]  ;;  %v6909_v54 = vld [vmem:[#allocation17 + $0x88] sm:$0xf0] }
 0x73d   :  { %4578 = vmatpush.bf16.msrb.mxu3 %v6960_v48  ;;  %4535 = vmatpush.bf16.msrb.mxu0 %v6900_v6  ;;  %v6924_v12 = vor.u32 %v7658_v29, %v6923_v10  ;;  %v6928_v60 = vor.u32 %v7657_v2, %v6925_v14  ;;  %v6916_v17 = vor.u32 %v7656_v11, %v6915_v41  ;;  %v6883_v35 = vld [vmem:[#allocation17 + $0x50] sm:$0xf]  ;;  %v7648_v43 = vld [vmem:[#allocation17 + $0x54] sm:$0xf0]  ;;  %v7647_v42 = vld [vmem:[#allocation17 + $0x54] sm:$0xf] }
 0x73e   :  { %4563 = vmatpush.bf16.msrb.mxu2 %v6904_v28  ;;  %v6920_v18 = vor.u32 %v7655_v47, %v6917_v22  ;;  %v6892_v55 = vor.u32 %v7650_v20, %v6891_v51  ;;  %v6896_v34 = vor.u32 %v7649_v25, %v6893_v1  ;;  %v6908_v3 = vor.u32 %v7654_v44, %v6907_v37  ;;  %v6885_v15 = vld [vmem:[#allocation17 + $0x58] sm:$0xf0]  ;;  %v6875_v0 = vld [vmem:[#allocation17 + $0x40] sm:$0xf]  ;;  %v7646_v56 = vld [vmem:[#allocation17 + $0x44] sm:$0xf0] }
 0x73f   :  { %v6912_v26 = vor.u32 %v7653_v23, %v6909_v54  ;;  %v6884_v45 = vor.u32 %v7648_v43, %v6883_v35  ;;  %v6888_v39 = vor.u32 %v7647_v42, %v6885_v15  ;;  %v7645_v19 = vld [vmem:[#allocation17 + $0x44] sm:$0xf]  ;;  %v6877_v40 = vld [vmem:[#allocation17 + $0x48] sm:$0xf0]  ;;  %v6876_v49 = vor.u32 %v7646_v56, %v6875_v0  ;;  %v6867_v4 = vld [vmem:[#allocation17 + $0x30] sm:$0xf] }
 0x740   :  { %4551 = vmatpush.bf16.msrb.mxu1 %v6948_v13  ;;  %v6880_v36 = vor.u32 %v7645_v19, %v6877_v40  ;;  %v7644_v63 = vld [vmem:[#allocation17 + $0x34] sm:$0xf0]  ;;  %v7643_v33 = vld [vmem:[#allocation17 + $0x34] sm:$0xf]  ;;  %v6869_v48 = vld [vmem:[#allocation17 + $0x38] sm:$0xf0] }
 0x741   :  { %4579 = vmatpush.bf16.msrb.mxu3 %v6952_v30  ;;  %4536 = vmatpush.bf16.msrb.mxu0 %v6892_v55  ;;  %v6868_v31 = vor.u32 %v7644_v63, %v6867_v4  ;;  %v6872_v5 = vor.u32 %v7643_v33, %v6869_v48  ;;  %v6859_v21 = vld [vmem:[#allocation17 + $0x20] sm:$0xf]  ;;  %v7642_v27 = vld [vmem:[#allocation17 + $0x24] sm:$0xf0]  ;;  %v7641_v13 = vld [vmem:[#allocation17 + $0x24] sm:$0xf] }
 0x742   :  { %4564 = vmatpush.bf16.msrb.mxu2 %v6896_v34  ;;  %v6861_v30 = vld [vmem:[#allocation17 + $0x28] sm:$0xf0]  ;;  %v6860_v6 = vor.u32 %v7642_v27, %v6859_v21  ;;  %v6851_v61 = vld [vmem:[#allocation17 + $0x10] sm:$0xf]  ;;  %v7640_v38 = vld [vmem:[#allocation17 + $0x14] sm:$0xf0] }
 0x743   :  { %v6864_v28 = vor.u32 %v7641_v13, %v6861_v30  ;;  %v7639_v8 = vld [vmem:[#allocation17 + $0x14] sm:$0xf]  ;;  %v6853_v50 = vld [vmem:[#allocation17 + $0x18] sm:$0xf0]  ;;  %v6843_v7 = vld [vmem:[#allocation17] sm:$0xf] }
 0x744   :  { %4552 = vmatpush.bf16.msrb.mxu1 %v6940_v9  ;;  %v6852_v9 = vor.u32 %v7640_v38, %v6851_v61  ;;  %v7638_v32 = vld [vmem:[#allocation17 + $0x4] sm:$0xf0]  ;;  %v7637_v62 = vld [vmem:[#allocation17 + $0x4] sm:$0xf]  ;;  %v7027_v51 = vld [vmem:[#allocation19 + $0x70] sm:$0xf] }
 0x745   :  { %4580 = vmatpush.bf16.msrb.mxu3 %v6944_v57  ;;  %4537 = vmatpush.bf16.msrb.mxu0 %v6884_v45  ;;  %v6856_v57 = vor.u32 %v7639_v8, %v6853_v50  ;;  %v6844_v59 = vor.u32 %v7638_v32, %v6843_v7  ;;  %v7684_v20 = vld [vmem:[#allocation19 + $0x74] sm:$0xf0]  ;;  %v7683_v25 = vld [vmem:[#allocation19 + $0x74] sm:$0xf]  ;;  %v7029_v1 = vld [vmem:[#allocation19 + $0x78] sm:$0xf0] }
 0x746   :  { %4565 = vmatpush.bf16.msrb.mxu2 %v6888_v39  ;;  %v7028_v55 = vor.u32 %v7684_v20, %v7027_v51  ;;  %v7019_v37 = vld [vmem:[#allocation19 + $0x60] sm:$0xf]  ;;  %v7021_v23 = vld [vmem:[#allocation19 + $0x68] sm:$0xf0]  ;;  %v7091_v15 = vld [vmem:[#allocation19 + $0xf0] sm:$0xf] }
 0x747   :  { %v7700_v45 = vld [vmem:[#allocation19 + $0xf4] sm:$0xf0]  ;;  %v7699_v39 = vld [vmem:[#allocation19 + $0xf4] sm:$0xf]  ;;  %v7093_v19 = vld [vmem:[#allocation19 + $0xf8] sm:$0xf0] }
 0x748   :  { %4553 = vmatpush.bf16.msrb.mxu1 %v6932_v52  ;;  %v6845_v52 = vld [vmem:[#allocation17 + $0x8] sm:$0xf0]  ;;  %v7092_v56 = vor.u32 %v7700_v45, %v7091_v15  ;;  %v7680_v4 = vld [vmem:[#allocation19 + $0x54] sm:$0xf0]  ;;  %v7679_v63 = vld [vmem:[#allocation19 + $0x54] sm:$0xf] }
 0x749   :  { %4581 = vmatpush.bf16.msrb.mxu3 %v6936_v53  ;;  %4538 = vmatpush.bf16.msrb.mxu0 %v6876_v49  ;;  %v6848_v53 = vor.u32 %v7637_v62, %v6845_v52  ;;  %v7096_v49 = vor.u32 %v7699_v39, %v7093_v19  ;;  %v7013_v21 = vld [vmem:[#allocation19 + $0x58] sm:$0xf0]  ;;  %v7083_v27 = vld [vmem:[#allocation19 + $0xe0] sm:$0xf]  ;;  %v7698_v13 = vld [vmem:[#allocation19 + $0xe4] sm:$0xf0] }
 0x74a   :  { %4566 = vmatpush.bf16.msrb.mxu2 %v6880_v36  ;;  %v7011_v36 = vld [vmem:[#allocation19 + $0x50] sm:$0xf]  ;;  %v7697_v61 = vld [vmem:[#allocation19 + $0xe4] sm:$0xf]  ;;  %v7085_v38 = vld [vmem:[#allocation19 + $0xe8] sm:$0xf0] }
 0x74b   :  { %v7003_v8 = vld [vmem:[#allocation19 + $0x40] sm:$0xf]  ;;  %v7088_v7 = vor.u32 %v7697_v61, %v7085_v38  ;;  %v7678_v32 = vld [vmem:[#allocation19 + $0x44] sm:$0xf0]  ;;  %v7677_v62 = vld [vmem:[#allocation19 + $0x44] sm:$0xf] }
 0x74c   :  { %4554 = vmatpush.bf16.msrb.mxu1 %v6924_v12  ;;  %v7004_v52 = vor.u32 %v7678_v32, %v7003_v8  ;;  %v6995_v20 = vld [vmem:[#allocation19 + $0x30] sm:$0xf] }
 0x74d   :  { %4582 = vmatpush.bf16.msrb.mxu3 %v6928_v60  ;;  %4539 = vmatpush.bf16.msrb.mxu0 %v6868_v31  ;;  %v9963_v19 = vld [vmem:[#allocation39_spill] sm:$0xff] }
 0x74e   :  { %4567 = vmatpush.bf16.msrb.mxu2 %v6872_v5  ;;  %v7012_v5 = vor.u32 %v7680_v4, %v7011_v36  ;;  %v7673_v36 = vld [vmem:[#allocation19 + $0x24] sm:$0xf]  ;;  %v6989_v4 = vld [vmem:[#allocation19 + $0x28] sm:$0xf0]  ;;  %v6979_v8 = vld [vmem:[#allocation19 + $0x10] sm:$0xf] }
 0x750   :  { %4555 = vmatpush.bf16.msrb.mxu1 %v6916_v17 }
 0x751   :  { %4583 = vmatpush.bf16.msrb.mxu3 %v6920_v18  ;;  %4540 = vmatpush.bf16.msrb.mxu0 %v6860_v6  ;;  %v7016_v6 = vor.u32 %v7679_v63, %v7013_v21 }
 0x752   :  { %4568 = vmatpush.bf16.msrb.mxu2 %v6864_v28  ;;  %v7084_v28 = vor.u32 %v7698_v13, %v7083_v27  ;;  %v6992_v27 = vor.u32 %v7673_v36, %v6989_v4  ;;  %v7686_v4 = vld [vmem:[#allocation19 + $0x84] sm:$0xf0] }
 0x754   :  { %4556 = vmatpush.bf16.msrb.mxu1 %v6908_v3  ;;  %v7681_v3 = vld [vmem:[#allocation19 + $0x64] sm:$0xf] }
 0x755   :  { %4584 = vmatpush.bf16.msrb.mxu3 %v6912_v26  ;;  %4541 = vmatpush.bf16.msrb.mxu0 %v6852_v9  ;;  %v7024_v26 = vor.u32 %v7681_v3, %v7021_v23 }
 0x756   :  { %4569 = vmatpush.bf16.msrb.mxu2 %v6856_v57 }
 0x758   :  { %4920 = vmatpush.bf16.msra.mxu1 %v7092_v56  ;;  %v7674_v56 = vld [vmem:[#allocation19 + $0x24] sm:$0xf0] }
 0x759   :  { %4542 = vmatpush.bf16.msrb.mxu0 %v6844_v59  ;;  %4946 = vmatpush.bf16.msra.mxu3 %v7096_v49 }
 0x75a   :  { %4570 = vmatpush.bf16.msrb.mxu2 %v6848_v53  ;;  %v7005_v53 = vld [vmem:[#allocation19 + $0x48] sm:$0xf0] }
 0x75c   :  { %4921 = vmatpush.bf16.msra.mxu1 %v7084_v28 }
 0x75d   :  { %4907 = vmatpush.bf16.msra.mxu0 %v7028_v55  ;;  %4947 = vmatpush.bf16.msra.mxu3 %v7088_v7  ;;  %v7675_v55 = vld [vmem:[#allocation19 + $0x34] sm:$0xf] }
 0x796   :  { %v7794_v10 = vpop.permute.xlu2 %7793 }
 0x797   :  { %v7796_v29 = vunpack.i.h.bf16 %v7794_v10  ;;  %v7795_v2 = vunpack.i.l.bf16 %v7794_v10 }
 0x799   :  { %v4334_v14 = vsel %vm320_vm0, %v9680_v24, %v7796_v29  ;;  %v4333_v12 = vsel %vm320_vm0, %v9683_v58, %v7795_v2  ;;  %v9703_v24 = vld [vmem:[%s9857_s17] sm:$0x3] }
 0x79a   :  { %v4336_v60 = vpack.c.bf16 %v4334_v14, %v4333_v12  ;;  %v4371_v58 = vperm.slane %v9703_v24, 0  ;;  %v4372_v42 = vperm.slane %v9703_v24, 1  ;;  %v7008_v14 = vor.u32 %v7677_v62, %v7005_v53  ;;  %v7075_v12 = vld [vmem:[#allocation19 + $0xd0] sm:$0xf]  ;;  %v7671_v62 = vld [vmem:[#allocation19 + $0x14] sm:$0xf] }
 0x79b   :  { %v7690_v53 = vld [vmem:[#allocation19 + $0xa4] sm:$0xf0] }
 0x79c   :  { %4557 = vmatmul.bf16.vlgmr.msrb.gmra.mxu1 %v4336_v60  ;;  %4585 = vmatmul.bf16.vlgmr.msrb.gmra.mxu3 %v4336_v60  ;;  %v7696_v60 = vld [vmem:[#allocation19 + $0xd4] sm:$0xf0] }
 0x7ad   :  { %v7789_v41 = vpop.permute.xlu1 %7788 }
 0x7ae   :  { %v7791_v11 = vunpack.i.h.bf16 %v7789_v41  ;;  %v7790_v47 = vunpack.i.l.bf16 %v7789_v41  ;;  %v7695_v41 = vld [vmem:[#allocation19 + $0xd4] sm:$0xf] }
 0x7b0   :  { %v4332_v22 = vsel %vm320_vm0, %v9686_v46, %v7791_v11  ;;  %v4331_v17 = vsel %vm320_vm0, %v9690_v16, %v7790_v47  ;;  %v7682_v46 = vld [vmem:[#allocation19 + $0x64] sm:$0xf0]  ;;  %v7032_v16 = vor.u32 %v7683_v25, %v7029_v1  ;;  %v7676_v25 = vld [vmem:[#allocation19 + $0x34] sm:$0xf0] }
 0x7b1   :  { %v4335_v18 = vpack.c.bf16 %v4332_v22, %v4331_v17  ;;  %v7020_v35 = vor.u32 %v7682_v46, %v7019_v37  ;;  %v7076_v17 = vor.u32 %v7696_v60, %v7075_v12  ;;  %v6996_v3 = vor.u32 %v7676_v25, %v6995_v20  ;;  %v7689_v60 = vld [vmem:[#allocation19 + $0xa4] sm:$0xf]  ;;  %v6973_v20 = vld [vmem:[#allocation19 + $0x8] sm:$0xf0] }
 0x7b2   :  { %4933 = vmatpush.bf16.msra.mxu2 %v7032_v16  ;;  %v7067_v16 = vld [vmem:[#allocation19 + $0xc0] sm:$0xf] }
 0x7b3   :  { %4543 = vmatmul.bf16.vlgmr.msrb.gmra.mxu0 %v4335_v18  ;;  %4571 = vmatmul.bf16.vlgmr.msrb.gmra.mxu2 %v4335_v18  ;;  %v7077_v18 = vld [vmem:[#allocation19 + $0xd8] sm:$0xf0] }
 0x7b4   :  { %4908 = vmatpush.bf16.msra.mxu0 %v7020_v35  ;;  %v7080_v51 = vor.u32 %v7695_v41, %v7077_v18  ;;  %4922 = vmatpush.bf16.msra.mxu1 %v7076_v17  ;;  %v7693_v35 = vld [vmem:[#allocation19 + $0xc4] sm:$0xf]  ;;  %v7053_v41 = vld [vmem:[#allocation19 + $0xa8] sm:$0xf0]  ;;  %v6971_v17 = vld [vmem:[#allocation19] sm:$0xf] }
 0x7b6   :  { %4934 = vmatpush.bf16.msra.mxu2 %v7024_v26  ;;  %4948 = vmatpush.bf16.msra.mxu3 %v7080_v51  ;;  %v7069_v26 = vld [vmem:[#allocation19 + $0xc8] sm:$0xf0]  ;;  %v7669_v51 = vld [vmem:[#allocation19 + $0x4] sm:$0xf] }
 0x7b7   :  { %v7072_v49 = vor.u32 %v7693_v35, %v7069_v26 }
 0x7b8   :  { %4909 = vmatpush.bf16.msra.mxu0 %v7012_v5  ;;  %v7692_v5 = vld [vmem:[#allocation19 + $0xb4] sm:$0xf0] }
 0x7ba   :  { %4935 = vmatpush.bf16.msra.mxu2 %v7016_v6  ;;  %4949 = vmatpush.bf16.msra.mxu3 %v7072_v49  ;;  %v7061_v6 = vld [vmem:[#allocation19 + $0xb8] sm:$0xf0] }
 0x7bc   :  { %4910 = vmatpush.bf16.msra.mxu0 %v7004_v52  ;;  %v7051_v52 = vld [vmem:[#allocation19 + $0xa0] sm:$0xf] }
 0x7be   :  { %4936 = vmatpush.bf16.msra.mxu2 %v7008_v14 }
 0x7c0   :  { %4911 = vmatpush.bf16.msra.mxu0 %v6996_v3 }
 0x819   :  { %v4558_v44 = vpop.f32.mrf.mxu1 }
 0x81f   :  { %v4586_v33 = vpop.f32.mrf.mxu3 }
 0x821   :  { %v4560_v59 = vpop.f32.mrf.mxu1 }
 0x827   :  { %v4588_v15 = vpop.f32.mrf.mxu3 }
 0x830   :  { %v4544_v34 = vpop.f32.mrf.mxu0 }
 0x831   :  { %v4545_v54 = vadd.f32 %v4544_v34, %v4371_v58  ;;  %v6997_v34 = vld [vmem:[#allocation19 + $0x38] sm:$0xf0] }
 0x832   :  { %v7000_v23 = vor.u32 %v7675_v55, %v6997_v34 }
 0x833   :  { %v9706_v43 = vadd.f32 %v4558_v44, %v4545_v54  ;;  %v7694_v54 = vld [vmem:[#allocation19 + $0xc4] sm:$0xf0] }
 0x834   :  { %4937 = vmatpush.bf16.msra.mxu2 %v7000_v23  ;;  %v7687_v23 = vld [vmem:[#allocation19 + $0x94] sm:$0xf] }
 0x835   :  { %v4591_v0 = vrot.slane %v9706_v43, 4 }
 0x836   :  { %v4572_v40 = vpop.f32.mrf.mxu2 }
 0x837   :  { %v4592_v48 = vmax.f32 %v9706_v43, %v4591_v0  ;;  %v4573_v31 = vadd.f32 %v4572_v40, %v4372_v42  ;;  %v6987_v0 = vld [vmem:[#allocation19 + $0x20] sm:$0xf]  ;;  %v7068_v40 = vor.u32 %v7694_v54, %v7067_v16  ;;  %v7045_v54 = vld [vmem:[#allocation19 + $0x98] sm:$0xf0] }
 0x838   :  { %v4546_v30 = vpop.f32.mrf.mxu0  ;;  %v6988_v21 = vor.u32 %v7674_v56, %v6987_v0  ;;  %4938 = vmatpush.bf16.msra.mxu2 %v6992_v27  ;;  %v7048_v36 = vor.u32 %v7687_v23, %v7045_v54 }
 0x839   :  { %v4593_v50 = vrot.slane %v4592_v48, 2  ;;  %v9713_v9 = vadd.f32 %v4586_v33, %v4573_v31  ;;  %v4547_v57 = vadd.f32 %v4546_v30, %v4371_v58  ;;  %v7059_v31 = vld [vmem:[#allocation19 + $0xb0] sm:$0xf]  ;;  %4923 = vmatpush.bf16.msra.mxu1 %v7068_v40  ;;  %v7691_v30 = vld [vmem:[#allocation19 + $0xb4] sm:$0xf] }
 0x83a   :  { %v7060_v13 = vor.u32 %v7692_v5, %v7059_v31  ;;  %v7064_v38 = vor.u32 %v7691_v30, %v7061_v6  ;;  %4912 = vmatpush.bf16.msra.mxu0 %v6988_v21  ;;  %v7716_v21 = vld [vmem:[#allocation20 + $0x74] sm:$0xf0] }
 0x83b   :  { %v4594_v10 = vmax.f32 %v4592_v48, %v4593_v50  ;;  %v4597_v29 = vrot.slane %v9713_v9, 4  ;;  %v9716_v2 = vadd.f32 %v4560_v59, %v4547_v57  ;;  %v7672_v50 = vld [vmem:[#allocation19 + $0x14] sm:$0xf0]  ;;  %v6981_v59 = vld [vmem:[#allocation19 + $0x18] sm:$0xf0] }
 0x83c   :  { %v6980_v32 = vor.u32 %v7672_v50, %v6979_v8  ;;  %4950 = vmatpush.bf16.msra.mxu3 %v7064_v38  ;;  %v6984_v12 = vor.u32 %v7671_v62, %v6981_v59  ;;  %v7157_v38 = vld [vmem:[#allocation20 + $0x78] sm:$0xf0] }
 0x83d   :  { %v4595_v11 = vrot.slane %v4594_v10, 1  ;;  %v4598_v47 = vmax.f32 %v9713_v9, %v4597_v29  ;;  %v4603_v22 = vrot.slane %v9716_v2, 4  ;;  %4924 = vmatpush.bf16.msra.mxu1 %v7060_v13 }
 0x83e   :  { %v4574_v58 = vpop.f32.mrf.mxu2  ;;  %4913 = vmatpush.bf16.msra.mxu0 %v6980_v32  ;;  %4939 = vmatpush.bf16.msra.mxu2 %v6984_v12  ;;  %v7147_v32 = vld [vmem:[#allocation20 + $0x60] sm:$0xf] }
 0x83f   :  { %v9720_v1 = vmax.f32 %v4594_v10, %v4595_v11  ;;  %v4599_v37 = vrot.slane %v4598_v47, 2  ;;  %v4604_v46 = vmax.f32 %v9716_v2, %v4603_v22  ;;  %v4575_v44 = vadd.f32 %v4574_v58, %v4372_v42  ;;  %v7670_v58 = vld [vmem:[#allocation19 + $0x4] sm:$0xf0] }
 0x840   :  { %v7052_v22 = vor.u32 %v7690_v53, %v7051_v52  ;;  %v7713_v53 = vld [vmem:[#allocation20 + $0x64] sm:$0xf] }
 0x841   :  { %vm4615_vm0 = vcmp.eq.f32.partialorder %v9706_v43, %v9720_v1  ;;  %v4600_v45 = vmax.f32 %v4598_v47, %v4599_v37  ;;  %v4605_v39 = vrot.slane %v4604_v46, 2  ;;  %v9728_v42 = vadd.f32 %v4588_v15, %v4575_v44  ;;  %v7688_v44 = vld [vmem:[#allocation19 + $0x94] sm:$0xf0] }
 0x842   :  { %v4619_v24 = vsel %vm4615_vm0, %v9963_v19, 8  ;;  %v4691_v25 = vpack.c.bf16 %v9720_v1, %v9720_v1  ;;  %v7056_v37 = vor.u32 %v7689_v60, %v7053_v41  ;;  %4925 = vmatpush.bf16.msra.mxu1 %v7052_v22  ;;  %v6972_v15 = vor.u32 %v7670_v58, %v6971_v17  ;;  %v7732_v41 = vld [vmem:[#allocation20 + $0xf4] sm:$0xf0]  ;;  %v7221_v22 = vld [vmem:[#allocation20 + $0xf8] sm:$0xf0] }
 0x843   :  { %v4623_v63 = vrot.slane %v4619_v24, 4  ;;  %v4601_v33 = vrot.slane %v4600_v45, 1  ;;  %v4606_v48 = vmax.f32 %v4604_v46, %v4605_v39  ;;  %v4609_v43 = vrot.slane %v9728_v42, 4  ;;  %v7043_v46 = vld [vmem:[#allocation19 + $0x90] sm:$0xf] }
 0x844   :  { %4951 = vmatpush.bf16.msra.mxu3 %v7056_v37  ;;  %v7044_v56 = vor.u32 %v7688_v44, %v7043_v46  ;;  %v4737_v40 = vunpack.c.l.b16 %v4691_v25  ;;  %4914 = vmatpush.bf16.msra.mxu0 %v6972_v15  ;;  %v7729_v25 = vld [vmem:[#allocation20 + $0xe4] sm:$0xf] }
 0x845   :  { %vm4624_vm13 = vcmp.lt.s32.totalorder %v4619_v24, %v4623_v63  ;;  %v9731_v28 = vmax.f32 %v4600_v45, %v4601_v33  ;;  %v4607_v61 = vrot.slane %v4606_v48, 1  ;;  %v4610_v7 = vmax.f32 %v9728_v42, %v4609_v43  ;;  %v7037_v33 = vld [vmem:[#allocation19 + $0x88] sm:$0xf0]  ;;  %v7155_v43 = vld [vmem:[#allocation20 + $0x70] sm:$0xf] }
 0x846   :  { %v9733_v57 = vsel %vm4624_vm13, %v4619_v24, %v4623_v63  ;;  %v6976_v45 = vor.u32 %v7669_v51, %v6973_v20  ;;  %v7035_v24 = vld [vmem:[#allocation19 + $0x80] sm:$0xf]  ;;  %v7685_v63 = vld [vmem:[#allocation19 + $0x84] sm:$0xf]  ;;  %4926 = vmatpush.bf16.msra.mxu1 %v7044_v56  ;;  %v7156_v60 = vor.u32 %v7716_v21, %v7155_v43  ;;  %v7203_v56 = vld [vmem:[#allocation20 + $0xd0] sm:$0xf] }
 0x847   :  { %vm4616_vm6 = vcmp.eq.f32.partialorder %v9713_v9, %v9731_v28  ;;  %v9739_v29 = vmax.f32 %v4606_v48, %v4607_v61  ;;  %v4611_v14 = vrot.slane %v4610_v7, 2  ;;  %v4626_v11 = vrot.slane %v9733_v57, 2  ;;  %v7715_v61 = vld [vmem:[#allocation20 + $0x74] sm:$0xf]  ;;  %v7133_v21 = vld [vmem:[#allocation20 + $0x48] sm:$0xf0] }
 0x848   :  { %v4620_v10 = vsel %vm4616_vm6, %v9963_v19, 8  ;;  %4940 = vmatpush.bf16.msra.mxu2 %v6976_v45  ;;  %4952 = vmatpush.bf16.msra.mxu3 %v7048_v36  ;;  %v7040_v52 = vor.u32 %v7685_v63, %v7037_v33  ;;  %v7160_v17 = vor.u32 %v7715_v61, %v7157_v38  ;;  %v7205_v63 = vld [vmem:[#allocation20 + $0xd8] sm:$0xf0]  ;;  %vm4673_vm6 = vcmask 1045509  }
 0x849   :  { %v4632_v47 = vrot.slane %v4620_v10, 4  ;;  %vm4617_vm8 = vcmp.eq.f32.partialorder %v9716_v2, %v9739_v29  ;;  %v4693_v9 = vpack.c.bf16 %v9739_v29, %v9739_v29  ;;  %v4612_v18 = vmax.f32 %v4610_v7, %v4611_v14  ;;  %v7219_v14 = vld [vmem:[#allocation20 + $0xf0] sm:$0xf]  ;;  %5161 = vmatpush.bf16.msrb.mxu0 %v7156_v60 }
 0x84a   :  { %v4621_v55 = vsel %vm4617_vm8, %v9963_v19, 8  ;;  %v4692_v2 = vpack.c.bf16 %v9731_v28, %v9731_v28  ;;  %vm9754_vm4 = vcmp.lt.s32.totalorder %v9733_v57, %v4626_v11  ;;  %v7036_v7 = vor.u32 %v7686_v4, %v7035_v24  ;;  %v7728_v24 = vld [vmem:[#allocation20 + $0xd4] sm:$0xf0]  ;;  %v7727_v4 = vld [vmem:[#allocation20 + $0xd4] sm:$0xf] }
 0x84b   :  { %vm4633_vm3 = vcmp.lt.s32.totalorder %v4620_v10, %v4632_v47  ;;  %v4641_v16 = vrot.slane %v4621_v55, 4  ;;  %v4613_v3 = vrot.slane %v4612_v18, 1  ;;  %v4739_v26 = vunpack.c.l.b16 %v4693_v9  ;;  %v7211_v9 = vld [vmem:[#allocation20 + $0xe0] sm:$0xf] }
 0x84c   :  { %v4634_v34 = vsel %vm4633_vm3, %v4620_v10, %v4632_v47  ;;  %v4738_v31 = vunpack.c.l.b16 %v4692_v2  ;;  %v7149_v10 = vld [vmem:[#allocation20 + $0x68] sm:$0xf0]  ;;  %v7731_v47 = vld [vmem:[#allocation20 + $0xf4] sm:$0xf]  ;;  %4927 = vmatpush.bf16.msra.mxu1 %v7036_v7  ;;  %4953 = vmatpush.bf16.msra.mxu3 %v7040_v52  ;;  %v7220_v44 = vor.u32 %v7732_v41, %v7219_v14  ;;  %v7139_v2 = vld [vmem:[#allocation20 + $0x50] sm:$0xf] }
 0x84d   :  { %v4635_v35 = vrot.slane %v4634_v34, 2  ;;  %vm4642_vm5 = vcmp.lt.s32.totalorder %v4621_v55, %v4641_v16  ;;  %v9758_v0 = vmax.f32 %v4612_v18, %v4613_v3  ;;  %v4741_v6 = vsel %vm2653_vm1, %v4739_v26, %v4737_v40  ;;  %v7730_v18 = vld [vmem:[#allocation20 + $0xe4] sm:$0xf0]  ;;  %5187 = vmatpush.bf16.msrb.mxu2 %v7160_v17  ;;  %v7141_v26 = vld [vmem:[#allocation20 + $0x58] sm:$0xf0] }
 0x84e   :  { %v4643_v49 = vsel %vm4642_vm5, %v4621_v55, %v4641_v16  ;;  %v4743_v50 = vpack.c.b16 %v4741_v6, %v4741_v6  ;;  %v7213_v55 = vld [vmem:[#allocation20 + $0xe8] sm:$0xf0]  ;;  %v7152_v46 = vor.u32 %v7713_v53, %v7149_v10  ;;  %v7712_v16 = vld [vmem:[#allocation20 + $0x54] sm:$0xf0]  ;;  %v7212_v45 = vor.u32 %v7730_v18, %v7211_v9  ;;  %v7125_v52 = vld [vmem:[#allocation20 + $0x38] sm:$0xf0] }
 0x84f   :  { %vm4636_vm10 = vcmp.lt.s32.totalorder %v4634_v34, %v4635_v35  ;;  %v4644_v5 = vrot.slane %v4643_v49, 2  ;;  %vm4618_vm11 = vcmp.eq.f32.partialorder %v9728_v42, %v9758_v0  ;;  %v4694_v30 = vpack.c.bf16 %v9758_v0, %v9758_v0  ;;  %v7714_v42 = vld [vmem:[#allocation20 + $0x64] sm:$0xf0]  ;;  %v7195_v9 = vld [vmem:[#allocation20 + $0xc0] sm:$0xf] }
 0x850   :  { %v4637_v48 = vsel %vm4636_vm10, %v4634_v34, %v4635_v35  ;;  %v4622_v13 = vsel %vm4618_vm11, %v9963_v19, 8  ;;  %v9771_v19 = vsel %vm9754_vm4, %v9733_v57, %v4626_v11  ;;  %4915 = vmatmul.bf16.vlgmr.msra.gmra.mxu0 %v4743_v50  ;;  %4941 = vmatmul.bf16.vlgmr.msra.gmra.mxu2 %v4743_v50  ;;  %v7148_v20 = vor.u32 %v7714_v42, %v7147_v32  ;;  %v7711_v35 = vld [vmem:[#allocation20 + $0x54] sm:$0xf]  ;;  %v7708_v42 = vld [vmem:[#allocation20 + $0x34] sm:$0xf0] }
 0x851   :  { %v4638_v27 = vrot.slane %v4637_v48, 1  ;;  %vm4645_vm12 = vcmp.lt.s32.totalorder %v4643_v49, %v4644_v5  ;;  %v4650_v8 = vrot.slane %v4622_v13, 4  ;;  %v4740_v59 = vunpack.c.l.b16 %v4694_v30  ;;  %5174 = vmatpush.bf16.msrb.mxu1 %v7220_v44  ;;  %5188 = vmatpush.bf16.msrb.mxu2 %v7152_v46  ;;  %v7726_v18 = vld [vmem:[#allocation20 + $0xc4] sm:$0xf0]  ;;  %v7705_v44 = vld [vmem:[#allocation20 + $0x24] sm:$0xf] }
 0x852   :  { %v9777_v12 = vsel %vm4645_vm12, %v4643_v49, %v4644_v5  ;;  %v4629_v37 = vrot.slane %v9771_v19, 1  ;;  %v7224_v34 = vor.u32 %v7731_v47, %v7221_v22  ;;  %v4664_v54 = vrot.slane %v9758_v0, 6  ;;  %5162 = vmatpush.bf16.msrb.mxu0 %v7148_v20  ;;  %v7197_v20 = vld [vmem:[#allocation20 + $0xc8] sm:$0xf0] }
 0x853   :  { %vm9773_vm14 = vcmp.lt.s32.totalorder %v4637_v48, %v4638_v27  ;;  %vm4651_vm15 = vcmp.lt.s32.totalorder %v4622_v13, %v4650_v8  ;;  %v4742_v11 = vsel %vm2653_vm1, %v4740_v59, %v4738_v31  ;;  %v4647_v23 = vrot.slane %v9777_v12, 1  ;;  %v7710_v31 = vld [vmem:[#allocation20 + $0x44] sm:$0xf0]  ;;  %v7707_v59 = vld [vmem:[#allocation20 + $0x34] sm:$0xf] }
 0x854   :  { %v4652_v57 = vsel %vm4651_vm15, %v4622_v13, %v4650_v8  ;;  %v4744_v51 = vpack.c.b16 %v4742_v11, %v4742_v11  ;;  %v9783_v3 = vsel %vm9773_vm14, %v4637_v48, %v4638_v27  ;;  %5200 = vmatpush.bf16.msrb.mxu3 %v7224_v34  ;;  %v7216_v39 = vor.u32 %v7729_v25, %v7213_v55  ;;  %v7131_v48 = vld [vmem:[#allocation20 + $0x40] sm:$0xf]  ;;  %v7706_v55 = vld [vmem:[#allocation20 + $0x24] sm:$0xf0]  ;;  %v7117_v34 = vld [vmem:[#allocation20 + $0x28] sm:$0xf0] }
 0x855   :  { %v4653_v58 = vrot.slane %v4652_v57, 2  ;;  %v4663_v40 = vrot.slane %v9731_v28, 6  ;;  %v7140_v36 = vor.u32 %v7712_v16, %v7139_v2  ;;  %vm9789_vm2 = vcmp.lt.s32.totalorder %v9771_v19, %v4629_v37  ;;  %v7709_v28 = vld [vmem:[#allocation20 + $0x44] sm:$0xf]  ;;  %5175 = vmatpush.bf16.msrb.mxu1 %v7212_v45  ;;  %v7115_v25 = vld [vmem:[#allocation20 + $0x20] sm:$0xf] }
 0x856   :  { %4928 = vmatmul.bf16.vlgmr.msra.gmra.mxu1 %v4744_v51  ;;  %4954 = vmatmul.bf16.vlgmr.msra.gmra.mxu3 %v4744_v51  ;;  %v7144_v33 = vor.u32 %v7711_v35, %v7141_v26  ;;  %v4679_v5 = vrot.slane %v9783_v3, 6  ;;  %vm9795_vm0 = vcmp.lt.s32.totalorder %v9777_v12, %v4647_v23  ;;  %v4666_v27 = vsel %vm2645_vm7, %v9739_v29, %v4664_v54  ;;  %v7123_v29 = vld [vmem:[#allocation20 + $0x30] sm:$0xf]  ;;  %v7724_v3 = vld [vmem:[#allocation20 + $0xb4] sm:$0xf0] }
 0x857   :  { %vm4654_vm9 = vcmp.lt.s32.totalorder %v4652_v57, %v4653_v58  ;;  %v7204_v30 = vor.u32 %v7728_v24, %v7203_v56  ;;  %v7208_v6 = vor.u32 %v7727_v4, %v7205_v63  ;;  %v4670_v61 = vrot.slane %v4666_v27, 7  ;;  %5163 = vmatpush.bf16.msrb.mxu0 %v7140_v36  ;;  %v7187_v2 = vld [vmem:[#allocation20 + $0xb0] sm:$0xf]  ;;  %v7189_v54 = vld [vmem:[#allocation20 + $0xb8] sm:$0xf0] }
 0x858   :  { %v4655_v15 = vsel %vm4654_vm9, %v4652_v57, %v4653_v58  ;;  %5201 = vmatpush.bf16.msrb.mxu3 %v7216_v39  ;;  %v7132_v8 = vor.u32 %v7710_v31, %v7131_v48  ;;  %v4665_v50 = vsel %vm2645_vm7, %v9720_v1, %v4663_v40  ;;  %v4649_v7 = vsel %vm9795_vm0, %v9777_v12, %v4647_v23  ;;  %v7725_v58 = vld [vmem:[#allocation20 + $0xc4] sm:$0xf]  ;;  %v7723_v23 = vld [vmem:[#allocation20 + $0xb4] sm:$0xf]  ;;  %v7704_v45 = vld [vmem:[#allocation20 + $0x14] sm:$0xf0] }
 0x859   :  { %v4656_v49 = vrot.slane %v4655_v15, 1  ;;  %5189 = vmatpush.bf16.msrb.mxu2 %v7144_v33  ;;  %v7136_v32 = vor.u32 %v7709_v28, %v7133_v21  ;;  %v4671_v62 = vsel %vm2653_vm1, %v4670_v61, %v4665_v50  ;;  %vm4675_vm8 = vcmask 1047559   ;;  %5176 = vmatpush.bf16.msrb.mxu1 %v7204_v30  ;;  %v7703_v56 = vld [vmem:[#allocation20 + $0x14] sm:$0xf]  ;;  %v7109_v24 = vld [vmem:[#allocation20 + $0x18] sm:$0xf0] }
 0x85a   :  { %vm9972_vm3 = vcmask 1043459   ;;  %v4631_v1 = vsel %vm9789_vm2, %v9771_v19, %v4629_v37  ;;  %v7124_v60 = vor.u32 %v7708_v42, %v7123_v29  ;;  %v7128_v22 = vor.u32 %v7707_v59, %v7125_v52  ;;  %v7179_v40 = vld [vmem:[#allocation20 + $0xa0] sm:$0xf]  ;;  %v7722_v36 = vld [vmem:[#allocation20 + $0xa4] sm:$0xf0]  ;;  %v7740_v42 = vld [vmem:[#allocation22 + $0x38] sm:$0xff] }
 0x85b   :  { %vm4657_vm13 = vcmp.lt.s32.totalorder %v4655_v15, %v4656_v49  ;;  %v4672_v53 = vsel %vm9972_vm3, %v4670_v61, %v4671_v62  ;;  %5164 = vmatpush.bf16.msrb.mxu0 %v7132_v8  ;;  %v4681_v47 = vsel %vm2645_vm7, %v4631_v1, %v4679_v5  ;;  %vm9973_vm4 = vmmov %vm9972_vm3  ;;  %v7196_v51 = vor.u32 %v7726_v18, %v7195_v9  ;;  %v7721_v4 = vld [vmem:[#allocation20 + $0xa4] sm:$0xf]  ;;  %v7181_v63 = vld [vmem:[#allocation20 + $0xa8] sm:$0xf0] }
 0x85c   :  { %v4658_v13 = vsel %vm4657_vm13, %v4655_v15, %v4656_v49  ;;  %5202 = vmatpush.bf16.msrb.mxu3 %v7208_v6  ;;  %v4674_v14 = vsel %vm4673_vm6, %v4670_v61, %v4672_v53  ;;  %v7200_v37 = vor.u32 %v7725_v58, %v7197_v20  ;;  %v7116_v46 = vor.u32 %v7706_v55, %v7115_v25  ;;  %v7107_v15 = vld [vmem:[#allocation20 + $0x10] sm:$0xf]  ;;  %v7099_v48 = vld [vmem:[#allocation20] sm:$0xf]  ;;  %v7702_v31 = vld [vmem:[#allocation20 + $0x4] sm:$0xf0] }
 0x85d   :  { %v4680_v38 = vrot.slane %v4658_v13, 6  ;;  %v4676_v41 = vsel %vm4675_vm8, %v4670_v61, %v4674_v14  ;;  %5190 = vmatpush.bf16.msrb.mxu2 %v7136_v32  ;;  %5177 = vmatpush.bf16.msrb.mxu1 %v7196_v51  ;;  %v7120_v16 = vor.u32 %v7705_v44, %v7117_v34  ;;  %v7188_v35 = vor.u32 %v7724_v3, %v7187_v2  ;;  %v7701_v5 = vld [vmem:[#allocation20 + $0x4] sm:$0xf]  ;;  %v7101_v28 = vld [vmem:[#allocation20 + $0x8] sm:$0xf0]  ;;  %v7748_v59 = vld [vmem:[#allocation22 + $0x78] sm:$0xff] }
 0x85e   :  { %4678 = vst [vmem:[#allocation24] sm:$0xf] %v4676_v41  ;;  %v7192_v26 = vor.u32 %v7723_v23, %v7189_v54  ;;  %v7108_v39 = vor.u32 %v7704_v45, %v7107_v15  ;;  %v7112_v49 = vor.u32 %v7703_v56, %v7109_v24  ;;  %v7180_v0 = vor.u32 %v7722_v36, %v7179_v40  ;;  %v7171_v27 = vld [vmem:[#allocation20 + $0x90] sm:$0xf]  ;;  %v7720_v13 = vld [vmem:[#allocation20 + $0x94] sm:$0xf0] }
 0x85f   :  { %v4682_v10 = vsel %vm2645_vm7, %v4649_v7, %v4680_v38  ;;  %5165 = vmatpush.bf16.msrb.mxu0 %v7124_v60  ;;  %v7184_v33 = vor.u32 %v7721_v4, %v7181_v63  ;;  %v7100_v43 = vor.u32 %v7702_v31, %v7099_v48  ;;  %v7104_v21 = vor.u32 %v7701_v5, %v7101_v28  ;;  %v7719_v30 = vld [vmem:[#allocation20 + $0x94] sm:$0xf]  ;;  %v7173_v61 = vld [vmem:[#allocation20 + $0x98] sm:$0xf0]  ;;  %v7163_v38 = vld [vmem:[#allocation20 + $0x80] sm:$0xf] }
 0x860   :  { %v4685_v12 = vrot.slane %v4682_v10, 7  ;;  %5203 = vmatpush.bf16.msrb.mxu3 %v7200_v37  ;;  %v7172_v6 = vor.u32 %v7720_v13, %v7171_v27  ;;  %v7718_v8 = vld [vmem:[#allocation20 + $0x84] sm:$0xf0]  ;;  %v7176_v50 = vor.u32 %v7719_v30, %v7173_v61  ;;  %v7717_v7 = vld [vmem:[#allocation20 + $0x84] sm:$0xf]  ;;  %v7739_v52 = vld [vmem:[#allocation22 + $0x30] sm:$0xff] }
 0x861   :  { %5191 = vmatpush.bf16.msrb.mxu2 %v7128_v22  ;;  %5178 = vmatpush.bf16.msrb.mxu1 %v7188_v35  ;;  %v7165_v32 = vld [vmem:[#allocation20 + $0x88] sm:$0xf0]  ;;  %v7164_v29 = vor.u32 %v7718_v8, %v7163_v38  ;;  %v7747_v53 = vld [vmem:[#allocation22 + $0x70] sm:$0xff]  ;;  %v4727_v14 = vld [vmem:[%s9859_s19] sm:$0x3] }
 0x862   :  { %v4686_v57 = vsel %vm2653_vm1, %v4685_v12, %v4681_v47  ;;  %v7168_v62 = vor.u32 %v7717_v7, %v7165_v32  ;;  %v7738_v10 = vld [vmem:[#allocation22 + $0x28] sm:$0xff]  ;;  %v4729_v60 = vperm.slane %v4727_v14, 0  ;;  %v7736_v47 = vld [vmem:[#allocation22 + $0x18] sm:$0xff]  ;;  %v7745_v2 = vld [vmem:[#allocation22 + $0x60] sm:$0xff]  ;;  %5397 = dma.vmem_to_hbm [thread:$0]  %s5393_s13, 64, %s5395_s30, [#allocation25]  }
 0x863   :  { %v4687_v11 = vsel %vm9973_vm4, %v4685_v12, %v4686_v57  ;;  %5166 = vmatpush.bf16.msrb.mxu0 %v7116_v46  ;;  %v7746_v1 = vld [vmem:[#allocation22 + $0x68] sm:$0xff]  ;;  %v7744_v3 = vld [vmem:[#allocation22 + $0x58] sm:$0xff]  ;;  %v7743_v54 = vld [vmem:[#allocation22 + $0x50] sm:$0xff] }
 0x864   :  { %v4688_v19 = vsel %vm4673_vm6, %v4685_v12, %v4687_v11  ;;  %5204 = vmatpush.bf16.msrb.mxu3 %v7192_v26  ;;  %v7734_v23 = vld [vmem:[#allocation22 + $0x8] sm:$0xff]  ;;  %v7733_v35 = vld [vmem:[#allocation22] sm:$0xff] }
 0x865   :  { %v4689_v17 = vsel %vm4675_vm8, %v4685_v12, %v4688_v19  ;;  %5192 = vmatpush.bf16.msrb.mxu2 %v7120_v16  ;;  %5179 = vmatpush.bf16.msrb.mxu1 %v7180_v0  ;;  %v7737_v12 = vld [vmem:[#allocation22 + $0x20] sm:$0xff]  ;;  %v4730_v19 = vperm.slane %v4727_v14, 1  ;;  %v7735_v16 = vld [vmem:[#allocation22 + $0x10] sm:$0xff]  ;;  %v7742_v26 = vld [vmem:[#allocation22 + $0x48] sm:$0xff] }
 0x866   :  { %4690 = vst [vmem:[#allocation26] sm:$0xf] %v4689_v17  ;;  %v7741_v15 = vld [vmem:[#allocation22 + $0x40] sm:$0xff]  ;;  %v4995_v45 = vld [vmem:[%s9861_s21] sm:$0x3] }
 0x867   :  { %5167 = vmatpush.bf16.msrb.mxu0 %v7108_v39  ;;  %v4997_v56 = vperm.slane %v4995_v45, 0  ;;  %v4998_v4 = vperm.slane %v4995_v45, 1  ;;  %5408 = dma.vmem_to_hbm [thread:$0]  %s5404_s2, 64, %s5406_s25, [#allocation25]  }
 0x868   :  { %5205 = vmatpush.bf16.msrb.mxu3 %v7184_v33 }
 0x869   :  { %5193 = vmatpush.bf16.msrb.mxu2 %v7112_v49  ;;  %5180 = vmatpush.bf16.msrb.mxu1 %v7172_v6  ;;  %v7799_v6 = vld [vmem:[%s9974_s5] ss:$0 sm:$0xff] }
 0x86b   :  { %5168 = vmatpush.bf16.msrb.mxu0 %v7100_v43 }
 0x86c   :  { %5206 = vmatpush.bf16.msrb.mxu3 %v7176_v50 }
 0x86d   :  { %5194 = vmatpush.bf16.msrb.mxu2 %v7104_v21  ;;  %5181 = vmatpush.bf16.msrb.mxu1 %v7164_v29 }
 0x86f   :  { %5349 = vmatpush.bf16.msra.mxu0 %v7740_v42 }
 0x870   :  { %5207 = vmatpush.bf16.msrb.mxu3 %v7168_v62 }
 0x871   :  { %5362 = vmatpush.bf16.msra.mxu1 %v7748_v59 }
 0x873   :  { %5350 = vmatpush.bf16.msra.mxu0 %v7739_v52 }
 0x875   :  { %5363 = vmatpush.bf16.msra.mxu1 %v7747_v53 }
 0x877   :  { %5351 = vmatpush.bf16.msra.mxu0 %v7738_v10 }
 0x879   :  { %5364 = vmatpush.bf16.msra.mxu1 %v7746_v1 }
 0x87b   :  { %5352 = vmatpush.bf16.msra.mxu0 %v7737_v12 }
 0x87d   :  { %5365 = vmatpush.bf16.msra.mxu1 %v7745_v2 }
 0x87f   :  { %5353 = vmatpush.bf16.msra.mxu0 %v7736_v47 }
 0x881   :  { %5366 = vmatpush.bf16.msra.mxu1 %v7744_v3 }
 0x883   :  { %5354 = vmatpush.bf16.msra.mxu0 %v7735_v16 }
 0x885   :  { %5367 = vmatpush.bf16.msra.mxu1 %v7743_v54 }
 0x887   :  { %5355 = vmatpush.bf16.msra.mxu0 %v7734_v23 }
 0x889   :  { %5368 = vmatpush.bf16.msra.mxu1 %v7742_v26 }
 0x88b   :  { %5356 = vmatpush.bf16.msra.mxu0 %v7733_v35 }
 0x88d   :  { %5369 = vmatpush.bf16.msra.mxu1 %v7741_v15 }
 0x8cd   :  { %v4916_v41 = vpop.f32.mrf.mxu0 }
 0x8ce   :  { %v4917_v22 = vadd.f32 %v4916_v41, %v4729_v60 }
 0x8d3   :  { %v4929_v57 = vpop.f32.mrf.mxu1  ;;  %v4942_v17 = vpop.f32.mrf.mxu2 }
 0x8d4   :  { %v4930_v11 = vadd.f32 %v4929_v57, %v4917_v22  ;;  %v4943_v51 = vadd.f32 %v4942_v17, %v4730_v19 }
 0x8d5   :  { %v4918_v18 = vpop.f32.mrf.mxu0 }
 0x8d6   :  { %v4959_v9 = vmax.f32 %v4930_v11, 0.0 }
 0x8d8   :  { %v4961_v58 = vpack.c.bf16 %v4959_v9, %v4959_v9 }
 0x8d9   :  { %v4955_v20 = vpop.f32.mrf.mxu3 }
 0x8da   :  { %v4956_v25 = vadd.f32 %v4955_v20, %v4943_v51  ;;  %5169 = vmatmul.bf16.vlgmr.msrb.gmra.mxu0 %v4961_v58  ;;  %5195 = vmatmul.bf16.vlgmr.msrb.gmra.mxu2 %v4961_v58 }
 0x8db   :  { %v4931_v55 = vpop.f32.mrf.mxu1  ;;  %v4944_v46 = vpop.f32.mrf.mxu2 }
 0x8dc   :  { %v4960_v37 = vmax.f32 %v4956_v25, 0.0 }
 0x8de   :  { %v4962_v44 = vpack.c.bf16 %v4960_v37, %v4960_v37 }
 0x8e0   :  { %5182 = vmatmul.bf16.vlgmr.msrb.gmra.mxu1 %v4962_v44  ;;  %5208 = vmatmul.bf16.vlgmr.msrb.gmra.mxu3 %v4962_v44 }
 0x8e1   :  { %v4957_v34 = vpop.f32.mrf.mxu3 }
 0x957   :  { %v5170_v39 = vpop.f32.mrf.mxu0 }
 0x958   :  { %v5171_v24 = vadd.f32 %v5170_v39, %v4997_v56 }
 0x95d   :  { %v5183_v40 = vpop.f32.mrf.mxu1  ;;  %v5196_v49 = vpop.f32.mrf.mxu2 }
 0x95e   :  { %v5184_v36 = vadd.f32 %v5183_v40, %v5171_v24  ;;  %v5197_v48 = vadd.f32 %v5196_v49, %v4998_v4 }
 0x95f   :  { %v5172_v63 = vpop.f32.mrf.mxu0 }
 0x960   :  { %v5213_v0 = vmax.f32 %v5184_v36, 0.0 }
 0x962   :  { %v5215_v33 = vpack.c.bf16 %v5213_v0, %v5213_v0 }
 0x963   :  { %v5209_v31 = vpop.f32.mrf.mxu3 }
 0x964   :  { %v5210_v5 = vadd.f32 %v5209_v31, %v5197_v48  ;;  %5357 = vmatmul.bf16.vlgmr.msra.gmra.mxu0 %v5215_v33 }
 0x965   :  { %v5185_v43 = vpop.f32.mrf.mxu1  ;;  %v5198_v28 = vpop.f32.mrf.mxu2 }
 0x966   :  { %v5214_v21 = vmax.f32 %v5210_v5, 0.0 }
 0x968   :  { %v5216_v27 = vpack.c.bf16 %v5214_v21, %v5214_v21 }
 0x96a   :  { %5370 = vmatmul.bf16.vlgmr.msra.gmra.mxu1 %v5216_v27 }
 0x96b   :  { %v5211_v13 = vpop.f32.mrf.mxu3 }
 0x9e1   :  { %v5358_v30 = vpop.f32.mrf.mxu0 }
 0x9e2   :  { %v5359_v61 = vadd.f32 %v7799_v6, %v5358_v30 }
 0x9e7   :  { %v5371_v38 = vpop.f32.mrf.mxu1 }
 0x9e8   :  { %v5372_v8 = vadd.f32 %v5371_v38, %v5359_v61 }
 0x9e9   :  { %v5360_v50 = vpop.f32.mrf.mxu0 }
 0x9ea   :  { %5375 = vst [vmem:[#allocation27] sm:$0x3] %v5372_v8 }
 0x9eb   :  { %5419 = dma.vmem_to_hbm [thread:$0]  %s5415_s18, 32, %s5417_s22, [#allocation28]  }
 0x9ef   :  { %v5373_v7 = vpop.f32.mrf.mxu1 }
 0x9f0   :  { %8310 = dma.done.wait [#allocation4], 32  }
 0x9f1   :  { %8311 = vsyncadd [#allocation4], 4294967264 }
 0x9f2   :  { %8312 = dma.done.wait [#allocation25], 128  }
 0x9f3   :  { %8313 = vsyncadd [#allocation25], 4294967168 }
 0x9f4   :  { %8314 = dma.done.wait [#allocation28], 32  }
 0x9f5   :  { %8315 = vsyncadd [#allocation28], 4294967264 }
 0x9f6   :  { %5436 = vsyncpa [#allocation3], 1 }
 0x9f7   :  { %5437 = vsyncpa [#allocation6], 1 }
 0x9f8   :  { %5438 = vsyncpa [#allocation9], 1 }
 0x9f9   :  { %5439 = vsyncpa [#allocation12], 1 }
 0x9fa   :  { %5440 = vsyncpa [#allocation15], 1 }
 0x9fb   :  { %5441 = vsyncpa [#allocation18], 1 }
 0x9fc   :  { %5442 = vsyncpa [#allocation21], 1 }
 0x9fd   :  { %5443 = vsyncpa [#allocation4], 1 }
 0x9fe   :  { %5444 = vsyncpa [#allocation25], 1 }
 0x9ff   :  { %5445 = vsyncpa [#allocation28], 1 }

</bundles_post_ra>
